<compile_context>
chip_gen: v7x
topology: tpu7x:2x2x1
jax: 0.10.0
libtpu: 0.0.40
codegen_flags: <defaults>
</compile_context>

<pallas_src>
import functools
import math

import jax
import jax.numpy as jnp
import numpy as np
from jax.experimental import pallas as pl
from jax.experimental.pallas import tpu as pltpu


# ----------------------------- Pallas kernel --------------------------------

def _mish_f32(x):
    """mish(x) = x * tanh(softplus(x)), with one exp + one approx reciprocal."""
    t = jnp.exp(-jnp.abs(x))
    pos = x >= 0.0
    num = jnp.where(pos, 1.0 + 2.0 * t, t * (t + 2.0))
    den = jnp.where(pos, 1.0 + 2.0 * t + 2.0 * t * t, t * t + 2.0 * t + 2.0)
    return x * num * pl.reciprocal(den, approx=True)


def _fused_featmap_kernel(x_ref, *refs, n_conv):
    """One grid step = one image through all conv layers + the final FC.

    refs = (S_0..S_{L-1}, W_0..W_{L-1}, b_0..b_{L-1}, fc_w, fc_b, o_ref)
      S_l : (9, Ho*Wo, Hin*Win) bf16   0/1 tap-selection matrices
      W_l : (9, Cin, Cout)      bf16   per-tap conv weights
      b_l : (1, Cout)           f32
      fc_w: (z, z) bf16 (already W.T / sqrt(z)),  fc_b: (1, z) f32
    """
    s_refs = refs[0:n_conv]
    w_refs = refs[n_conv:2 * n_conv]
    b_refs = refs[2 * n_conv:3 * n_conv]
    fcw_ref = refs[3 * n_conv]
    fcb_ref = refs[3 * n_conv + 1]
    o_ref = refs[3 * n_conv + 2]

    a = x_ref[0].astype(jnp.bfloat16)                     # (H0*W0, C0)

    for l in range(n_conv):                               # static layer unroll
        s_ref = s_refs[l]
        w_ref = w_refs[l]
        hw_out = s_ref.shape[1]
        c_out = w_ref.shape[2]
        acc = jnp.zeros((hw_out, c_out), jnp.float32)
        for t in range(9):                                # 9 taps of the 3x3
            # Row selection (exact: S_t is 0/1) -> im2col patch for this tap.
            patch = jnp.dot(s_ref[t], a, preferred_element_type=jnp.float32)
            acc = acc + jnp.dot(patch.astype(jnp.bfloat16), w_ref[t],
                                preferred_element_type=jnp.float32)
        acc = acc + b_refs[l][...]                        # bias in f32
        a = _mish_f32(acc).astype(jnp.bfloat16)           # next activation

    # Final FullyConnectedLayer on the (1, z_dims) channel vector.
    out = jnp.dot(a, fcw_ref[...], preferred_element_type=jnp.float32)
    out = out + fcb_ref[...]
    o_ref[0] = out.astype(o_ref.dtype)


def featmap_to_latent(kparams, x_nchw, z_dims):
    """Fused forward.  x_nchw: (N, C, H, W) f32  ->  (N, z_dims) f32."""
    n, c, h, w = x_nchw.shape
    x = jnp.transpose(x_nchw, (0, 2, 3, 1)).reshape(n, h * w, c)  # NCHW->NHWC, flat spatial

    n_conv = len(kparams["S"])
    operands = ([x] + list(kparams["S"]) + list(kparams["W"]) + list(kparams["b"])
                + [kparams["fc_w"], kparams["fc_b"]])

    def _const_spec(arr):
        nd = arr.ndim
        return pl.BlockSpec(arr.shape, lambda b, _nd=nd: (0,) * _nd)

    in_specs = ([pl.BlockSpec((1, h * w, c), lambda b: (b, 0, 0))]
                + [_const_spec(a) for a in operands[1:]])

    out = pl.pallas_call(
        functools.partial(_fused_featmap_kernel, n_conv=n_conv),
        out_shape=jax.ShapeDtypeStruct((n, 1, z_dims), jnp.float32),
        grid=(n,),
        in_specs=in_specs,
        out_specs=pl.BlockSpec((1, 1, z_dims), lambda b: (b, 0, 0)),
        compiler_params=pltpu.CompilerParams(
            dimension_semantics=("parallel",),       # v7x: 2 TCs split the batch
            vmem_limit_bytes=32 * 1024 * 1024),      # explicit, fits v5e/v6e/v7x
    )(*operands)
    return out.reshape(n, z_dims)


# ------------------------------- param build ---------------------------------

def log2_diff(a, b):
    return int(math.log2(a)) - int(math.log2(b))


def init_params(key, imsize, nc_in, z_dims):
    """Raw (PyTorch-layout) parameters: HWIO conv weights, fc (out,in) weight."""
    n_down = log2_diff(imsize, 1)
    convs = []
    nc = nc_in
    for _ in range(n_down):
        next_nc = min(z_dims, nc * 2)
        key, kw_, kb_ = jax.random.split(key, 3)
        w = jax.random.normal(kw_, (3, 3, nc, next_nc), jnp.float32)  # HWIO
        w = w * (1.0 / math.sqrt(9 * nc))
        b = jax.random.normal(kb_, (1, next_nc), jnp.float32) * 0.1
        convs.append((w, b))
        nc = next_nc
    assert nc == z_dims, "channel schedule must reach z_dims"
    key, kw_ = jax.random.split(key)
    fc_w = jax.random.normal(kw_, (z_dims, z_dims), jnp.float32)  # (out, in)
    fc_b = jnp.zeros((1, z_dims), jnp.float32)
    return {"convs": convs, "fc_w": fc_w, "fc_b": fc_b}


def _build_selection_matrices(h, w):
    """S[t] (HoWo, HW): 0/1 row selectors for tap t=kh*3+kw of a 3x3/s2/p1 conv."""
    ho, wo = h // 2, w // 2
    s = np.zeros((9, ho * wo, h * w), np.float32)
    for kh in range(3):
        for kw in range(3):
            t = kh * 3 + kw
            for oi in range(ho):
                for oj in range(wo):
                    ih = 2 * oi + kh - 1
                    iw = 2 * oj + kw - 1
                    if 0 <= ih < h and 0 <= iw < w:
                        s[t, oi * wo + oj, ih * w + iw] = 1.0
    return s


def build_kernel_params(params, imsize):
    """Hoisted weight preprocessing (done once, outside the forward pass)."""
    h = w = imsize
    s_list, w_list, b_list = [], [], []
    for (wconv, b) in params["convs"]:
        c_in, c_out = wconv.shape[2], wconv.shape[3]
        s_list.append(jnp.asarray(_build_selection_matrices(h, w), jnp.bfloat16))
        w_list.append(jnp.asarray(wconv).reshape(9, c_in, c_out).astype(jnp.bfloat16))
        b_list.append(b.astype(jnp.float32))
        h, w = h // 2, w // 2
    assert h == 1 and w == 1, "spatial size must reach 1x1"
    z = params["fc_w"].shape[0]
    fc_w_eff = (params["fc_w"].T * (1.0 / math.sqrt(z))).astype(jnp.bfloat16)
    fc_b = params["fc_b"].astype(jnp.float32)
    return {"S": s_list, "W": w_list, "b": b_list, "fc_w": fc_w_eff, "fc_b": fc_b}


# --------------------------------- reference ----------------------------------

def reference(params, x_nchw, z_dims):
    """Pure-JAX f32 reference mirroring the PyTorch forward (NCHW convs)."""
    x = x_nchw
    for (w, b) in params["convs"]:
        x = jax.lax.conv_general_dilated(
            x, w, window_strides=(2, 2), padding=((1, 1), (1, 1)),
            dimension_numbers=("NCHW", "HWIO", "NCHW"))
        x = x + b.reshape(1, -1, 1, 1)
        x = x * jnp.tanh(jax.nn.softplus(x))
    x = x.reshape(-1, z_dims)
    return x @ (params["fc_w"].T * (1.0 / math.sqrt(z_dims))) + params["fc_b"]


# --------------------------------- main ---------------------------------------

if __name__ == "__main__":
    imsize, nc_in, z_dims, batch = 16, 4, 32, 2
    key = jax.random.PRNGKey(0)
    key, kx = jax.random.split(key)
    x = jax.random.normal(kx, (batch, nc_in, imsize, imsize), jnp.float32)

    params = init_params(key, imsize, nc_in, z_dims)
    kparams = build_kernel_params(params, imsize)   # hoisted preprocessing

    fwd = jax.jit(functools.partial(featmap_to_latent, z_dims=z_dims))
    out = jax.block_until_ready(fwd(kparams, x))

    ref = jax.block_until_ready(reference(params, x, z_dims))
    assert out.shape == (batch, z_dims), out.shape
    # Kernel runs its matmuls in bf16 (f32 accumulation) per the perf review;
    # tolerance is set for bf16-vs-f32 drift through 5 matmul layers.
    np.testing.assert_allclose(np.asarray(out), np.asarray(ref), rtol=5e-2, atol=5e-2)

    print("KERNEL_OK")
</pallas_src>

<mosaic_0001>
module attributes {stable_mosaic.version = 11 : i64} {
  func.func @_fused_featmap_kernel(%arg0: i32, %arg1: memref<1x256x4xf32, #tpu.memory_space<vmem>>, %arg2: memref<9x64x256xbf16, #tpu.memory_space<vmem>>, %arg3: memref<9x16x64xbf16, #tpu.memory_space<vmem>>, %arg4: memref<9x4x16xbf16, #tpu.memory_space<vmem>>, %arg5: memref<9x1x4xbf16, #tpu.memory_space<vmem>>, %arg6: memref<9x4x8xbf16, #tpu.memory_space<vmem>>, %arg7: memref<9x8x16xbf16, #tpu.memory_space<vmem>>, %arg8: memref<9x16x32xbf16, #tpu.memory_space<vmem>>, %arg9: memref<9x32x32xbf16, #tpu.memory_space<vmem>>, %arg10: memref<1x8xf32, #tpu.memory_space<vmem>>, %arg11: memref<1x16xf32, #tpu.memory_space<vmem>>, %arg12: memref<1x32xf32, #tpu.memory_space<vmem>>, %arg13: memref<1x32xf32, #tpu.memory_space<vmem>>, %arg14: memref<32x32xbf16, #tpu.memory_space<vmem>>, %arg15: memref<1x32xf32, #tpu.memory_space<vmem>>, %arg16: memref<1x1x32xf32, #tpu.memory_space<vmem>>) attributes {dimension_semantics = [#tpu.dimension_semantics<parallel>], iteration_bounds = array<i64: 2>, scalar_prefetch = 0 : i64, scratch_operands = 0 : i64, tpu.core_type = #tpu.core_type<tc>, window_params = [{transform_indices = @transform_0, window_bounds = array<i64: 1, 256, 4>}, {pipeline_mode = #tpu.pipeline_mode<synchronous>, transform_indices = @transform_1, window_bounds = array<i64: 9, 64, 256>}, {pipeline_mode = #tpu.pipeline_mode<synchronous>, transform_indices = @transform_2, window_bounds = array<i64: 9, 16, 64>}, {pipeline_mode = #tpu.pipeline_mode<synchronous>, transform_indices = @transform_3, window_bounds = array<i64: 9, 4, 16>}, {pipeline_mode = #tpu.pipeline_mode<synchronous>, transform_indices = @transform_4, window_bounds = array<i64: 9, 1, 4>}, {pipeline_mode = #tpu.pipeline_mode<synchronous>, transform_indices = @transform_5, window_bounds = array<i64: 9, 4, 8>}, {pipeline_mode = #tpu.pipeline_mode<synchronous>, transform_indices = @transform_6, window_bounds = array<i64: 9, 8, 16>}, {pipeline_mode = #tpu.pipeline_mode<synchronous>, transform_indices = @transform_7, window_bounds = array<i64: 9, 16, 32>}, {pipeline_mode = #tpu.pipeline_mode<synchronous>, transform_indices = @transform_8, window_bounds = array<i64: 9, 32, 32>}, {pipeline_mode = #tpu.pipeline_mode<synchronous>, transform_indices = @transform_9, window_bounds = array<i64: 1, 8>}, {pipeline_mode = #tpu.pipeline_mode<synchronous>, transform_indices = @transform_10, window_bounds = array<i64: 1, 16>}, {pipeline_mode = #tpu.pipeline_mode<synchronous>, transform_indices = @transform_11, window_bounds = array<i64: 1, 32>}, {pipeline_mode = #tpu.pipeline_mode<synchronous>, transform_indices = @transform_12, window_bounds = array<i64: 1, 32>}, {pipeline_mode = #tpu.pipeline_mode<synchronous>, transform_indices = @transform_13, window_bounds = array<i64: 32, 32>}, {pipeline_mode = #tpu.pipeline_mode<synchronous>, transform_indices = @transform_14, window_bounds = array<i64: 1, 32>}, {transform_indices = @transform_15, window_bounds = array<i64: 1, 1, 32>}]} {
    %c0 = arith.constant 0 : index
    %c0_0 = arith.constant 0 : index
    %c0_1 = arith.constant 0 : index
    %0 = vector.load %arg1[%c0, %c0_0, %c0_1] : memref<1x256x4xf32, #tpu.memory_space<vmem>>, vector<1x256x4xf32>
    %1 = vector.shape_cast %0 : vector<1x256x4xf32> to vector<256x4xf32>
    %2 = arith.truncf %1 : vector<256x4xf32> to vector<256x4xbf16>
    %cst = arith.constant 0.000000e+00 : f32
    %3 = vector.broadcast %cst : f32 to vector<64x8xf32>
    %c0_2 = arith.constant 0 : index
    %c0_3 = arith.constant 0 : index
    %c0_4 = arith.constant 0 : index
    %4 = vector.load %arg2[%c0_2, %c0_3, %c0_4] : memref<9x64x256xbf16, #tpu.memory_space<vmem>>, vector<1x64x256xbf16>
    %5 = vector.shape_cast %4 : vector<1x64x256xbf16> to vector<64x256xbf16>
    %cst_5 = arith.constant dense<0.000000e+00> : vector<64x4xf32>
    %6 = tpu.matmul %5, %2, %cst_5 {dimension_numbers = #tpu.dot_dimension_numbers<[1], [0], [0], [1], [0, 0, 1, 1], [], []>} : vector<64x256xbf16>, vector<256x4xbf16>, vector<64x4xf32> -> vector<64x4xf32>
    %7 = arith.truncf %6 : vector<64x4xf32> to vector<64x4xbf16>
    %c0_6 = arith.constant 0 : index
    %c0_7 = arith.constant 0 : index
    %c0_8 = arith.constant 0 : index
    %8 = vector.load %arg6[%c0_6, %c0_7, %c0_8] : memref<9x4x8xbf16, #tpu.memory_space<vmem>>, vector<1x4x8xbf16>
    %9 = vector.shape_cast %8 : vector<1x4x8xbf16> to vector<4x8xbf16>
    %cst_9 = arith.constant dense<0.000000e+00> : vector<64x8xf32>
    %10 = tpu.matmul %7, %9, %cst_9 {dimension_numbers = #tpu.dot_dimension_numbers<[1], [0], [0], [1], [0, 0, 1, 1], [], []>} : vector<64x4xbf16>, vector<4x8xbf16>, vector<64x8xf32> -> vector<64x8xf32>
    %11 = arith.addf %3, %10 : vector<64x8xf32>
    %c1 = arith.constant 1 : index
    %c0_10 = arith.constant 0 : index
    %c0_11 = arith.constant 0 : index
    %12 = vector.load %arg2[%c1, %c0_10, %c0_11] : memref<9x64x256xbf16, #tpu.memory_space<vmem>>, vector<1x64x256xbf16>
    %13 = vector.shape_cast %12 : vector<1x64x256xbf16> to vector<64x256xbf16>
    %cst_12 = arith.constant dense<0.000000e+00> : vector<64x4xf32>
    %14 = tpu.matmul %13, %2, %cst_12 {dimension_numbers = #tpu.dot_dimension_numbers<[1], [0], [0], [1], [0, 0, 1, 1], [], []>} : vector<64x256xbf16>, vector<256x4xbf16>, vector<64x4xf32> -> vector<64x4xf32>
    %15 = arith.truncf %14 : vector<64x4xf32> to vector<64x4xbf16>
    %c1_13 = arith.constant 1 : index
    %c0_14 = arith.constant 0 : index
    %c0_15 = arith.constant 0 : index
    %16 = vector.load %arg6[%c1_13, %c0_14, %c0_15] : memref<9x4x8xbf16, #tpu.memory_space<vmem>>, vector<1x4x8xbf16>
    %17 = vector.shape_cast %16 : vector<1x4x8xbf16> to vector<4x8xbf16>
    %cst_16 = arith.constant dense<0.000000e+00> : vector<64x8xf32>
    %18 = tpu.matmul %15, %17, %cst_16 {dimension_numbers = #tpu.dot_dimension_numbers<[1], [0], [0], [1], [0, 0, 1, 1], [], []>} : vector<64x4xbf16>, vector<4x8xbf16>, vector<64x8xf32> -> vector<64x8xf32>
    %19 = arith.addf %11, %18 : vector<64x8xf32>
    %c2 = arith.constant 2 : index
    %c0_17 = arith.constant 0 : index
    %c0_18 = arith.constant 0 : index
    %20 = vector.load %arg2[%c2, %c0_17, %c0_18] : memref<9x64x256xbf16, #tpu.memory_space<vmem>>, vector<1x64x256xbf16>
    %21 = vector.shape_cast %20 : vector<1x64x256xbf16> to vector<64x256xbf16>
    %cst_19 = arith.constant dense<0.000000e+00> : vector<64x4xf32>
    %22 = tpu.matmul %21, %2, %cst_19 {dimension_numbers = #tpu.dot_dimension_numbers<[1], [0], [0], [1], [0, 0, 1, 1], [], []>} : vector<64x256xbf16>, vector<256x4xbf16>, vector<64x4xf32> -> vector<64x4xf32>
    %23 = arith.truncf %22 : vector<64x4xf32> to vector<64x4xbf16>
    %c2_20 = arith.constant 2 : index
    %c0_21 = arith.constant 0 : index
    %c0_22 = arith.constant 0 : index
    %24 = vector.load %arg6[%c2_20, %c0_21, %c0_22] : memref<9x4x8xbf16, #tpu.memory_space<vmem>>, vector<1x4x8xbf16>
    %25 = vector.shape_cast %24 : vector<1x4x8xbf16> to vector<4x8xbf16>
    %cst_23 = arith.constant dense<0.000000e+00> : vector<64x8xf32>
    %26 = tpu.matmul %23, %25, %cst_23 {dimension_numbers = #tpu.dot_dimension_numbers<[1], [0], [0], [1], [0, 0, 1, 1], [], []>} : vector<64x4xbf16>, vector<4x8xbf16>, vector<64x8xf32> -> vector<64x8xf32>
    %27 = arith.addf %19, %26 : vector<64x8xf32>
    %c3 = arith.constant 3 : index
    %c0_24 = arith.constant 0 : index
    %c0_25 = arith.constant 0 : index
    %28 = vector.load %arg2[%c3, %c0_24, %c0_25] : memref<9x64x256xbf16, #tpu.memory_space<vmem>>, vector<1x64x256xbf16>
    %29 = vector.shape_cast %28 : vector<1x64x256xbf16> to vector<64x256xbf16>
    %cst_26 = arith.constant dense<0.000000e+00> : vector<64x4xf32>
    %30 = tpu.matmul %29, %2, %cst_26 {dimension_numbers = #tpu.dot_dimension_numbers<[1], [0], [0], [1], [0, 0, 1, 1], [], []>} : vector<64x256xbf16>, vector<256x4xbf16>, vector<64x4xf32> -> vector<64x4xf32>
    %31 = arith.truncf %30 : vector<64x4xf32> to vector<64x4xbf16>
    %c3_27 = arith.constant 3 : index
    %c0_28 = arith.constant 0 : index
    %c0_29 = arith.constant 0 : index
    %32 = vector.load %arg6[%c3_27, %c0_28, %c0_29] : memref<9x4x8xbf16, #tpu.memory_space<vmem>>, vector<1x4x8xbf16>
    %33 = vector.shape_cast %32 : vector<1x4x8xbf16> to vector<4x8xbf16>
    %cst_30 = arith.constant dense<0.000000e+00> : vector<64x8xf32>
    %34 = tpu.matmul %31, %33, %cst_30 {dimension_numbers = #tpu.dot_dimension_numbers<[1], [0], [0], [1], [0, 0, 1, 1], [], []>} : vector<64x4xbf16>, vector<4x8xbf16>, vector<64x8xf32> -> vector<64x8xf32>
    %35 = arith.addf %27, %34 : vector<64x8xf32>
    %c4 = arith.constant 4 : index
    %c0_31 = arith.constant 0 : index
    %c0_32 = arith.constant 0 : index
    %36 = vector.load %arg2[%c4, %c0_31, %c0_32] : memref<9x64x256xbf16, #tpu.memory_space<vmem>>, vector<1x64x256xbf16>
    %37 = vector.shape_cast %36 : vector<1x64x256xbf16> to vector<64x256xbf16>
    %cst_33 = arith.constant dense<0.000000e+00> : vector<64x4xf32>
    %38 = tpu.matmul %37, %2, %cst_33 {dimension_numbers = #tpu.dot_dimension_numbers<[1], [0], [0], [1], [0, 0, 1, 1], [], []>} : vector<64x256xbf16>, vector<256x4xbf16>, vector<64x4xf32> -> vector<64x4xf32>
    %39 = arith.truncf %38 : vector<64x4xf32> to vector<64x4xbf16>
    %c4_34 = arith.constant 4 : index
    %c0_35 = arith.constant 0 : index
    %c0_36 = arith.constant 0 : index
    %40 = vector.load %arg6[%c4_34, %c0_35, %c0_36] : memref<9x4x8xbf16, #tpu.memory_space<vmem>>, vector<1x4x8xbf16>
    %41 = vector.shape_cast %40 : vector<1x4x8xbf16> to vector<4x8xbf16>
    %cst_37 = arith.constant dense<0.000000e+00> : vector<64x8xf32>
    %42 = tpu.matmul %39, %41, %cst_37 {dimension_numbers = #tpu.dot_dimension_numbers<[1], [0], [0], [1], [0, 0, 1, 1], [], []>} : vector<64x4xbf16>, vector<4x8xbf16>, vector<64x8xf32> -> vector<64x8xf32>
    %43 = arith.addf %35, %42 : vector<64x8xf32>
    %c5 = arith.constant 5 : index
    %c0_38 = arith.constant 0 : index
    %c0_39 = arith.constant 0 : index
    %44 = vector.load %arg2[%c5, %c0_38, %c0_39] : memref<9x64x256xbf16, #tpu.memory_space<vmem>>, vector<1x64x256xbf16>
    %45 = vector.shape_cast %44 : vector<1x64x256xbf16> to vector<64x256xbf16>
    %cst_40 = arith.constant dense<0.000000e+00> : vector<64x4xf32>
    %46 = tpu.matmul %45, %2, %cst_40 {dimension_numbers = #tpu.dot_dimension_numbers<[1], [0], [0], [1], [0, 0, 1, 1], [], []>} : vector<64x256xbf16>, vector<256x4xbf16>, vector<64x4xf32> -> vector<64x4xf32>
    %47 = arith.truncf %46 : vector<64x4xf32> to vector<64x4xbf16>
    %c5_41 = arith.constant 5 : index
    %c0_42 = arith.constant 0 : index
    %c0_43 = arith.constant 0 : index
    %48 = vector.load %arg6[%c5_41, %c0_42, %c0_43] : memref<9x4x8xbf16, #tpu.memory_space<vmem>>, vector<1x4x8xbf16>
    %49 = vector.shape_cast %48 : vector<1x4x8xbf16> to vector<4x8xbf16>
    %cst_44 = arith.constant dense<0.000000e+00> : vector<64x8xf32>
    %50 = tpu.matmul %47, %49, %cst_44 {dimension_numbers = #tpu.dot_dimension_numbers<[1], [0], [0], [1], [0, 0, 1, 1], [], []>} : vector<64x4xbf16>, vector<4x8xbf16>, vector<64x8xf32> -> vector<64x8xf32>
    %51 = arith.addf %43, %50 : vector<64x8xf32>
    %c6 = arith.constant 6 : index
    %c0_45 = arith.constant 0 : index
    %c0_46 = arith.constant 0 : index
    %52 = vector.load %arg2[%c6, %c0_45, %c0_46] : memref<9x64x256xbf16, #tpu.memory_space<vmem>>, vector<1x64x256xbf16>
    %53 = vector.shape_cast %52 : vector<1x64x256xbf16> to vector<64x256xbf16>
    %cst_47 = arith.constant dense<0.000000e+00> : vector<64x4xf32>
    %54 = tpu.matmul %53, %2, %cst_47 {dimension_numbers = #tpu.dot_dimension_numbers<[1], [0], [0], [1], [0, 0, 1, 1], [], []>} : vector<64x256xbf16>, vector<256x4xbf16>, vector<64x4xf32> -> vector<64x4xf32>
    %55 = arith.truncf %54 : vector<64x4xf32> to vector<64x4xbf16>
    %c6_48 = arith.constant 6 : index
    %c0_49 = arith.constant 0 : index
    %c0_50 = arith.constant 0 : index
    %56 = vector.load %arg6[%c6_48, %c0_49, %c0_50] : memref<9x4x8xbf16, #tpu.memory_space<vmem>>, vector<1x4x8xbf16>
    %57 = vector.shape_cast %56 : vector<1x4x8xbf16> to vector<4x8xbf16>
    %cst_51 = arith.constant dense<0.000000e+00> : vector<64x8xf32>
    %58 = tpu.matmul %55, %57, %cst_51 {dimension_numbers = #tpu.dot_dimension_numbers<[1], [0], [0], [1], [0, 0, 1, 1], [], []>} : vector<64x4xbf16>, vector<4x8xbf16>, vector<64x8xf32> -> vector<64x8xf32>
    %59 = arith.addf %51, %58 : vector<64x8xf32>
    %c7 = arith.constant 7 : index
    %c0_52 = arith.constant 0 : index
    %c0_53 = arith.constant 0 : index
    %60 = vector.load %arg2[%c7, %c0_52, %c0_53] : memref<9x64x256xbf16, #tpu.memory_space<vmem>>, vector<1x64x256xbf16>
    %61 = vector.shape_cast %60 : vector<1x64x256xbf16> to vector<64x256xbf16>
    %cst_54 = arith.constant dense<0.000000e+00> : vector<64x4xf32>
    %62 = tpu.matmul %61, %2, %cst_54 {dimension_numbers = #tpu.dot_dimension_numbers<[1], [0], [0], [1], [0, 0, 1, 1], [], []>} : vector<64x256xbf16>, vector<256x4xbf16>, vector<64x4xf32> -> vector<64x4xf32>
    %63 = arith.truncf %62 : vector<64x4xf32> to vector<64x4xbf16>
    %c7_55 = arith.constant 7 : index
    %c0_56 = arith.constant 0 : index
    %c0_57 = arith.constant 0 : index
    %64 = vector.load %arg6[%c7_55, %c0_56, %c0_57] : memref<9x4x8xbf16, #tpu.memory_space<vmem>>, vector<1x4x8xbf16>
    %65 = vector.shape_cast %64 : vector<1x4x8xbf16> to vector<4x8xbf16>
    %cst_58 = arith.constant dense<0.000000e+00> : vector<64x8xf32>
    %66 = tpu.matmul %63, %65, %cst_58 {dimension_numbers = #tpu.dot_dimension_numbers<[1], [0], [0], [1], [0, 0, 1, 1], [], []>} : vector<64x4xbf16>, vector<4x8xbf16>, vector<64x8xf32> -> vector<64x8xf32>
    %67 = arith.addf %59, %66 : vector<64x8xf32>
    %c8 = arith.constant 8 : index
    %c0_59 = arith.constant 0 : index
    %c0_60 = arith.constant 0 : index
    %68 = vector.load %arg2[%c8, %c0_59, %c0_60] : memref<9x64x256xbf16, #tpu.memory_space<vmem>>, vector<1x64x256xbf16>
    %69 = vector.shape_cast %68 : vector<1x64x256xbf16> to vector<64x256xbf16>
    %cst_61 = arith.constant dense<0.000000e+00> : vector<64x4xf32>
    %70 = tpu.matmul %69, %2, %cst_61 {dimension_numbers = #tpu.dot_dimension_numbers<[1], [0], [0], [1], [0, 0, 1, 1], [], []>} : vector<64x256xbf16>, vector<256x4xbf16>, vector<64x4xf32> -> vector<64x4xf32>
    %71 = arith.truncf %70 : vector<64x4xf32> to vector<64x4xbf16>
    %c8_62 = arith.constant 8 : index
    %c0_63 = arith.constant 0 : index
    %c0_64 = arith.constant 0 : index
    %72 = vector.load %arg6[%c8_62, %c0_63, %c0_64] : memref<9x4x8xbf16, #tpu.memory_space<vmem>>, vector<1x4x8xbf16>
    %73 = vector.shape_cast %72 : vector<1x4x8xbf16> to vector<4x8xbf16>
    %cst_65 = arith.constant dense<0.000000e+00> : vector<64x8xf32>
    %74 = tpu.matmul %71, %73, %cst_65 {dimension_numbers = #tpu.dot_dimension_numbers<[1], [0], [0], [1], [0, 0, 1, 1], [], []>} : vector<64x4xbf16>, vector<4x8xbf16>, vector<64x8xf32> -> vector<64x8xf32>
    %75 = arith.addf %67, %74 : vector<64x8xf32>
    %c0_66 = arith.constant 0 : index
    %c0_67 = arith.constant 0 : index
    %76 = vector.load %arg10[%c0_66, %c0_67] : memref<1x8xf32, #tpu.memory_space<vmem>>, vector<1x8xf32>
    %77 = vector.broadcast %76 : vector<1x8xf32> to vector<64x8xf32>
    %78 = arith.addf %75, %77 : vector<64x8xf32>
    %79 = math.absf %78 : vector<64x8xf32>
    %cst_68 = arith.constant 0.000000e+00 : f32
    %80 = vector.broadcast %cst_68 : f32 to vector<64x8xf32>
    %81 = arith.subf %80, %79 : vector<64x8xf32>
    %82 = math.exp %81 : vector<64x8xf32>
    %cst_69 = arith.constant 0.000000e+00 : f32
    %83 = vector.broadcast %cst_69 : f32 to vector<64x8xf32>
    %84 = arith.cmpf oge, %78, %83 : vector<64x8xf32>
    %cst_70 = arith.constant 2.000000e+00 : f32
    %85 = vector.broadcast %cst_70 : f32 to vector<64x8xf32>
    %86 = arith.mulf %85, %82 : vector<64x8xf32>
    %cst_71 = arith.constant 1.000000e+00 : f32
    %87 = vector.broadcast %cst_71 : f32 to vector<64x8xf32>
    %88 = arith.addf %87, %86 : vector<64x8xf32>
    %cst_72 = arith.constant 2.000000e+00 : f32
    %89 = vector.broadcast %cst_72 : f32 to vector<64x8xf32>
    %90 = arith.addf %82, %89 : vector<64x8xf32>
    %91 = arith.mulf %82, %90 : vector<64x8xf32>
    %92 = arith.select %84, %88, %91 : vector<64x8xi1>, vector<64x8xf32>
    %cst_73 = arith.constant 2.000000e+00 : f32
    %93 = vector.broadcast %cst_73 : f32 to vector<64x8xf32>
    %94 = arith.mulf %93, %82 : vector<64x8xf32>
    %cst_74 = arith.constant 1.000000e+00 : f32
    %95 = vector.broadcast %cst_74 : f32 to vector<64x8xf32>
    %96 = arith.addf %95, %94 : vector<64x8xf32>
    %cst_75 = arith.constant 2.000000e+00 : f32
    %97 = vector.broadcast %cst_75 : f32 to vector<64x8xf32>
    %98 = arith.mulf %97, %82 : vector<64x8xf32>
    %99 = arith.mulf %98, %82 : vector<64x8xf32>
    %100 = arith.addf %96, %99 : vector<64x8xf32>
    %101 = arith.mulf %82, %82 : vector<64x8xf32>
    %cst_76 = arith.constant 2.000000e+00 : f32
    %102 = vector.broadcast %cst_76 : f32 to vector<64x8xf32>
    %103 = arith.mulf %102, %82 : vector<64x8xf32>
    %104 = arith.addf %101, %103 : vector<64x8xf32>
    %cst_77 = arith.constant 2.000000e+00 : f32
    %105 = vector.broadcast %cst_77 : f32 to vector<64x8xf32>
    %106 = arith.addf %104, %105 : vector<64x8xf32>
    %107 = arith.select %84, %100, %106 : vector<64x8xi1>, vector<64x8xf32>
    %108 = arith.mulf %78, %92 : vector<64x8xf32>
    %109 = tpu.reciprocal %107 {approx = true} : vector<64x8xf32> -> vector<64x8xf32>
    %110 = arith.mulf %108, %109 : vector<64x8xf32>
    %111 = arith.truncf %110 : vector<64x8xf32> to vector<64x8xbf16>
    %cst_78 = arith.constant 0.000000e+00 : f32
    %112 = vector.broadcast %cst_78 : f32 to vector<16x16xf32>
    %c0_79 = arith.constant 0 : index
    %c0_80 = arith.constant 0 : index
    %c0_81 = arith.constant 0 : index
    %113 = vector.load %arg3[%c0_79, %c0_80, %c0_81] : memref<9x16x64xbf16, #tpu.memory_space<vmem>>, vector<1x16x64xbf16>
    %114 = vector.shape_cast %113 : vector<1x16x64xbf16> to vector<16x64xbf16>
    %cst_82 = arith.constant dense<0.000000e+00> : vector<16x8xf32>
    %115 = tpu.matmul %114, %111, %cst_82 {dimension_numbers = #tpu.dot_dimension_numbers<[1], [0], [0], [1], [0, 0, 1, 1], [], []>} : vector<16x64xbf16>, vector<64x8xbf16>, vector<16x8xf32> -> vector<16x8xf32>
    %116 = arith.truncf %115 : vector<16x8xf32> to vector<16x8xbf16>
    %c0_83 = arith.constant 0 : index
    %c0_84 = arith.constant 0 : index
    %c0_85 = arith.constant 0 : index
    %117 = vector.load %arg7[%c0_83, %c0_84, %c0_85] : memref<9x8x16xbf16, #tpu.memory_space<vmem>>, vector<1x8x16xbf16>
    %118 = vector.shape_cast %117 : vector<1x8x16xbf16> to vector<8x16xbf16>
    %cst_86 = arith.constant dense<0.000000e+00> : vector<16x16xf32>
    %119 = tpu.matmul %116, %118, %cst_86 {dimension_numbers = #tpu.dot_dimension_numbers<[1], [0], [0], [1], [0, 0, 1, 1], [], []>} : vector<16x8xbf16>, vector<8x16xbf16>, vector<16x16xf32> -> vector<16x16xf32>
    %120 = arith.addf %112, %119 : vector<16x16xf32>
    %c1_87 = arith.constant 1 : index
    %c0_88 = arith.constant 0 : index
    %c0_89 = arith.constant 0 : index
    %121 = vector.load %arg3[%c1_87, %c0_88, %c0_89] : memref<9x16x64xbf16, #tpu.memory_space<vmem>>, vector<1x16x64xbf16>
    %122 = vector.shape_cast %121 : vector<1x16x64xbf16> to vector<16x64xbf16>
    %cst_90 = arith.constant dense<0.000000e+00> : vector<16x8xf32>
    %123 = tpu.matmul %122, %111, %cst_90 {dimension_numbers = #tpu.dot_dimension_numbers<[1], [0], [0], [1], [0, 0, 1, 1], [], []>} : vector<16x64xbf16>, vector<64x8xbf16>, vector<16x8xf32> -> vector<16x8xf32>
    %124 = arith.truncf %123 : vector<16x8xf32> to vector<16x8xbf16>
    %c1_91 = arith.constant 1 : index
    %c0_92 = arith.constant 0 : index
    %c0_93 = arith.constant 0 : index
    %125 = vector.load %arg7[%c1_91, %c0_92, %c0_93] : memref<9x8x16xbf16, #tpu.memory_space<vmem>>, vector<1x8x16xbf16>
    %126 = vector.shape_cast %125 : vector<1x8x16xbf16> to vector<8x16xbf16>
    %cst_94 = arith.constant dense<0.000000e+00> : vector<16x16xf32>
    %127 = tpu.matmul %124, %126, %cst_94 {dimension_numbers = #tpu.dot_dimension_numbers<[1], [0], [0], [1], [0, 0, 1, 1], [], []>} : vector<16x8xbf16>, vector<8x16xbf16>, vector<16x16xf32> -> vector<16x16xf32>
    %128 = arith.addf %120, %127 : vector<16x16xf32>
    %c2_95 = arith.constant 2 : index
    %c0_96 = arith.constant 0 : index
    %c0_97 = arith.constant 0 : index
    %129 = vector.load %arg3[%c2_95, %c0_96, %c0_97] : memref<9x16x64xbf16, #tpu.memory_space<vmem>>, vector<1x16x64xbf16>
    %130 = vector.shape_cast %129 : vector<1x16x64xbf16> to vector<16x64xbf16>
    %cst_98 = arith.constant dense<0.000000e+00> : vector<16x8xf32>
    %131 = tpu.matmul %130, %111, %cst_98 {dimension_numbers = #tpu.dot_dimension_numbers<[1], [0], [0], [1], [0, 0, 1, 1], [], []>} : vector<16x64xbf16>, vector<64x8xbf16>, vector<16x8xf32> -> vector<16x8xf32>
    %132 = arith.truncf %131 : vector<16x8xf32> to vector<16x8xbf16>
    %c2_99 = arith.constant 2 : index
    %c0_100 = arith.constant 0 : index
    %c0_101 = arith.constant 0 : index
    %133 = vector.load %arg7[%c2_99, %c0_100, %c0_101] : memref<9x8x16xbf16, #tpu.memory_space<vmem>>, vector<1x8x16xbf16>
    %134 = vector.shape_cast %133 : vector<1x8x16xbf16> to vector<8x16xbf16>
    %cst_102 = arith.constant dense<0.000000e+00> : vector<16x16xf32>
    %135 = tpu.matmul %132, %134, %cst_102 {dimension_numbers = #tpu.dot_dimension_numbers<[1], [0], [0], [1], [0, 0, 1, 1], [], []>} : vector<16x8xbf16>, vector<8x16xbf16>, vector<16x16xf32> -> vector<16x16xf32>
    %136 = arith.addf %128, %135 : vector<16x16xf32>
    %c3_103 = arith.constant 3 : index
    %c0_104 = arith.constant 0 : index
    %c0_105 = arith.constant 0 : index
    %137 = vector.load %arg3[%c3_103, %c0_104, %c0_105] : memref<9x16x64xbf16, #tpu.memory_space<vmem>>, vector<1x16x64xbf16>
    %138 = vector.shape_cast %137 : vector<1x16x64xbf16> to vector<16x64xbf16>
    %cst_106 = arith.constant dense<0.000000e+00> : vector<16x8xf32>
    %139 = tpu.matmul %138, %111, %cst_106 {dimension_numbers = #tpu.dot_dimension_numbers<[1], [0], [0], [1], [0, 0, 1, 1], [], []>} : vector<16x64xbf16>, vector<64x8xbf16>, vector<16x8xf32> -> vector<16x8xf32>
    %140 = arith.truncf %139 : vector<16x8xf32> to vector<16x8xbf16>
    %c3_107 = arith.constant 3 : index
    %c0_108 = arith.constant 0 : index
    %c0_109 = arith.constant 0 : index
    %141 = vector.load %arg7[%c3_107, %c0_108, %c0_109] : memref<9x8x16xbf16, #tpu.memory_space<vmem>>, vector<1x8x16xbf16>
    %142 = vector.shape_cast %141 : vector<1x8x16xbf16> to vector<8x16xbf16>
    %cst_110 = arith.constant dense<0.000000e+00> : vector<16x16xf32>
    %143 = tpu.matmul %140, %142, %cst_110 {dimension_numbers = #tpu.dot_dimension_numbers<[1], [0], [0], [1], [0, 0, 1, 1], [], []>} : vector<16x8xbf16>, vector<8x16xbf16>, vector<16x16xf32> -> vector<16x16xf32>
    %144 = arith.addf %136, %143 : vector<16x16xf32>
    %c4_111 = arith.constant 4 : index
    %c0_112 = arith.constant 0 : index
    %c0_113 = arith.constant 0 : index
    %145 = vector.load %arg3[%c4_111, %c0_112, %c0_113] : memref<9x16x64xbf16, #tpu.memory_space<vmem>>, vector<1x16x64xbf16>
    %146 = vector.shape_cast %145 : vector<1x16x64xbf16> to vector<16x64xbf16>
    %cst_114 = arith.constant dense<0.000000e+00> : vector<16x8xf32>
    %147 = tpu.matmul %146, %111, %cst_114 {dimension_numbers = #tpu.dot_dimension_numbers<[1], [0], [0], [1], [0, 0, 1, 1], [], []>} : vector<16x64xbf16>, vector<64x8xbf16>, vector<16x8xf32> -> vector<16x8xf32>
    %148 = arith.truncf %147 : vector<16x8xf32> to vector<16x8xbf16>
    %c4_115 = arith.constant 4 : index
    %c0_116 = arith.constant 0 : index
    %c0_117 = arith.constant 0 : index
    %149 = vector.load %arg7[%c4_115, %c0_116, %c0_117] : memref<9x8x16xbf16, #tpu.memory_space<vmem>>, vector<1x8x16xbf16>
    %150 = vector.shape_cast %149 : vector<1x8x16xbf16> to vector<8x16xbf16>
    %cst_118 = arith.constant dense<0.000000e+00> : vector<16x16xf32>
    %151 = tpu.matmul %148, %150, %cst_118 {dimension_numbers = #tpu.dot_dimension_numbers<[1], [0], [0], [1], [0, 0, 1, 1], [], []>} : vector<16x8xbf16>, vector<8x16xbf16>, vector<16x16xf32> -> vector<16x16xf32>
    %152 = arith.addf %144, %151 : vector<16x16xf32>
    %c5_119 = arith.constant 5 : index
    %c0_120 = arith.constant 0 : index
    %c0_121 = arith.constant 0 : index
    %153 = vector.load %arg3[%c5_119, %c0_120, %c0_121] : memref<9x16x64xbf16, #tpu.memory_space<vmem>>, vector<1x16x64xbf16>
    %154 = vector.shape_cast %153 : vector<1x16x64xbf16> to vector<16x64xbf16>
    %cst_122 = arith.constant dense<0.000000e+00> : vector<16x8xf32>
    %155 = tpu.matmul %154, %111, %cst_122 {dimension_numbers = #tpu.dot_dimension_numbers<[1], [0], [0], [1], [0, 0, 1, 1], [], []>} : vector<16x64xbf16>, vector<64x8xbf16>, vector<16x8xf32> -> vector<16x8xf32>
    %156 = arith.truncf %155 : vector<16x8xf32> to vector<16x8xbf16>
    %c5_123 = arith.constant 5 : index
    %c0_124 = arith.constant 0 : index
    %c0_125 = arith.constant 0 : index
    %157 = vector.load %arg7[%c5_123, %c0_124, %c0_125] : memref<9x8x16xbf16, #tpu.memory_space<vmem>>, vector<1x8x16xbf16>
    %158 = vector.shape_cast %157 : vector<1x8x16xbf16> to vector<8x16xbf16>
    %cst_126 = arith.constant dense<0.000000e+00> : vector<16x16xf32>
    %159 = tpu.matmul %156, %158, %cst_126 {dimension_numbers = #tpu.dot_dimension_numbers<[1], [0], [0], [1], [0, 0, 1, 1], [], []>} : vector<16x8xbf16>, vector<8x16xbf16>, vector<16x16xf32> -> vector<16x16xf32>
    %160 = arith.addf %152, %159 : vector<16x16xf32>
    %c6_127 = arith.constant 6 : index
    %c0_128 = arith.constant 0 : index
    %c0_129 = arith.constant 0 : index
    %161 = vector.load %arg3[%c6_127, %c0_128, %c0_129] : memref<9x16x64xbf16, #tpu.memory_space<vmem>>, vector<1x16x64xbf16>
    %162 = vector.shape_cast %161 : vector<1x16x64xbf16> to vector<16x64xbf16>
    %cst_130 = arith.constant dense<0.000000e+00> : vector<16x8xf32>
    %163 = tpu.matmul %162, %111, %cst_130 {dimension_numbers = #tpu.dot_dimension_numbers<[1], [0], [0], [1], [0, 0, 1, 1], [], []>} : vector<16x64xbf16>, vector<64x8xbf16>, vector<16x8xf32> -> vector<16x8xf32>
    %164 = arith.truncf %163 : vector<16x8xf32> to vector<16x8xbf16>
    %c6_131 = arith.constant 6 : index
    %c0_132 = arith.constant 0 : index
    %c0_133 = arith.constant 0 : index
    %165 = vector.load %arg7[%c6_131, %c0_132, %c0_133] : memref<9x8x16xbf16, #tpu.memory_space<vmem>>, vector<1x8x16xbf16>
    %166 = vector.shape_cast %165 : vector<1x8x16xbf16> to vector<8x16xbf16>
    %cst_134 = arith.constant dense<0.000000e+00> : vector<16x16xf32>
    %167 = tpu.matmul %164, %166, %cst_134 {dimension_numbers = #tpu.dot_dimension_numbers<[1], [0], [0], [1], [0, 0, 1, 1], [], []>} : vector<16x8xbf16>, vector<8x16xbf16>, vector<16x16xf32> -> vector<16x16xf32>
    %168 = arith.addf %160, %167 : vector<16x16xf32>
    %c7_135 = arith.constant 7 : index
    %c0_136 = arith.constant 0 : index
    %c0_137 = arith.constant 0 : index
    %169 = vector.load %arg3[%c7_135, %c0_136, %c0_137] : memref<9x16x64xbf16, #tpu.memory_space<vmem>>, vector<1x16x64xbf16>
    %170 = vector.shape_cast %169 : vector<1x16x64xbf16> to vector<16x64xbf16>
    %cst_138 = arith.constant dense<0.000000e+00> : vector<16x8xf32>
    %171 = tpu.matmul %170, %111, %cst_138 {dimension_numbers = #tpu.dot_dimension_numbers<[1], [0], [0], [1], [0, 0, 1, 1], [], []>} : vector<16x64xbf16>, vector<64x8xbf16>, vector<16x8xf32> -> vector<16x8xf32>
    %172 = arith.truncf %171 : vector<16x8xf32> to vector<16x8xbf16>
    %c7_139 = arith.constant 7 : index
    %c0_140 = arith.constant 0 : index
    %c0_141 = arith.constant 0 : index
    %173 = vector.load %arg7[%c7_139, %c0_140, %c0_141] : memref<9x8x16xbf16, #tpu.memory_space<vmem>>, vector<1x8x16xbf16>
    %174 = vector.shape_cast %173 : vector<1x8x16xbf16> to vector<8x16xbf16>
    %cst_142 = arith.constant dense<0.000000e+00> : vector<16x16xf32>
    %175 = tpu.matmul %172, %174, %cst_142 {dimension_numbers = #tpu.dot_dimension_numbers<[1], [0], [0], [1], [0, 0, 1, 1], [], []>} : vector<16x8xbf16>, vector<8x16xbf16>, vector<16x16xf32> -> vector<16x16xf32>
    %176 = arith.addf %168, %175 : vector<16x16xf32>
    %c8_143 = arith.constant 8 : index
    %c0_144 = arith.constant 0 : index
    %c0_145 = arith.constant 0 : index
    %177 = vector.load %arg3[%c8_143, %c0_144, %c0_145] : memref<9x16x64xbf16, #tpu.memory_space<vmem>>, vector<1x16x64xbf16>
    %178 = vector.shape_cast %177 : vector<1x16x64xbf16> to vector<16x64xbf16>
    %cst_146 = arith.constant dense<0.000000e+00> : vector<16x8xf32>
    %179 = tpu.matmul %178, %111, %cst_146 {dimension_numbers = #tpu.dot_dimension_numbers<[1], [0], [0], [1], [0, 0, 1, 1], [], []>} : vector<16x64xbf16>, vector<64x8xbf16>, vector<16x8xf32> -> vector<16x8xf32>
    %180 = arith.truncf %179 : vector<16x8xf32> to vector<16x8xbf16>
    %c8_147 = arith.constant 8 : index
    %c0_148 = arith.constant 0 : index
    %c0_149 = arith.constant 0 : index
    %181 = vector.load %arg7[%c8_147, %c0_148, %c0_149] : memref<9x8x16xbf16, #tpu.memory_space<vmem>>, vector<1x8x16xbf16>
    %182 = vector.shape_cast %181 : vector<1x8x16xbf16> to vector<8x16xbf16>
    %cst_150 = arith.constant dense<0.000000e+00> : vector<16x16xf32>
    %183 = tpu.matmul %180, %182, %cst_150 {dimension_numbers = #tpu.dot_dimension_numbers<[1], [0], [0], [1], [0, 0, 1, 1], [], []>} : vector<16x8xbf16>, vector<8x16xbf16>, vector<16x16xf32> -> vector<16x16xf32>
    %184 = arith.addf %176, %183 : vector<16x16xf32>
    %c0_151 = arith.constant 0 : index
    %c0_152 = arith.constant 0 : index
    %185 = vector.load %arg11[%c0_151, %c0_152] : memref<1x16xf32, #tpu.memory_space<vmem>>, vector<1x16xf32>
    %186 = vector.broadcast %185 : vector<1x16xf32> to vector<16x16xf32>
    %187 = arith.addf %184, %186 : vector<16x16xf32>
    %188 = math.absf %187 : vector<16x16xf32>
    %cst_153 = arith.constant 0.000000e+00 : f32
    %189 = vector.broadcast %cst_153 : f32 to vector<16x16xf32>
    %190 = arith.subf %189, %188 : vector<16x16xf32>
    %191 = math.exp %190 : vector<16x16xf32>
    %cst_154 = arith.constant 0.000000e+00 : f32
    %192 = vector.broadcast %cst_154 : f32 to vector<16x16xf32>
    %193 = arith.cmpf oge, %187, %192 : vector<16x16xf32>
    %cst_155 = arith.constant 2.000000e+00 : f32
    %194 = vector.broadcast %cst_155 : f32 to vector<16x16xf32>
    %195 = arith.mulf %194, %191 : vector<16x16xf32>
    %cst_156 = arith.constant 1.000000e+00 : f32
    %196 = vector.broadcast %cst_156 : f32 to vector<16x16xf32>
    %197 = arith.addf %196, %195 : vector<16x16xf32>
    %cst_157 = arith.constant 2.000000e+00 : f32
    %198 = vector.broadcast %cst_157 : f32 to vector<16x16xf32>
    %199 = arith.addf %191, %198 : vector<16x16xf32>
    %200 = arith.mulf %191, %199 : vector<16x16xf32>
    %201 = arith.select %193, %197, %200 : vector<16x16xi1>, vector<16x16xf32>
    %cst_158 = arith.constant 2.000000e+00 : f32
    %202 = vector.broadcast %cst_158 : f32 to vector<16x16xf32>
    %203 = arith.mulf %202, %191 : vector<16x16xf32>
    %cst_159 = arith.constant 1.000000e+00 : f32
    %204 = vector.broadcast %cst_159 : f32 to vector<16x16xf32>
    %205 = arith.addf %204, %203 : vector<16x16xf32>
    %cst_160 = arith.constant 2.000000e+00 : f32
    %206 = vector.broadcast %cst_160 : f32 to vector<16x16xf32>
    %207 = arith.mulf %206, %191 : vector<16x16xf32>
    %208 = arith.mulf %207, %191 : vector<16x16xf32>
    %209 = arith.addf %205, %208 : vector<16x16xf32>
    %210 = arith.mulf %191, %191 : vector<16x16xf32>
    %cst_161 = arith.constant 2.000000e+00 : f32
    %211 = vector.broadcast %cst_161 : f32 to vector<16x16xf32>
    %212 = arith.mulf %211, %191 : vector<16x16xf32>
    %213 = arith.addf %210, %212 : vector<16x16xf32>
    %cst_162 = arith.constant 2.000000e+00 : f32
    %214 = vector.broadcast %cst_162 : f32 to vector<16x16xf32>
    %215 = arith.addf %213, %214 : vector<16x16xf32>
    %216 = arith.select %193, %209, %215 : vector<16x16xi1>, vector<16x16xf32>
    %217 = arith.mulf %187, %201 : vector<16x16xf32>
    %218 = tpu.reciprocal %216 {approx = true} : vector<16x16xf32> -> vector<16x16xf32>
    %219 = arith.mulf %217, %218 : vector<16x16xf32>
    %220 = arith.truncf %219 : vector<16x16xf32> to vector<16x16xbf16>
    %cst_163 = arith.constant 0.000000e+00 : f32
    %221 = vector.broadcast %cst_163 : f32 to vector<4x32xf32>
    %c0_164 = arith.constant 0 : index
    %c0_165 = arith.constant 0 : index
    %c0_166 = arith.constant 0 : index
    %222 = vector.load %arg4[%c0_164, %c0_165, %c0_166] : memref<9x4x16xbf16, #tpu.memory_space<vmem>>, vector<1x4x16xbf16>
    %223 = vector.shape_cast %222 : vector<1x4x16xbf16> to vector<4x16xbf16>
    %cst_167 = arith.constant dense<0.000000e+00> : vector<4x16xf32>
    %224 = tpu.matmul %223, %220, %cst_167 {dimension_numbers = #tpu.dot_dimension_numbers<[1], [0], [0], [1], [0, 0, 1, 1], [], []>} : vector<4x16xbf16>, vector<16x16xbf16>, vector<4x16xf32> -> vector<4x16xf32>
    %225 = arith.truncf %224 : vector<4x16xf32> to vector<4x16xbf16>
    %c0_168 = arith.constant 0 : index
    %c0_169 = arith.constant 0 : index
    %c0_170 = arith.constant 0 : index
    %226 = vector.load %arg8[%c0_168, %c0_169, %c0_170] : memref<9x16x32xbf16, #tpu.memory_space<vmem>>, vector<1x16x32xbf16>
    %227 = vector.shape_cast %226 : vector<1x16x32xbf16> to vector<16x32xbf16>
    %cst_171 = arith.constant dense<0.000000e+00> : vector<4x32xf32>
    %228 = tpu.matmul %225, %227, %cst_171 {dimension_numbers = #tpu.dot_dimension_numbers<[1], [0], [0], [1], [0, 0, 1, 1], [], []>} : vector<4x16xbf16>, vector<16x32xbf16>, vector<4x32xf32> -> vector<4x32xf32>
    %229 = arith.addf %221, %228 : vector<4x32xf32>
    %c1_172 = arith.constant 1 : index
    %c0_173 = arith.constant 0 : index
    %c0_174 = arith.constant 0 : index
    %230 = vector.load %arg4[%c1_172, %c0_173, %c0_174] : memref<9x4x16xbf16, #tpu.memory_space<vmem>>, vector<1x4x16xbf16>
    %231 = vector.shape_cast %230 : vector<1x4x16xbf16> to vector<4x16xbf16>
    %cst_175 = arith.constant dense<0.000000e+00> : vector<4x16xf32>
    %232 = tpu.matmul %231, %220, %cst_175 {dimension_numbers = #tpu.dot_dimension_numbers<[1], [0], [0], [1], [0, 0, 1, 1], [], []>} : vector<4x16xbf16>, vector<16x16xbf16>, vector<4x16xf32> -> vector<4x16xf32>
    %233 = arith.truncf %232 : vector<4x16xf32> to vector<4x16xbf16>
    %c1_176 = arith.constant 1 : index
    %c0_177 = arith.constant 0 : index
    %c0_178 = arith.constant 0 : index
    %234 = vector.load %arg8[%c1_176, %c0_177, %c0_178] : memref<9x16x32xbf16, #tpu.memory_space<vmem>>, vector<1x16x32xbf16>
    %235 = vector.shape_cast %234 : vector<1x16x32xbf16> to vector<16x32xbf16>
    %cst_179 = arith.constant dense<0.000000e+00> : vector<4x32xf32>
    %236 = tpu.matmul %233, %235, %cst_179 {dimension_numbers = #tpu.dot_dimension_numbers<[1], [0], [0], [1], [0, 0, 1, 1], [], []>} : vector<4x16xbf16>, vector<16x32xbf16>, vector<4x32xf32> -> vector<4x32xf32>
    %237 = arith.addf %229, %236 : vector<4x32xf32>
    %c2_180 = arith.constant 2 : index
    %c0_181 = arith.constant 0 : index
    %c0_182 = arith.constant 0 : index
    %238 = vector.load %arg4[%c2_180, %c0_181, %c0_182] : memref<9x4x16xbf16, #tpu.memory_space<vmem>>, vector<1x4x16xbf16>
    %239 = vector.shape_cast %238 : vector<1x4x16xbf16> to vector<4x16xbf16>
    %cst_183 = arith.constant dense<0.000000e+00> : vector<4x16xf32>
    %240 = tpu.matmul %239, %220, %cst_183 {dimension_numbers = #tpu.dot_dimension_numbers<[1], [0], [0], [1], [0, 0, 1, 1], [], []>} : vector<4x16xbf16>, vector<16x16xbf16>, vector<4x16xf32> -> vector<4x16xf32>
    %241 = arith.truncf %240 : vector<4x16xf32> to vector<4x16xbf16>
    %c2_184 = arith.constant 2 : index
    %c0_185 = arith.constant 0 : index
    %c0_186 = arith.constant 0 : index
    %242 = vector.load %arg8[%c2_184, %c0_185, %c0_186] : memref<9x16x32xbf16, #tpu.memory_space<vmem>>, vector<1x16x32xbf16>
    %243 = vector.shape_cast %242 : vector<1x16x32xbf16> to vector<16x32xbf16>
    %cst_187 = arith.constant dense<0.000000e+00> : vector<4x32xf32>
    %244 = tpu.matmul %241, %243, %cst_187 {dimension_numbers = #tpu.dot_dimension_numbers<[1], [0], [0], [1], [0, 0, 1, 1], [], []>} : vector<4x16xbf16>, vector<16x32xbf16>, vector<4x32xf32> -> vector<4x32xf32>
    %245 = arith.addf %237, %244 : vector<4x32xf32>
    %c3_188 = arith.constant 3 : index
    %c0_189 = arith.constant 0 : index
    %c0_190 = arith.constant 0 : index
    %246 = vector.load %arg4[%c3_188, %c0_189, %c0_190] : memref<9x4x16xbf16, #tpu.memory_space<vmem>>, vector<1x4x16xbf16>
    %247 = vector.shape_cast %246 : vector<1x4x16xbf16> to vector<4x16xbf16>
    %cst_191 = arith.constant dense<0.000000e+00> : vector<4x16xf32>
    %248 = tpu.matmul %247, %220, %cst_191 {dimension_numbers = #tpu.dot_dimension_numbers<[1], [0], [0], [1], [0, 0, 1, 1], [], []>} : vector<4x16xbf16>, vector<16x16xbf16>, vector<4x16xf32> -> vector<4x16xf32>
    %249 = arith.truncf %248 : vector<4x16xf32> to vector<4x16xbf16>
    %c3_192 = arith.constant 3 : index
    %c0_193 = arith.constant 0 : index
    %c0_194 = arith.constant 0 : index
    %250 = vector.load %arg8[%c3_192, %c0_193, %c0_194] : memref<9x16x32xbf16, #tpu.memory_space<vmem>>, vector<1x16x32xbf16>
    %251 = vector.shape_cast %250 : vector<1x16x32xbf16> to vector<16x32xbf16>
    %cst_195 = arith.constant dense<0.000000e+00> : vector<4x32xf32>
    %252 = tpu.matmul %249, %251, %cst_195 {dimension_numbers = #tpu.dot_dimension_numbers<[1], [0], [0], [1], [0, 0, 1, 1], [], []>} : vector<4x16xbf16>, vector<16x32xbf16>, vector<4x32xf32> -> vector<4x32xf32>
    %253 = arith.addf %245, %252 : vector<4x32xf32>
    %c4_196 = arith.constant 4 : index
    %c0_197 = arith.constant 0 : index
    %c0_198 = arith.constant 0 : index
    %254 = vector.load %arg4[%c4_196, %c0_197, %c0_198] : memref<9x4x16xbf16, #tpu.memory_space<vmem>>, vector<1x4x16xbf16>
    %255 = vector.shape_cast %254 : vector<1x4x16xbf16> to vector<4x16xbf16>
    %cst_199 = arith.constant dense<0.000000e+00> : vector<4x16xf32>
    %256 = tpu.matmul %255, %220, %cst_199 {dimension_numbers = #tpu.dot_dimension_numbers<[1], [0], [0], [1], [0, 0, 1, 1], [], []>} : vector<4x16xbf16>, vector<16x16xbf16>, vector<4x16xf32> -> vector<4x16xf32>
    %257 = arith.truncf %256 : vector<4x16xf32> to vector<4x16xbf16>
    %c4_200 = arith.constant 4 : index
    %c0_201 = arith.constant 0 : index
    %c0_202 = arith.constant 0 : index
    %258 = vector.load %arg8[%c4_200, %c0_201, %c0_202] : memref<9x16x32xbf16, #tpu.memory_space<vmem>>, vector<1x16x32xbf16>
    %259 = vector.shape_cast %258 : vector<1x16x32xbf16> to vector<16x32xbf16>
    %cst_203 = arith.constant dense<0.000000e+00> : vector<4x32xf32>
    %260 = tpu.matmul %257, %259, %cst_203 {dimension_numbers = #tpu.dot_dimension_numbers<[1], [0], [0], [1], [0, 0, 1, 1], [], []>} : vector<4x16xbf16>, vector<16x32xbf16>, vector<4x32xf32> -> vector<4x32xf32>
    %261 = arith.addf %253, %260 : vector<4x32xf32>
    %c5_204 = arith.constant 5 : index
    %c0_205 = arith.constant 0 : index
    %c0_206 = arith.constant 0 : index
    %262 = vector.load %arg4[%c5_204, %c0_205, %c0_206] : memref<9x4x16xbf16, #tpu.memory_space<vmem>>, vector<1x4x16xbf16>
    %263 = vector.shape_cast %262 : vector<1x4x16xbf16> to vector<4x16xbf16>
    %cst_207 = arith.constant dense<0.000000e+00> : vector<4x16xf32>
    %264 = tpu.matmul %263, %220, %cst_207 {dimension_numbers = #tpu.dot_dimension_numbers<[1], [0], [0], [1], [0, 0, 1, 1], [], []>} : vector<4x16xbf16>, vector<16x16xbf16>, vector<4x16xf32> -> vector<4x16xf32>
    %265 = arith.truncf %264 : vector<4x16xf32> to vector<4x16xbf16>
    %c5_208 = arith.constant 5 : index
    %c0_209 = arith.constant 0 : index
    %c0_210 = arith.constant 0 : index
    %266 = vector.load %arg8[%c5_208, %c0_209, %c0_210] : memref<9x16x32xbf16, #tpu.memory_space<vmem>>, vector<1x16x32xbf16>
    %267 = vector.shape_cast %266 : vector<1x16x32xbf16> to vector<16x32xbf16>
    %cst_211 = arith.constant dense<0.000000e+00> : vector<4x32xf32>
    %268 = tpu.matmul %265, %267, %cst_211 {dimension_numbers = #tpu.dot_dimension_numbers<[1], [0], [0], [1], [0, 0, 1, 1], [], []>} : vector<4x16xbf16>, vector<16x32xbf16>, vector<4x32xf32> -> vector<4x32xf32>
    %269 = arith.addf %261, %268 : vector<4x32xf32>
    %c6_212 = arith.constant 6 : index
    %c0_213 = arith.constant 0 : index
    %c0_214 = arith.constant 0 : index
    %270 = vector.load %arg4[%c6_212, %c0_213, %c0_214] : memref<9x4x16xbf16, #tpu.memory_space<vmem>>, vector<1x4x16xbf16>
    %271 = vector.shape_cast %270 : vector<1x4x16xbf16> to vector<4x16xbf16>
    %cst_215 = arith.constant dense<0.000000e+00> : vector<4x16xf32>
    %272 = tpu.matmul %271, %220, %cst_215 {dimension_numbers = #tpu.dot_dimension_numbers<[1], [0], [0], [1], [0, 0, 1, 1], [], []>} : vector<4x16xbf16>, vector<16x16xbf16>, vector<4x16xf32> -> vector<4x16xf32>
    %273 = arith.truncf %272 : vector<4x16xf32> to vector<4x16xbf16>
    %c6_216 = arith.constant 6 : index
    %c0_217 = arith.constant 0 : index
    %c0_218 = arith.constant 0 : index
    %274 = vector.load %arg8[%c6_216, %c0_217, %c0_218] : memref<9x16x32xbf16, #tpu.memory_space<vmem>>, vector<1x16x32xbf16>
    %275 = vector.shape_cast %274 : vector<1x16x32xbf16> to vector<16x32xbf16>
    %cst_219 = arith.constant dense<0.000000e+00> : vector<4x32xf32>
    %276 = tpu.matmul %273, %275, %cst_219 {dimension_numbers = #tpu.dot_dimension_numbers<[1], [0], [0], [1], [0, 0, 1, 1], [], []>} : vector<4x16xbf16>, vector<16x32xbf16>, vector<4x32xf32> -> vector<4x32xf32>
    %277 = arith.addf %269, %276 : vector<4x32xf32>
    %c7_220 = arith.constant 7 : index
    %c0_221 = arith.constant 0 : index
    %c0_222 = arith.constant 0 : index
    %278 = vector.load %arg4[%c7_220, %c0_221, %c0_222] : memref<9x4x16xbf16, #tpu.memory_space<vmem>>, vector<1x4x16xbf16>
    %279 = vector.shape_cast %278 : vector<1x4x16xbf16> to vector<4x16xbf16>
    %cst_223 = arith.constant dense<0.000000e+00> : vector<4x16xf32>
    %280 = tpu.matmul %279, %220, %cst_223 {dimension_numbers = #tpu.dot_dimension_numbers<[1], [0], [0], [1], [0, 0, 1, 1], [], []>} : vector<4x16xbf16>, vector<16x16xbf16>, vector<4x16xf32> -> vector<4x16xf32>
    %281 = arith.truncf %280 : vector<4x16xf32> to vector<4x16xbf16>
    %c7_224 = arith.constant 7 : index
    %c0_225 = arith.constant 0 : index
    %c0_226 = arith.constant 0 : index
    %282 = vector.load %arg8[%c7_224, %c0_225, %c0_226] : memref<9x16x32xbf16, #tpu.memory_space<vmem>>, vector<1x16x32xbf16>
    %283 = vector.shape_cast %282 : vector<1x16x32xbf16> to vector<16x32xbf16>
    %cst_227 = arith.constant dense<0.000000e+00> : vector<4x32xf32>
    %284 = tpu.matmul %281, %283, %cst_227 {dimension_numbers = #tpu.dot_dimension_numbers<[1], [0], [0], [1], [0, 0, 1, 1], [], []>} : vector<4x16xbf16>, vector<16x32xbf16>, vector<4x32xf32> -> vector<4x32xf32>
    %285 = arith.addf %277, %284 : vector<4x32xf32>
    %c8_228 = arith.constant 8 : index
    %c0_229 = arith.constant 0 : index
    %c0_230 = arith.constant 0 : index
    %286 = vector.load %arg4[%c8_228, %c0_229, %c0_230] : memref<9x4x16xbf16, #tpu.memory_space<vmem>>, vector<1x4x16xbf16>
    %287 = vector.shape_cast %286 : vector<1x4x16xbf16> to vector<4x16xbf16>
    %cst_231 = arith.constant dense<0.000000e+00> : vector<4x16xf32>
    %288 = tpu.matmul %287, %220, %cst_231 {dimension_numbers = #tpu.dot_dimension_numbers<[1], [0], [0], [1], [0, 0, 1, 1], [], []>} : vector<4x16xbf16>, vector<16x16xbf16>, vector<4x16xf32> -> vector<4x16xf32>
    %289 = arith.truncf %288 : vector<4x16xf32> to vector<4x16xbf16>
    %c8_232 = arith.constant 8 : index
    %c0_233 = arith.constant 0 : index
    %c0_234 = arith.constant 0 : index
    %290 = vector.load %arg8[%c8_232, %c0_233, %c0_234] : memref<9x16x32xbf16, #tpu.memory_space<vmem>>, vector<1x16x32xbf16>
    %291 = vector.shape_cast %290 : vector<1x16x32xbf16> to vector<16x32xbf16>
    %cst_235 = arith.constant dense<0.000000e+00> : vector<4x32xf32>
    %292 = tpu.matmul %289, %291, %cst_235 {dimension_numbers = #tpu.dot_dimension_numbers<[1], [0], [0], [1], [0, 0, 1, 1], [], []>} : vector<4x16xbf16>, vector<16x32xbf16>, vector<4x32xf32> -> vector<4x32xf32>
    %293 = arith.addf %285, %292 : vector<4x32xf32>
    %c0_236 = arith.constant 0 : index
    %c0_237 = arith.constant 0 : index
    %294 = vector.load %arg12[%c0_236, %c0_237] : memref<1x32xf32, #tpu.memory_space<vmem>>, vector<1x32xf32>
    %295 = vector.broadcast %294 : vector<1x32xf32> to vector<4x32xf32>
    %296 = arith.addf %293, %295 : vector<4x32xf32>
    %297 = math.absf %296 : vector<4x32xf32>
    %cst_238 = arith.constant 0.000000e+00 : f32
    %298 = vector.broadcast %cst_238 : f32 to vector<4x32xf32>
    %299 = arith.subf %298, %297 : vector<4x32xf32>
    %300 = math.exp %299 : vector<4x32xf32>
    %cst_239 = arith.constant 0.000000e+00 : f32
    %301 = vector.broadcast %cst_239 : f32 to vector<4x32xf32>
    %302 = arith.cmpf oge, %296, %301 : vector<4x32xf32>
    %cst_240 = arith.constant 2.000000e+00 : f32
    %303 = vector.broadcast %cst_240 : f32 to vector<4x32xf32>
    %304 = arith.mulf %303, %300 : vector<4x32xf32>
    %cst_241 = arith.constant 1.000000e+00 : f32
    %305 = vector.broadcast %cst_241 : f32 to vector<4x32xf32>
    %306 = arith.addf %305, %304 : vector<4x32xf32>
    %cst_242 = arith.constant 2.000000e+00 : f32
    %307 = vector.broadcast %cst_242 : f32 to vector<4x32xf32>
    %308 = arith.addf %300, %307 : vector<4x32xf32>
    %309 = arith.mulf %300, %308 : vector<4x32xf32>
    %310 = arith.select %302, %306, %309 : vector<4x32xi1>, vector<4x32xf32>
    %cst_243 = arith.constant 2.000000e+00 : f32
    %311 = vector.broadcast %cst_243 : f32 to vector<4x32xf32>
    %312 = arith.mulf %311, %300 : vector<4x32xf32>
    %cst_244 = arith.constant 1.000000e+00 : f32
    %313 = vector.broadcast %cst_244 : f32 to vector<4x32xf32>
    %314 = arith.addf %313, %312 : vector<4x32xf32>
    %cst_245 = arith.constant 2.000000e+00 : f32
    %315 = vector.broadcast %cst_245 : f32 to vector<4x32xf32>
    %316 = arith.mulf %315, %300 : vector<4x32xf32>
    %317 = arith.mulf %316, %300 : vector<4x32xf32>
    %318 = arith.addf %314, %317 : vector<4x32xf32>
    %319 = arith.mulf %300, %300 : vector<4x32xf32>
    %cst_246 = arith.constant 2.000000e+00 : f32
    %320 = vector.broadcast %cst_246 : f32 to vector<4x32xf32>
    %321 = arith.mulf %320, %300 : vector<4x32xf32>
    %322 = arith.addf %319, %321 : vector<4x32xf32>
    %cst_247 = arith.constant 2.000000e+00 : f32
    %323 = vector.broadcast %cst_247 : f32 to vector<4x32xf32>
    %324 = arith.addf %322, %323 : vector<4x32xf32>
    %325 = arith.select %302, %318, %324 : vector<4x32xi1>, vector<4x32xf32>
    %326 = arith.mulf %296, %310 : vector<4x32xf32>
    %327 = tpu.reciprocal %325 {approx = true} : vector<4x32xf32> -> vector<4x32xf32>
    %328 = arith.mulf %326, %327 : vector<4x32xf32>
    %329 = arith.truncf %328 : vector<4x32xf32> to vector<4x32xbf16>
    %cst_248 = arith.constant 0.000000e+00 : f32
    %330 = vector.broadcast %cst_248 : f32 to vector<1x32xf32>
    %c0_249 = arith.constant 0 : index
    %c0_250 = arith.constant 0 : index
    %c0_251 = arith.constant 0 : index
    %331 = vector.load %arg5[%c0_249, %c0_250, %c0_251] : memref<9x1x4xbf16, #tpu.memory_space<vmem>>, vector<1x1x4xbf16>
    %332 = vector.shape_cast %331 : vector<1x1x4xbf16> to vector<1x4xbf16>
    %cst_252 = arith.constant dense<0.000000e+00> : vector<1x32xf32>
    %333 = tpu.matmul %332, %329, %cst_252 {dimension_numbers = #tpu.dot_dimension_numbers<[1], [0], [0], [1], [0, 0, 1, 1], [], []>} : vector<1x4xbf16>, vector<4x32xbf16>, vector<1x32xf32> -> vector<1x32xf32>
    %334 = arith.truncf %333 : vector<1x32xf32> to vector<1x32xbf16>
    %c0_253 = arith.constant 0 : index
    %c0_254 = arith.constant 0 : index
    %c0_255 = arith.constant 0 : index
    %335 = vector.load %arg9[%c0_253, %c0_254, %c0_255] : memref<9x32x32xbf16, #tpu.memory_space<vmem>>, vector<1x32x32xbf16>
    %336 = vector.shape_cast %335 : vector<1x32x32xbf16> to vector<32x32xbf16>
    %cst_256 = arith.constant dense<0.000000e+00> : vector<1x32xf32>
    %337 = tpu.matmul %334, %336, %cst_256 {dimension_numbers = #tpu.dot_dimension_numbers<[1], [0], [0], [1], [0, 0, 1, 1], [], []>} : vector<1x32xbf16>, vector<32x32xbf16>, vector<1x32xf32> -> vector<1x32xf32>
    %338 = arith.addf %330, %337 : vector<1x32xf32>
    %c1_257 = arith.constant 1 : index
    %c0_258 = arith.constant 0 : index
    %c0_259 = arith.constant 0 : index
    %339 = vector.load %arg5[%c1_257, %c0_258, %c0_259] : memref<9x1x4xbf16, #tpu.memory_space<vmem>>, vector<1x1x4xbf16>
    %340 = vector.shape_cast %339 : vector<1x1x4xbf16> to vector<1x4xbf16>
    %cst_260 = arith.constant dense<0.000000e+00> : vector<1x32xf32>
    %341 = tpu.matmul %340, %329, %cst_260 {dimension_numbers = #tpu.dot_dimension_numbers<[1], [0], [0], [1], [0, 0, 1, 1], [], []>} : vector<1x4xbf16>, vector<4x32xbf16>, vector<1x32xf32> -> vector<1x32xf32>
    %342 = arith.truncf %341 : vector<1x32xf32> to vector<1x32xbf16>
    %c1_261 = arith.constant 1 : index
    %c0_262 = arith.constant 0 : index
    %c0_263 = arith.constant 0 : index
    %343 = vector.load %arg9[%c1_261, %c0_262, %c0_263] : memref<9x32x32xbf16, #tpu.memory_space<vmem>>, vector<1x32x32xbf16>
    %344 = vector.shape_cast %343 : vector<1x32x32xbf16> to vector<32x32xbf16>
    %cst_264 = arith.constant dense<0.000000e+00> : vector<1x32xf32>
    %345 = tpu.matmul %342, %344, %cst_264 {dimension_numbers = #tpu.dot_dimension_numbers<[1], [0], [0], [1], [0, 0, 1, 1], [], []>} : vector<1x32xbf16>, vector<32x32xbf16>, vector<1x32xf32> -> vector<1x32xf32>
    %346 = arith.addf %338, %345 : vector<1x32xf32>
    %c2_265 = arith.constant 2 : index
    %c0_266 = arith.constant 0 : index
    %c0_267 = arith.constant 0 : index
    %347 = vector.load %arg5[%c2_265, %c0_266, %c0_267] : memref<9x1x4xbf16, #tpu.memory_space<vmem>>, vector<1x1x4xbf16>
    %348 = vector.shape_cast %347 : vector<1x1x4xbf16> to vector<1x4xbf16>
    %cst_268 = arith.constant dense<0.000000e+00> : vector<1x32xf32>
    %349 = tpu.matmul %348, %329, %cst_268 {dimension_numbers = #tpu.dot_dimension_numbers<[1], [0], [0], [1], [0, 0, 1, 1], [], []>} : vector<1x4xbf16>, vector<4x32xbf16>, vector<1x32xf32> -> vector<1x32xf32>
    %350 = arith.truncf %349 : vector<1x32xf32> to vector<1x32xbf16>
    %c2_269 = arith.constant 2 : index
    %c0_270 = arith.constant 0 : index
    %c0_271 = arith.constant 0 : index
    %351 = vector.load %arg9[%c2_269, %c0_270, %c0_271] : memref<9x32x32xbf16, #tpu.memory_space<vmem>>, vector<1x32x32xbf16>
    %352 = vector.shape_cast %351 : vector<1x32x32xbf16> to vector<32x32xbf16>
    %cst_272 = arith.constant dense<0.000000e+00> : vector<1x32xf32>
    %353 = tpu.matmul %350, %352, %cst_272 {dimension_numbers = #tpu.dot_dimension_numbers<[1], [0], [0], [1], [0, 0, 1, 1], [], []>} : vector<1x32xbf16>, vector<32x32xbf16>, vector<1x32xf32> -> vector<1x32xf32>
    %354 = arith.addf %346, %353 : vector<1x32xf32>
    %c3_273 = arith.constant 3 : index
    %c0_274 = arith.constant 0 : index
    %c0_275 = arith.constant 0 : index
    %355 = vector.load %arg5[%c3_273, %c0_274, %c0_275] : memref<9x1x4xbf16, #tpu.memory_space<vmem>>, vector<1x1x4xbf16>
    %356 = vector.shape_cast %355 : vector<1x1x4xbf16> to vector<1x4xbf16>
    %cst_276 = arith.constant dense<0.000000e+00> : vector<1x32xf32>
    %357 = tpu.matmul %356, %329, %cst_276 {dimension_numbers = #tpu.dot_dimension_numbers<[1], [0], [0], [1], [0, 0, 1, 1], [], []>} : vector<1x4xbf16>, vector<4x32xbf16>, vector<1x32xf32> -> vector<1x32xf32>
    %358 = arith.truncf %357 : vector<1x32xf32> to vector<1x32xbf16>
    %c3_277 = arith.constant 3 : index
    %c0_278 = arith.constant 0 : index
    %c0_279 = arith.constant 0 : index
    %359 = vector.load %arg9[%c3_277, %c0_278, %c0_279] : memref<9x32x32xbf16, #tpu.memory_space<vmem>>, vector<1x32x32xbf16>
    %360 = vector.shape_cast %359 : vector<1x32x32xbf16> to vector<32x32xbf16>
    %cst_280 = arith.constant dense<0.000000e+00> : vector<1x32xf32>
    %361 = tpu.matmul %358, %360, %cst_280 {dimension_numbers = #tpu.dot_dimension_numbers<[1], [0], [0], [1], [0, 0, 1, 1], [], []>} : vector<1x32xbf16>, vector<32x32xbf16>, vector<1x32xf32> -> vector<1x32xf32>
    %362 = arith.addf %354, %361 : vector<1x32xf32>
    %c4_281 = arith.constant 4 : index
    %c0_282 = arith.constant 0 : index
    %c0_283 = arith.constant 0 : index
    %363 = vector.load %arg5[%c4_281, %c0_282, %c0_283] : memref<9x1x4xbf16, #tpu.memory_space<vmem>>, vector<1x1x4xbf16>
    %364 = vector.shape_cast %363 : vector<1x1x4xbf16> to vector<1x4xbf16>
    %cst_284 = arith.constant dense<0.000000e+00> : vector<1x32xf32>
    %365 = tpu.matmul %364, %329, %cst_284 {dimension_numbers = #tpu.dot_dimension_numbers<[1], [0], [0], [1], [0, 0, 1, 1], [], []>} : vector<1x4xbf16>, vector<4x32xbf16>, vector<1x32xf32> -> vector<1x32xf32>
    %366 = arith.truncf %365 : vector<1x32xf32> to vector<1x32xbf16>
    %c4_285 = arith.constant 4 : index
    %c0_286 = arith.constant 0 : index
    %c0_287 = arith.constant 0 : index
    %367 = vector.load %arg9[%c4_285, %c0_286, %c0_287] : memref<9x32x32xbf16, #tpu.memory_space<vmem>>, vector<1x32x32xbf16>
    %368 = vector.shape_cast %367 : vector<1x32x32xbf16> to vector<32x32xbf16>
    %cst_288 = arith.constant dense<0.000000e+00> : vector<1x32xf32>
    %369 = tpu.matmul %366, %368, %cst_288 {dimension_numbers = #tpu.dot_dimension_numbers<[1], [0], [0], [1], [0, 0, 1, 1], [], []>} : vector<1x32xbf16>, vector<32x32xbf16>, vector<1x32xf32> -> vector<1x32xf32>
    %370 = arith.addf %362, %369 : vector<1x32xf32>
    %c5_289 = arith.constant 5 : index
    %c0_290 = arith.constant 0 : index
    %c0_291 = arith.constant 0 : index
    %371 = vector.load %arg5[%c5_289, %c0_290, %c0_291] : memref<9x1x4xbf16, #tpu.memory_space<vmem>>, vector<1x1x4xbf16>
    %372 = vector.shape_cast %371 : vector<1x1x4xbf16> to vector<1x4xbf16>
    %cst_292 = arith.constant dense<0.000000e+00> : vector<1x32xf32>
    %373 = tpu.matmul %372, %329, %cst_292 {dimension_numbers = #tpu.dot_dimension_numbers<[1], [0], [0], [1], [0, 0, 1, 1], [], []>} : vector<1x4xbf16>, vector<4x32xbf16>, vector<1x32xf32> -> vector<1x32xf32>
    %374 = arith.truncf %373 : vector<1x32xf32> to vector<1x32xbf16>
    %c5_293 = arith.constant 5 : index
    %c0_294 = arith.constant 0 : index
    %c0_295 = arith.constant 0 : index
    %375 = vector.load %arg9[%c5_293, %c0_294, %c0_295] : memref<9x32x32xbf16, #tpu.memory_space<vmem>>, vector<1x32x32xbf16>
    %376 = vector.shape_cast %375 : vector<1x32x32xbf16> to vector<32x32xbf16>
    %cst_296 = arith.constant dense<0.000000e+00> : vector<1x32xf32>
    %377 = tpu.matmul %374, %376, %cst_296 {dimension_numbers = #tpu.dot_dimension_numbers<[1], [0], [0], [1], [0, 0, 1, 1], [], []>} : vector<1x32xbf16>, vector<32x32xbf16>, vector<1x32xf32> -> vector<1x32xf32>
    %378 = arith.addf %370, %377 : vector<1x32xf32>
    %c6_297 = arith.constant 6 : index
    %c0_298 = arith.constant 0 : index
    %c0_299 = arith.constant 0 : index
    %379 = vector.load %arg5[%c6_297, %c0_298, %c0_299] : memref<9x1x4xbf16, #tpu.memory_space<vmem>>, vector<1x1x4xbf16>
    %380 = vector.shape_cast %379 : vector<1x1x4xbf16> to vector<1x4xbf16>
    %cst_300 = arith.constant dense<0.000000e+00> : vector<1x32xf32>
    %381 = tpu.matmul %380, %329, %cst_300 {dimension_numbers = #tpu.dot_dimension_numbers<[1], [0], [0], [1], [0, 0, 1, 1], [], []>} : vector<1x4xbf16>, vector<4x32xbf16>, vector<1x32xf32> -> vector<1x32xf32>
    %382 = arith.truncf %381 : vector<1x32xf32> to vector<1x32xbf16>
    %c6_301 = arith.constant 6 : index
    %c0_302 = arith.constant 0 : index
    %c0_303 = arith.constant 0 : index
    %383 = vector.load %arg9[%c6_301, %c0_302, %c0_303] : memref<9x32x32xbf16, #tpu.memory_space<vmem>>, vector<1x32x32xbf16>
    %384 = vector.shape_cast %383 : vector<1x32x32xbf16> to vector<32x32xbf16>
    %cst_304 = arith.constant dense<0.000000e+00> : vector<1x32xf32>
    %385 = tpu.matmul %382, %384, %cst_304 {dimension_numbers = #tpu.dot_dimension_numbers<[1], [0], [0], [1], [0, 0, 1, 1], [], []>} : vector<1x32xbf16>, vector<32x32xbf16>, vector<1x32xf32> -> vector<1x32xf32>
    %386 = arith.addf %378, %385 : vector<1x32xf32>
    %c7_305 = arith.constant 7 : index
    %c0_306 = arith.constant 0 : index
    %c0_307 = arith.constant 0 : index
    %387 = vector.load %arg5[%c7_305, %c0_306, %c0_307] : memref<9x1x4xbf16, #tpu.memory_space<vmem>>, vector<1x1x4xbf16>
    %388 = vector.shape_cast %387 : vector<1x1x4xbf16> to vector<1x4xbf16>
    %cst_308 = arith.constant dense<0.000000e+00> : vector<1x32xf32>
    %389 = tpu.matmul %388, %329, %cst_308 {dimension_numbers = #tpu.dot_dimension_numbers<[1], [0], [0], [1], [0, 0, 1, 1], [], []>} : vector<1x4xbf16>, vector<4x32xbf16>, vector<1x32xf32> -> vector<1x32xf32>
    %390 = arith.truncf %389 : vector<1x32xf32> to vector<1x32xbf16>
    %c7_309 = arith.constant 7 : index
    %c0_310 = arith.constant 0 : index
    %c0_311 = arith.constant 0 : index
    %391 = vector.load %arg9[%c7_309, %c0_310, %c0_311] : memref<9x32x32xbf16, #tpu.memory_space<vmem>>, vector<1x32x32xbf16>
    %392 = vector.shape_cast %391 : vector<1x32x32xbf16> to vector<32x32xbf16>
    %cst_312 = arith.constant dense<0.000000e+00> : vector<1x32xf32>
    %393 = tpu.matmul %390, %392, %cst_312 {dimension_numbers = #tpu.dot_dimension_numbers<[1], [0], [0], [1], [0, 0, 1, 1], [], []>} : vector<1x32xbf16>, vector<32x32xbf16>, vector<1x32xf32> -> vector<1x32xf32>
    %394 = arith.addf %386, %393 : vector<1x32xf32>
    %c8_313 = arith.constant 8 : index
    %c0_314 = arith.constant 0 : index
    %c0_315 = arith.constant 0 : index
    %395 = vector.load %arg5[%c8_313, %c0_314, %c0_315] : memref<9x1x4xbf16, #tpu.memory_space<vmem>>, vector<1x1x4xbf16>
    %396 = vector.shape_cast %395 : vector<1x1x4xbf16> to vector<1x4xbf16>
    %cst_316 = arith.constant dense<0.000000e+00> : vector<1x32xf32>
    %397 = tpu.matmul %396, %329, %cst_316 {dimension_numbers = #tpu.dot_dimension_numbers<[1], [0], [0], [1], [0, 0, 1, 1], [], []>} : vector<1x4xbf16>, vector<4x32xbf16>, vector<1x32xf32> -> vector<1x32xf32>
    %398 = arith.truncf %397 : vector<1x32xf32> to vector<1x32xbf16>
    %c8_317 = arith.constant 8 : index
    %c0_318 = arith.constant 0 : index
    %c0_319 = arith.constant 0 : index
    %399 = vector.load %arg9[%c8_317, %c0_318, %c0_319] : memref<9x32x32xbf16, #tpu.memory_space<vmem>>, vector<1x32x32xbf16>
    %400 = vector.shape_cast %399 : vector<1x32x32xbf16> to vector<32x32xbf16>
    %cst_320 = arith.constant dense<0.000000e+00> : vector<1x32xf32>
    %401 = tpu.matmul %398, %400, %cst_320 {dimension_numbers = #tpu.dot_dimension_numbers<[1], [0], [0], [1], [0, 0, 1, 1], [], []>} : vector<1x32xbf16>, vector<32x32xbf16>, vector<1x32xf32> -> vector<1x32xf32>
    %402 = arith.addf %394, %401 : vector<1x32xf32>
    %c0_321 = arith.constant 0 : index
    %c0_322 = arith.constant 0 : index
    %403 = vector.load %arg13[%c0_321, %c0_322] : memref<1x32xf32, #tpu.memory_space<vmem>>, vector<1x32xf32>
    %404 = arith.addf %402, %403 : vector<1x32xf32>
    %405 = math.absf %404 : vector<1x32xf32>
    %cst_323 = arith.constant 0.000000e+00 : f32
    %406 = vector.broadcast %cst_323 : f32 to vector<1x32xf32>
    %407 = arith.subf %406, %405 : vector<1x32xf32>
    %408 = math.exp %407 : vector<1x32xf32>
    %cst_324 = arith.constant 0.000000e+00 : f32
    %409 = vector.broadcast %cst_324 : f32 to vector<1x32xf32>
    %410 = arith.cmpf oge, %404, %409 : vector<1x32xf32>
    %cst_325 = arith.constant 2.000000e+00 : f32
    %411 = vector.broadcast %cst_325 : f32 to vector<1x32xf32>
    %412 = arith.mulf %411, %408 : vector<1x32xf32>
    %cst_326 = arith.constant 1.000000e+00 : f32
    %413 = vector.broadcast %cst_326 : f32 to vector<1x32xf32>
    %414 = arith.addf %413, %412 : vector<1x32xf32>
    %cst_327 = arith.constant 2.000000e+00 : f32
    %415 = vector.broadcast %cst_327 : f32 to vector<1x32xf32>
    %416 = arith.addf %408, %415 : vector<1x32xf32>
    %417 = arith.mulf %408, %416 : vector<1x32xf32>
    %418 = arith.select %410, %414, %417 : vector<1x32xi1>, vector<1x32xf32>
    %cst_328 = arith.constant 2.000000e+00 : f32
    %419 = vector.broadcast %cst_328 : f32 to vector<1x32xf32>
    %420 = arith.mulf %419, %408 : vector<1x32xf32>
    %cst_329 = arith.constant 1.000000e+00 : f32
    %421 = vector.broadcast %cst_329 : f32 to vector<1x32xf32>
    %422 = arith.addf %421, %420 : vector<1x32xf32>
    %cst_330 = arith.constant 2.000000e+00 : f32
    %423 = vector.broadcast %cst_330 : f32 to vector<1x32xf32>
    %424 = arith.mulf %423, %408 : vector<1x32xf32>
    %425 = arith.mulf %424, %408 : vector<1x32xf32>
    %426 = arith.addf %422, %425 : vector<1x32xf32>
    %427 = arith.mulf %408, %408 : vector<1x32xf32>
    %cst_331 = arith.constant 2.000000e+00 : f32
    %428 = vector.broadcast %cst_331 : f32 to vector<1x32xf32>
    %429 = arith.mulf %428, %408 : vector<1x32xf32>
    %430 = arith.addf %427, %429 : vector<1x32xf32>
    %cst_332 = arith.constant 2.000000e+00 : f32
    %431 = vector.broadcast %cst_332 : f32 to vector<1x32xf32>
    %432 = arith.addf %430, %431 : vector<1x32xf32>
    %433 = arith.select %410, %426, %432 : vector<1x32xi1>, vector<1x32xf32>
    %434 = arith.mulf %404, %418 : vector<1x32xf32>
    %435 = tpu.reciprocal %433 {approx = true} : vector<1x32xf32> -> vector<1x32xf32>
    %436 = arith.mulf %434, %435 : vector<1x32xf32>
    %437 = arith.truncf %436 : vector<1x32xf32> to vector<1x32xbf16>
    %c0_333 = arith.constant 0 : index
    %c0_334 = arith.constant 0 : index
    %438 = vector.load %arg14[%c0_333, %c0_334] : memref<32x32xbf16, #tpu.memory_space<vmem>>, vector<32x32xbf16>
    %cst_335 = arith.constant dense<0.000000e+00> : vector<1x32xf32>
    %439 = tpu.matmul %437, %438, %cst_335 {dimension_numbers = #tpu.dot_dimension_numbers<[1], [0], [0], [1], [0, 0, 1, 1], [], []>} : vector<1x32xbf16>, vector<32x32xbf16>, vector<1x32xf32> -> vector<1x32xf32>
    %c0_336 = arith.constant 0 : index
    %c0_337 = arith.constant 0 : index
    %440 = vector.load %arg15[%c0_336, %c0_337] : memref<1x32xf32, #tpu.memory_space<vmem>>, vector<1x32xf32>
    %441 = arith.addf %439, %440 : vector<1x32xf32>
    %c0_338 = arith.constant 0 : index
    %c0_339 = arith.constant 0 : index
    %c0_340 = arith.constant 0 : index
    %442 = vector.load %arg16[%c0_338, %c0_339, %c0_340] : memref<1x1x32xf32, #tpu.memory_space<vmem>>, vector<1x1x32xf32>
    %443 = vector.shape_cast %442 : vector<1x1x32xf32> to vector<1x32xf32>
    %444 = vector.shape_cast %441 : vector<1x32xf32> to vector<1x1x32xf32>
    tpu.vector_store %arg16[%c0_338, %c0_339, %c0_340], %444 {strides = array<i32>} : memref<1x1x32xf32, #tpu.memory_space<vmem>>, vector<1x1x32xf32>,
    return
  }
  func.func @transform_0(%arg0: i32) -> (i32, i32, i32) {
    %c0_i32 = arith.constant 0 : i32
    %c0_i32_0 = arith.constant 0 : i32
    %c0_i32_1 = arith.constant 0 : i32
    return %arg0, %c0_i32, %c0_i32_0 : i32, i32, i32
  }
  func.func @transform_1(%arg0: i32) -> (i32, i32, i32) {
    %c0_i32 = arith.constant 0 : i32
    %c0_i32_0 = arith.constant 0 : i32
    %c0_i32_1 = arith.constant 0 : i32
    %c0_i32_2 = arith.constant 0 : i32
    return %c0_i32, %c0_i32_0, %c0_i32_1 : i32, i32, i32
  }
  func.func @transform_2(%arg0: i32) -> (i32, i32, i32) {
    %c0_i32 = arith.constant 0 : i32
    %c0_i32_0 = arith.constant 0 : i32
    %c0_i32_1 = arith.constant 0 : i32
    %c0_i32_2 = arith.constant 0 : i32
    return %c0_i32, %c0_i32_0, %c0_i32_1 : i32, i32, i32
  }
  func.func @transform_3(%arg0: i32) -> (i32, i32, i32) {
    %c0_i32 = arith.constant 0 : i32
    %c0_i32_0 = arith.constant 0 : i32
    %c0_i32_1 = arith.constant 0 : i32
    %c0_i32_2 = arith.constant 0 : i32
    return %c0_i32, %c0_i32_0, %c0_i32_1 : i32, i32, i32
  }
  func.func @transform_4(%arg0: i32) -> (i32, i32, i32) {
    %c0_i32 = arith.constant 0 : i32
    %c0_i32_0 = arith.constant 0 : i32
    %c0_i32_1 = arith.constant 0 : i32
    %c0_i32_2 = arith.constant 0 : i32
    return %c0_i32, %c0_i32_0, %c0_i32_1 : i32, i32, i32
  }
  func.func @transform_5(%arg0: i32) -> (i32, i32, i32) {
    %c0_i32 = arith.constant 0 : i32
    %c0_i32_0 = arith.constant 0 : i32
    %c0_i32_1 = arith.constant 0 : i32
    %c0_i32_2 = arith.constant 0 : i32
    return %c0_i32, %c0_i32_0, %c0_i32_1 : i32, i32, i32
  }
  func.func @transform_6(%arg0: i32) -> (i32, i32, i32) {
    %c0_i32 = arith.constant 0 : i32
    %c0_i32_0 = arith.constant 0 : i32
    %c0_i32_1 = arith.constant 0 : i32
    %c0_i32_2 = arith.constant 0 : i32
    return %c0_i32, %c0_i32_0, %c0_i32_1 : i32, i32, i32
  }
  func.func @transform_7(%arg0: i32) -> (i32, i32, i32) {
    %c0_i32 = arith.constant 0 : i32
    %c0_i32_0 = arith.constant 0 : i32
    %c0_i32_1 = arith.constant 0 : i32
    %c0_i32_2 = arith.constant 0 : i32
    return %c0_i32, %c0_i32_0, %c0_i32_1 : i32, i32, i32
  }
  func.func @transform_8(%arg0: i32) -> (i32, i32, i32) {
    %c0_i32 = arith.constant 0 : i32
    %c0_i32_0 = arith.constant 0 : i32
    %c0_i32_1 = arith.constant 0 : i32
    %c0_i32_2 = arith.constant 0 : i32
    return %c0_i32, %c0_i32_0, %c0_i32_1 : i32, i32, i32
  }
  func.func @transform_9(%arg0: i32) -> (i32, i32) {
    %c0_i32 = arith.constant 0 : i32
    %c0_i32_0 = arith.constant 0 : i32
    %c0_i32_1 = arith.constant 0 : i32
    return %c0_i32, %c0_i32_0 : i32, i32
  }
  func.func @transform_10(%arg0: i32) -> (i32, i32) {
    %c0_i32 = arith.constant 0 : i32
    %c0_i32_0 = arith.constant 0 : i32
    %c0_i32_1 = arith.constant 0 : i32
    return %c0_i32, %c0_i32_0 : i32, i32
  }
  func.func @transform_11(%arg0: i32) -> (i32, i32) {
    %c0_i32 = arith.constant 0 : i32
    %c0_i32_0 = arith.constant 0 : i32
    %c0_i32_1 = arith.constant 0 : i32
    return %c0_i32, %c0_i32_0 : i32, i32
  }
  func.func @transform_12(%arg0: i32) -> (i32, i32) {
    %c0_i32 = arith.constant 0 : i32
    %c0_i32_0 = arith.constant 0 : i32
    %c0_i32_1 = arith.constant 0 : i32
    return %c0_i32, %c0_i32_0 : i32, i32
  }
  func.func @transform_13(%arg0: i32) -> (i32, i32) {
    %c0_i32 = arith.constant 0 : i32
    %c0_i32_0 = arith.constant 0 : i32
    %c0_i32_1 = arith.constant 0 : i32
    return %c0_i32, %c0_i32_0 : i32, i32
  }
  func.func @transform_14(%arg0: i32) -> (i32, i32) {
    %c0_i32 = arith.constant 0 : i32
    %c0_i32_0 = arith.constant 0 : i32
    %c0_i32_1 = arith.constant 0 : i32
    return %c0_i32, %c0_i32_0 : i32, i32
  }
  func.func @transform_15(%arg0: i32) -> (i32, i32, i32) {
    %c0_i32 = arith.constant 0 : i32
    %c0_i32_0 = arith.constant 0 : i32
    %c0_i32_1 = arith.constant 0 : i32
    return %arg0, %c0_i32, %c0_i32_0 : i32, i32, i32
  }
}

</mosaic_0001>

<bundles_post_ra>
// kernel: featmap_to_latent.1
= control target key start
LH: loop header
LB: loop body
LE: loop exit
PB: predicated region body
PF: predicated region fallthrough
CT: control target
= control target key end

     0   :  { %s8973_s0 = inlined_call_operand.vmem [shape: f32[2,256,4], index: 0, kind: input, shape index: {}]   ;;  %s8974_s1 = inlined_call_operand.vmem [shape: bf16[9,64,256], index: 1, kind: input, shape index: {}]   ;;  %s8975_s2 = inlined_call_operand.vmem [shape: bf16[9,16,64], index: 2, kind: input, shape index: {}]   ;;  %s8976_s3 = inlined_call_operand.hbm [shape: bf16[9,4,16], index: 3, kind: input, shape index: {}]   ;;  %s8977_s4 = inlined_call_operand.vmem [shape: bf16[9,1,4], index: 4, kind: input, shape index: {}]   ;;  %s8978_s5 = inlined_call_operand.vmem [shape: bf16[9,4,8], index: 5, kind: input, shape index: {}]   ;;  %s8979_s6 = inlined_call_operand.vmem [shape: bf16[9,8,16], index: 6, kind: input, shape index: {}]   ;;  %s8980_s7 = inlined_call_operand.hbm [shape: bf16[9,16,32], index: 7, kind: input, shape index: {}]   ;;  %s8981_s8 = inlined_call_operand.hbm [shape: bf16[9,32,32], index: 8, kind: input, shape index: {}]   ;;  %s8982_s9 = inlined_call_operand.vmem [shape: f32[1,8], index: 9, kind: input, shape index: {}]   ;;  %s8983_s10 = inlined_call_operand.vmem [shape: f32[1,16], index: 10, kind: input, shape index: {}]   ;;  %s8984_s11 = inlined_call_operand.vmem [shape: f32[1,32], index: 11, kind: input, shape index: {}]   ;;  %s8985_s12 = inlined_call_operand.vmem [shape: f32[1,32], index: 12, kind: input, shape index: {}]   ;;  %s8986_s13 = inlined_call_operand.vmem [shape: bf16[32,32], index: 13, kind: input, shape index: {}]   ;;  %s8987_s14 = inlined_call_operand.vmem [shape: f32[1,32], index: 14, kind: input, shape index: {}]   ;;  %s8988_s15 = inlined_call_operand.hbm [shape: f32[2,1,32], index: 15, kind: output, shape index: {}]  }
   0x1   :  { %9004 = sst [smem:[#allocation20_spill]] %s8980_s7 }
   0x2   :  { %9005 = sst [smem:[#allocation21_spill]] %s8987_s14 }
   0x3   :  { %9006 = sst [smem:[#allocation22_spill]] %s8988_s15 }
   0x4   :  { %20 = vsyncpa [#allocation3], 0 }
   0x5   :  { %21 = vsyncpa [#allocation6], 0 }
   0x6   :  { %22 = vsyncpa [#allocation4], 0 }
   0x7   :  { %24 = vsyncpa [#allocation4 + $0x1], 0  ;;  %s7614_s18 = smov 0   ;;  %s7616_s19 = smov 0  }
   0x8   :  { %s7618_s20 = smov 0   ;;  %s7620_s21 = smov 0  }
   0x9 LB: > { %9007 = sst [smem:[#allocation12_spill]] %s7510_s18  ;;  %s7635_s22 = sadd.s32 4294967295, %s7522_s21   ;;  %s7522_s21 = sphi %s7620_s21, %s9038_s21   ;;  %s7518_s20 = sphi %s7618_s20, %s9041_s20   ;;  %s7514_s19 = sphi %s7616_s19, %s9040_s19   ;;  %s7510_s18 = sphi %s7614_s18, %s9039_s18  }
   0xa   : > { %9008 = sst [smem:[#allocation13_spill]] %s7514_s19  ;;  %s5655_s23 = sadd.s32 4294967294, %s7522_s21  }
   0xb   : > { %9009 = sst [smem:[#allocation14_spill]] %s7518_s20  ;;  %s7639_s24 = sadd.s32 1, %s7522_s21  }
   0xc   : > { %9010 = sst [smem:[#allocation15_spill]] %s7522_s21  ;;  %s357_s25 = sadd.s32 1, %s7518_s20 }
   0xd   : > { %9011 = sst [smem:[#allocation16_spill]] %s7639_s24  ;;  %s354_s26 = ssub.s32 %s7522_s21, %s7639_s24 }
   0xe   : > { %p367_p0 = scmp.ne.s32.totalorder %s7518_s20, %s7514_s19  ;;  %p355_p1 = scmp.eq.s32.totalorder %s354_s26, 0 }
   0xf   : > { %p368_p2 = scmp.eq.s32.totalorder %s7635_s22, 1  ;;  %p373_p3 = scmp.ne.s32.totalorder %s7514_s19, %s7510_s18 }
  0x10   : > { %p374_p4 = scmp.eq.s32.totalorder %s5655_s23, 1  ;;  %p5656_p7 = scmp.ge.s32.totalorder %s7522_s21, 1 }
  0x11   : > { %s7650_s27 = scalar_select %p355_p1, %s7518_s20, %s357_s25  }
  0x12   : > { %p7652_p5 = por %p368_p2, %p367_p0  ;;  %p7656_p6 = por %p374_p4, %p373_p3 }
  0x13   : > { %9012 = sst [smem:[#allocation17_spill]] %s7650_s27  ;;  %p381_p8 = scmp.lt.s32.totalorder %s7522_s21, 3 }
  0x14   : > { %s9013_s28 = scalar_select %p7652_p5, 1, 0 }
  0x15   : > { %s9015_s29 = scalar_select %p7656_p6, 1, 0 }
  0x16   : > { %9014 = sst [smem:[#allocation18_spill]] %s9013_s28  ;;  %p8995_p9 = scmp.eq.s32.totalorder %s7635_s22, 0 }
  0x17   : > { %9016 = sst [smem:[#allocation19_spill]] %s9015_s29  ;;  %p7663_p10 = pnand %p5656_p7, %p381_p8 }
  0x18   : > { %s7524_s16 = smov [#allocation5]   ;;  %s7525_s25 = smov [#allocation2]  }
  0x19   : > { %s9017_s30 = scalar_select %p7663_p10, 1, 0 }
  0x1a   : > { %s421_s17 = sshll.u32 %s7524_s16, 4  ;;  %p7112_p11 = pneg %p7663_p10  ;;  %s422_s17 = int_to_ptr.vmem [resolvable:$true] %s421_s17 }
  0x1b   : > { %s399_s26 = sshll.u32 %s7525_s25, 4  ;;  %s9019_s7 = sld [smem:[#allocation20_spill]]  ;;  %s7675_s26 = int_to_ptr.vmem [resolvable:$true] %s399_s26 }
  0x1c   : > { %p7671_p12 = pnand %p8995_p9, %p7112_p11 }
  0x1e   : > { %p7685_p0 = pneg %p7671_p12 }
  0x21   : > { %s7368_s24 = scalar_lea.hbm %s9019_s7, 1152 }
  0x22   : > { %p7369_p13 = scmp.ne.s32.totalorder %s9019_s7, %s7368_s24  ;;  %p7375_p3 = scmp.lt.u32.totalorder %s7368_s24, %s9019_s7 }
  0x24   : > { %p7371_p1 = pnand %p7685_p0, %p7369_p13 }
  0x26   : > { %p7372_p2 = pneg %p7371_p1 }
  0x28   : > { %p7377_p4 = pnand %p7375_p3, %p7372_p2 }
  0x2a   : > { %7380 = shalt.err (!%p7377_p4)
}
  0x2b   : > { %s7381_s20 = scalar_lea.vmem %s422_s17, 1152  ;;  %p7389_p9 = scmp.lt.s32.totalorder %s422_s17, %s422_s17 }
  0x2c   : > { %p7382_p7 = scmp.ne.s32.totalorder %s422_s17, %s7381_s20  ;;  %p7390_p6 = scmp.lt.s32.totalorder %s7381_s20, %s7381_s20 }
  0x2e   : > { %p7384_p8 = pnand %p7382_p7, %p7685_p0  ;;  %p7391_p5 = por %p7390_p6, %p7389_p9 }
  0x30   : > { %p7385_p11 = pneg %p7384_p8 }
  0x32   : > { %p7392_p10 = pnand %p7391_p5, %p7385_p11 }
  0x34   : > { %7395 = shalt.err (!%p7392_p10)
}
  0x35   : > { %s9002_s18 = smov 64   ;;  %s9003_s27 = smov 4  }
  0x36   : > { %7118 = dma.hbm_to_vmem [thread:$0]  (!%p7671_p12), %s9019_s7, 1152, %s422_s17, [#allocation6], %s9002_s18, %s9002_s18, %s9003_s27  }
  0x37   : > { %s7396_s15 = scalar_lea.hbm %s8976_s3, 288 }
  0x38   : > { %p7397_p5 = scmp.ne.s32.totalorder %s8976_s3, %s7396_s15  ;;  %p7403_p10 = scmp.lt.u32.totalorder %s7396_s15, %s8976_s3 }
  0x3a   : > { %p7399_p6 = pnand %p7397_p5, %p7685_p0 }
  0x3c   : > { %p7400_p9 = pneg %p7399_p6 }
  0x3e   : > { %p7405_p13 = pnand %p7403_p10, %p7400_p9 }
  0x40   : > { %7408 = shalt.err (!%p7405_p13)
}
  0x41   : > { %s7409_s17 = scalar_lea.vmem %s7675_s26, 288  ;;  %p7417_p4 = scmp.lt.s32.totalorder %s7675_s26, %s7675_s26 }
  0x42   : > { %p7410_p1 = scmp.ne.s32.totalorder %s7675_s26, %s7409_s17  ;;  %p7418_p7 = scmp.lt.s32.totalorder %s7409_s17, %s7409_s17 }
  0x44   : > { %p7412_p2 = pnand %p7410_p1, %p7685_p0  ;;  %p7419_p8 = por %p7418_p7, %p7417_p4 }
  0x46   : > { %p7413_p3 = pneg %p7412_p2 }
  0x48   : > { %p7420_p11 = pnand %p7419_p8, %p7413_p3 }
  0x4a   : > { %7423 = shalt.err (!%p7420_p11)
}
  0x4b   : > { %s7528_s28 = smov 32   ;;  %s7529_s14 = smov 2  }
  0x4c   : > { %7115 = dma.hbm_to_vmem [thread:$0]  (!%p7671_p12), %s8976_s3, 288, %s7675_s26, [#allocation3], %s7528_s28, %s7528_s28, %s7529_s14  }
  0x4d   : > { %s7530_s21 = smov [#allocation7]   ;;  %s7424_s20 = scalar_lea.hbm %s8981_s8, 2304 }
  0x4e   : > { %s434_s24 = sshll.u32 %s7530_s21, 4  ;;  %p7425_p5 = scmp.ne.s32.totalorder %s8981_s8, %s7424_s20  ;;  %s435_s24 = int_to_ptr.vmem [resolvable:$true] %s434_s24 }
  0x4f   : > { %p7431_p10 = scmp.lt.u32.totalorder %s7424_s20, %s8981_s8 }
  0x50   : > { %p7427_p6 = pnand %p7425_p5, %p7685_p0 }
  0x52   : > { %p7428_p9 = pneg %p7427_p6 }
  0x54   : > { %p7433_p13 = pnand %p7431_p10, %p7428_p9 }
  0x56   : > { %7436 = shalt.err (!%p7433_p13)
}
  0x57   : > { %s7437_s26 = scalar_lea.vmem %s435_s24, 2304  ;;  %p7445_p4 = scmp.lt.s32.totalorder %s435_s24, %s435_s24 }
  0x58   : > { %p7438_p1 = scmp.ne.s32.totalorder %s435_s24, %s7437_s26  ;;  %p7446_p7 = scmp.lt.s32.totalorder %s7437_s26, %s7437_s26 }
  0x5a   : > { %p7440_p2 = pnand %p7438_p1, %p7685_p0  ;;  %p7447_p8 = por %p7446_p7, %p7445_p4 }
  0x5c   : > { %p7441_p3 = pneg %p7440_p2 }
  0x5e   : > { %p7448_p11 = pnand %p7447_p8, %p7441_p3 }
  0x60   : > { %7451 = shalt.err (!%p7448_p11)
}
  0x61   : > { %s9021_s18 = smov 4   ;;  %s9022_s28 = smov 64  }
  0x62   : > { %7121 = dma.hbm_to_vmem [thread:$0]  (!%p7671_p12), %s8981_s8, 2304, %s435_s24, [#allocation6], %s9022_s28, %s9022_s28, %s9021_s18  }
  0x63   : > { %p9023_p5 = scmp.ne.s32.totalorder %s9017_s30, 0 }
  0x64   : > { %p9024_p0 = scmp.eq.s32.totalorder (!%p9023_p5), %s7635_s22, 0 }
  0x65   : > { %476 = sbr.rel (%p9023_p5) target bundleno = 4880 (0x1310), region = 80 }
  0x6c   : > { %7497 = dma.done.wait (%p9024_p0), [#allocation3], 288   ;;  %p9025_p6 = pmov %p9024_p0 }
  0x6d   : > { %p9026_p9 = pmov %p9024_p0 }
  0x6e   : > { %7499 = vsyncadd (%p9025_p6), [#allocation3], 4294967008 }
  0x6f   : > { %7501 = dma.done.wait (%p9026_p9), [#allocation6], 3456   ;;  %p9027_p10 = pmov %p9024_p0 }
  0x70   : > { %p531_p13 = scmp.lt.s32.totalorder %s7635_s22, 1  ;;  %v7176_v26 = vld [vmem:[%s8974_s1 + $0x44] ss:$8 sps:$4 sm:$0xff]   ;;  %v7174_v50 = vld [vmem:[%s8974_s1 + $0x40] ss:$8 sps:$4 sm:$0xff]   ;;  %vm836_vm0 = vcmask 1041408  }
  0x71   : > { %7503 = vsyncadd (%p9027_p10), [#allocation6], 4294963840  ;;  %784 = vmatprep.mubr.bf16.mxu1 %v7176_v26  ;;  %v7182_v32 = vld [vmem:[%s8974_s1 + $0x4] ss:$8 sps:$4 sm:$0xff]   ;;  %v7180_v51 = vld [vmem:[%s8974_s1] ss:$8 sps:$4 sm:$0xff]  }
  0x72   : > { %s532_s23 = scalar_select %p531_p13, %s7635_s22, 1  ;;  %665 = vmatprep.mubr.bf16.mxu0 %v7182_v32  ;;  %v7177_v52 = vld [vmem:[%s8974_s1 + $0x54] ss:$8 sps:$4 sm:$0xff]   ;;  %v7179_v54 = vld [vmem:[%s8974_s1 + $0x50] ss:$8 sps:$4 sm:$0xff]   ;;  %vm823_vm1 = vcmask 31744  }
  0x73   : > { %v7186_v53 = vld [vmem:[%s8974_s1 + $0x14] ss:$8 sps:$4 sm:$0xff]   ;;  %v7190_v55 = vld [vmem:[%s8974_s1 + $0x10] ss:$8 sps:$4 sm:$0xff]   ;;  %v7183_v56 = vld [vmem:[%s8974_s1 + $0x64] ss:$8 sps:$4 sm:$0xff]  }
  0x74   : > { %s5978_s16 = sshll.u32 %s532_s23, 8  ;;  %v7192_v57 = vld [vmem:[%s8974_s1 + $0x24] ss:$8 sps:$4 sm:$0xff]   ;;  %v7185_v58 = vld [vmem:[%s8974_s1 + $0x60] ss:$8 sps:$4 sm:$0xff]   ;;  %vm7532_vm2 = vmmov 0  }
  0x75   : > { %s7763_s15 = scalar_lea.vmem %s8973_s0, %s5978_s16  ;;  %v7197_v59 = vld [vmem:[%s8974_s1 + $0x20] ss:$8 sps:$4 sm:$0xff]   ;;  %v7188_v60 = vld [vmem:[%s8974_s1 + $0x74] ss:$8 sps:$4 sm:$0xff]   ;;  %v7191_v62 = vld [vmem:[%s8974_s1 + $0x70] ss:$8 sps:$4 sm:$0xff]  }
  0x76   : > { %v553_v0 = vld [vmem:[%s7763_s15 + $0x80] sm:$0xff]  ;;  %v554_v1 = vld [vmem:[%s7763_s15 + $0x88] sm:$0xff]  ;;  %v555_v5 = vld [vmem:[%s7763_s15 + $0x90] sm:$0xff]  ;;  %vm2619_vm11 = vcmask 523264   ;;  %vm2725_vm12 = vcmask 1043456   ;;  %vm2721_vm13 = vcmask 64512  }
  0x77   : > { %v537_v2 = vld [vmem:[%s7763_s15] sm:$0xff]  ;;  %v7768_v3 = vpack.c.bf16 %v554_v1, %v553_v0  ;;  %v538_v4 = vld [vmem:[%s7763_s15 + $0x8] sm:$0xff]  ;;  %v556_v6 = vld [vmem:[%s7763_s15 + $0x98] sm:$0xff]  ;;  %s9028_s26 = sld [smem:[#allocation13_spill]]  ;;  %s9029_s27 = sld [smem:[#allocation21_spill]] }
  0x78   : > { %v7773_v7 = vpack.c.bf16 %v538_v4, %v537_v2  ;;  %v7775_v8 = vpack.c.bf16 %v556_v6, %v555_v5  ;;  %v539_v9 = vld [vmem:[%s7763_s15 + $0x10] sm:$0xff]  ;;  %v540_v10 = vld [vmem:[%s7763_s15 + $0x18] sm:$0xff]  ;;  %v557_v11 = vld [vmem:[%s7763_s15 + $0xa0] sm:$0xff]  ;;  %s9030_s23 = sld [smem:[#allocation18_spill]]  ;;  %s5975_s16 = sshll.u32 %s7635_s22, 4 }
  0x79   : > { %6019 = vmatprep.subr.bf16.mxu1 %v7768_v3  ;;  %v558_v12 = vld [vmem:[%s7763_s15 + $0xa8] sm:$0xff]  ;;  %5979 = vmatprep.subr.bf16.mxu0 %v7768_v3  ;;  %v7784_v13 = vpack.c.bf16 %v540_v10, %v539_v9  ;;  %v541_v15 = vld [vmem:[%s7763_s15 + $0x20] sm:$0xff]  ;;  %v559_v17 = vld [vmem:[%s7763_s15 + $0xb0] sm:$0xff]  ;;  %s9031_s21 = sld [smem:[#allocation22_spill]]  ;;  %s7533_s20 = smov [#allocation8]  }
  0x7a   : > { %6020 = vmatpush3.bf16.msra.mxu1 %v7773_v7  ;;  %5980 = vmatpush3.bf16.msra.mxu0 %v7773_v7  ;;  %v7788_v14 = vpack.c.bf16 %v558_v12, %v557_v11  ;;  %v542_v16 = vld [vmem:[%s7763_s15 + $0x28] sm:$0xff]  ;;  %v560_v18 = vld [vmem:[%s7763_s15 + $0xb8] sm:$0xff]  ;;  %v543_v21 = vld [vmem:[%s7763_s15 + $0x30] sm:$0xff]  ;;  %s7456_s17 = sshll.u32 %s7533_s20, 4  ;;  %s7457_s17 = int_to_ptr.vmem [resolvable:$false] %s7456_s17 }
  0x7b   : > { %6021 = vmatprep.subr.bf16.mxu1 %v7775_v8  ;;  %5981 = vmatprep.subr.bf16.mxu0 %v7775_v8  ;;  %v7796_v19 = vpack.c.bf16 %v542_v16, %v541_v15  ;;  %v7800_v20 = vpack.c.bf16 %v560_v18, %v559_v17  ;;  %v544_v22 = vld [vmem:[%s7763_s15 + $0x38] sm:$0xff]  ;;  %v561_v23 = vld [vmem:[%s7763_s15 + $0xc0] sm:$0xff]  ;;  %v562_v24 = vld [vmem:[%s7763_s15 + $0xc8] sm:$0xff] }
  0x7c   : > { %v545_v25 = vld [vmem:[%s7763_s15 + $0x40] sm:$0xff]  ;;  %v7812_v27 = vpack.c.bf16 %v544_v22, %v543_v21  ;;  %v546_v28 = vld [vmem:[%s7763_s15 + $0x48] sm:$0xff]  ;;  %v7817_v29 = vpack.c.bf16 %v562_v24, %v561_v23  ;;  %v563_v30 = vld [vmem:[%s7763_s15 + $0xd0] sm:$0xff] }
  0x7d   : > { %v564_v31 = vld [vmem:[%s7763_s15 + $0xd8] sm:$0xff]  ;;  %v7826_v33 = vpack.c.bf16 %v546_v28, %v545_v25  ;;  %v547_v34 = vld [vmem:[%s7763_s15 + $0x50] sm:$0xff]  ;;  %v565_v37 = vld [vmem:[%s7763_s15 + $0xe0] sm:$0xff]  ;;  %s529_s18 = sand.u32 1, %s9028_s26   ;;  %s7458_s26 = scalar_lea.vmem %s7457_s17, 32 }
  0x7e   : > { %6022 = vmatpush3.bf16.msra.mxu1 %v7784_v13  ;;  %5982 = vmatpush3.bf16.msra.mxu0 %v7784_v13  ;;  %v7831_v35 = vpack.c.bf16 %v564_v31, %v563_v30  ;;  %v548_v36 = vld [vmem:[%s7763_s15 + $0x58] sm:$0xff]  ;;  %v566_v38 = vld [vmem:[%s7763_s15 + $0xe8] sm:$0xff]  ;;  %v549_v40 = vld [vmem:[%s7763_s15 + $0x60] sm:$0xff]  ;;  %s530_s14 = scalar_lea.vmem [#allocation8], %s529_s18  ;;  %s5557_s22 = scalar_lea.sflag [#allocation4], %s529_s18 }
  0x7f   : > { %6023 = vmatprep.subr.bf16.mxu1 %v7788_v14  ;;  %5983 = vmatprep.subr.bf16.mxu0 %v7788_v14  ;;  %v7838_v39 = vpack.c.bf16 %v548_v36, %v547_v34  ;;  %v550_v41 = vld [vmem:[%s7763_s15 + $0x68] sm:$0xff]  ;;  %v7844_v42 = vpack.c.bf16 %v566_v38, %v565_v37  ;;  %v567_v43 = vld [vmem:[%s7763_s15 + $0xf0] sm:$0xff]  ;;  %v568_v44 = vld [vmem:[%s7763_s15 + $0xf8] sm:$0xff]  ;;  %s5569_s30 = sshll.u32 %s530_s14, 4  ;;  %s9032_s24 = smov %s9031_s21  ;;  %s8933_s30 = int_to_ptr.vmem [resolvable:$true] %s5569_s30 }
  0x80   : > { %v7850_v45 = vpack.c.bf16 %v550_v41, %v549_v40  ;;  %v551_v46 = vld [vmem:[%s7763_s15 + $0x70] sm:$0xff]  ;;  %v7855_v47 = vpack.c.bf16 %v568_v44, %v567_v43  ;;  %v552_v48 = vld [vmem:[%s7763_s15 + $0x78] sm:$0xff]  ;;  %v7196_v0 = vld [vmem:[%s8974_s1 + $0x84] ss:$8 sps:$4 sm:$0xff]   ;;  %s8931_s29 = scalar_lea.hbm %s9031_s21, %s5975_s16  ;;  %s7452_s25 = scalar_lea.vmem %s8933_s30, 16 }
  0x81   : > { %v7860_v49 = vpack.c.bf16 %v552_v48, %v551_v46  ;;  %v7198_v61 = vld [vmem:[%s8974_s1 + $0x34] ss:$8 sps:$4 sm:$0xff]   ;;  %v7202_v63 = vld [vmem:[%s8974_s1 + $0x30] ss:$8 sps:$4 sm:$0xff]   ;;  %v7194_v1 = vld [vmem:[%s8974_s1 + $0x80] ss:$8 sps:$4 sm:$0xff]   ;;  %p7453_p12 = scmp.ne.s32.totalorder %s8933_s30, %s7452_s25  ;;  %p7459_p4 = scmp.lt.s32.totalorder %s8933_s30, %s7457_s17 }
  0x82   : > { %6024 = vmatpush3.bf16.msra.mxu1 %v7796_v19  ;;  %5984 = vmatpush3.bf16.msra.mxu0 %v7796_v19  ;;  %v7200_v2 = vld [vmem:[%s8974_s1 + $0x94] ss:$8 sps:$4 sm:$0xff]   ;;  %v7203_v4 = vld [vmem:[%s8974_s1 + $0x90] ss:$8 sps:$4 sm:$0xff]   ;;  %v7204_v5 = vld [vmem:[%s8974_s1 + $0xa4] ss:$8 sps:$4 sm:$0xff]   ;;  %p7460_p7 = scmp.lt.s32.totalorder %s7458_s26, %s7452_s25 }
  0x83   : > { %6025 = vmatprep.subr.bf16.mxu1 %v7800_v20  ;;  %5985 = vmatprep.subr.bf16.mxu0 %v7800_v20  ;;  %v7206_v6 = vld [vmem:[%s8974_s1 + $0xa0] ss:$8 sps:$4 sm:$0xff]   ;;  %v7207_v9 = vld [vmem:[%s8974_s1 + $0xb4] ss:$8 sps:$4 sm:$0xff]   ;;  %v7209_v10 = vld [vmem:[%s8974_s1 + $0xb0] ss:$8 sps:$4 sm:$0xff]  }
  0x84   : > { %v7212_v11 = vld [vmem:[%s8974_s1 + $0xc4] ss:$8 sps:$4 sm:$0xff]   ;;  %v7210_v12 = vld [vmem:[%s8974_s1 + $0xc0] ss:$8 sps:$4 sm:$0xff]   ;;  %v7213_v15 = vld [vmem:[%s8974_s1 + $0xd4] ss:$8 sps:$4 sm:$0xff]   ;;  %p7461_p8 = por %p7460_p7, %p7459_p4 }
  0x85   : > { %v7215_v16 = vld [vmem:[%s8974_s1 + $0xd0] ss:$8 sps:$4 sm:$0xff]   ;;  %v7216_v17 = vld [vmem:[%s8974_s1 + $0xe4] ss:$8 sps:$4 sm:$0xff]   ;;  %v7218_v18 = vld [vmem:[%s8974_s1 + $0xe0] ss:$8 sps:$4 sm:$0xff]  }
  0x86   : > { %6026 = vmatpush3.bf16.msra.mxu1 %v7812_v27  ;;  %5986 = vmatpush3.bf16.msra.mxu0 %v7812_v27  ;;  %v7219_v21 = vld [vmem:[%s8974_s1 + $0xf4] ss:$8 sps:$4 sm:$0xff]   ;;  %v7221_v22 = vld [vmem:[%s8974_s1 + $0xf0] ss:$8 sps:$4 sm:$0xff]   ;;  %v7224_v23 = vld [vmem:[%s8974_s1 + $0x104] ss:$8 sps:$4 sm:$0xff]  }
  0x87   : > { %6027 = vmatprep.subr.bf16.mxu1 %v7817_v29  ;;  %5987 = vmatprep.subr.bf16.mxu0 %v7817_v29  ;;  %v7222_v24 = vld [vmem:[%s8974_s1 + $0x100] ss:$8 sps:$4 sm:$0xff]   ;;  %v7225_v25 = vld [vmem:[%s8974_s1 + $0x114] ss:$8 sps:$4 sm:$0xff]   ;;  %v7227_v30 = vld [vmem:[%s8974_s1 + $0x110] ss:$8 sps:$4 sm:$0xff]  }
  0x88   : > { %v5691_v26 = vld [vmem:[%s8978_s5 + $0x2] sm:$0x3]  ;;  %v7228_v31 = vld [vmem:[%s8974_s1 + $0x124] ss:$8 sps:$4 sm:$0xff]   ;;  %v7231_v34 = vld [vmem:[%s8974_s1 + $0x134] ss:$8 sps:$4 sm:$0xff]  }
  0x89   : > { %v838_v28 = vsel %vm836_vm0, %v5691_v26, 0  ;;  %v7230_v32 = vld [vmem:[%s8974_s1 + $0x120] ss:$8 sps:$4 sm:$0xff]   ;;  %v7233_v36 = vld [vmem:[%s8974_s1 + $0x130] ss:$8 sps:$4 sm:$0xff]   ;;  %p9033_p1 = scmp.ne.s32.totalorder %s9030_s23, 0 }
  0x8a   : > { %6028 = vmatpush3.bf16.msra.mxu1 %v7826_v33  ;;  %5988 = vmatpush3.bf16.msra.mxu0 %v7826_v33  ;;  %v702_v37 = vld [vmem:[%s8978_s5] sm:$0x3]  ;;  %v7236_v38 = vld [vmem:[%s8974_s1 + $0x184] ss:$8 sps:$4 sm:$0xff]  }
  0x8b   : > { %6029 = vmatprep.subr.bf16.mxu1 %v7831_v35  ;;  %5989 = vmatprep.subr.bf16.mxu0 %v7831_v35  ;;  %v7234_v40 = vld [vmem:[%s8974_s1 + $0x180] ss:$8 sps:$4 sm:$0xff]   ;;  %p7454_p2 = pnand %p7453_p12, %p9033_p1 }
  0x8d   : > { %p7455_p3 = pneg %p7454_p2 }
  0x8e   : > { %6030 = vmatpush3.bf16.msra.mxu1 %v7838_v39  ;;  %5990 = vmatpush3.bf16.msra.mxu0 %v7838_v39 }
  0x8f   : > { %6031 = vmatprep.subr.bf16.mxu1 %v7844_v42  ;;  %5991 = vmatprep.subr.bf16.mxu0 %v7844_v42  ;;  %p7462_p11 = pnand %p7461_p8, %p7455_p3 }
  0x92   : > { %6032 = vmatpush3.bf16.msra.mxu1 %v7850_v45  ;;  %5992 = vmatpush3.bf16.msra.mxu0 %v7850_v45 }
  0x93   : > { %6033 = vmatprep.subr.bf16.mxu1 %v7855_v47  ;;  %5993 = vmatprep.subr.bf16.mxu0 %v7855_v47 }
  0x96   : > { %6034 = vmatpush3.bf16.msra.mxu1 %v7860_v49  ;;  %5994 = vmatpush3.bf16.msra.mxu0 %v7860_v49 }
  0x97   : > { %6069 = vmatprep.subr.bf16.mxu1 %v7768_v3  ;;  %7089 = vmatprep.subr.msk.bf16.mxu0 %vm836_vm0, %v5691_v26  ;;  %v7248_v26 = vld [vmem:[%s8974_s1 + $0x1b4] ss:$8 sps:$4 sm:$0xff]  }
  0x99   : > { %785 = vmatmul.mubr.bf16.vlgmr.msra.gmra.mrb[0].mxu1 %v7174_v50  ;;  %666 = vmatmul.mubr.bf16.vlgmr.msra.gmra.mrb[0].mxu0 %v7180_v51 }
  0x9a   : > { %6070 = vmatpush3.bf16.msra.mxu1 %v7773_v7  ;;  %792 = vmatprep.mubr.bf16.mxu1 %v7177_v52 }
  0x9b   : > { %6071 = vmatprep.subr.bf16.mxu1 %v7775_v8  ;;  %673 = vmatprep.mubr.bf16.mxu0 %v7186_v53  ;;  %v7237_v53 = vld [vmem:[%s8974_s1 + $0x194] ss:$8 sps:$4 sm:$0xff]  }
  0x9c   : > { %6532 = vmatpush3.bf16.msra.mxu0 %v838_v28 }
  0x9d   : > { %7090 = vmatprep.subr.msk.bf16.mxu0 %vm836_vm0, %v702_v37 }
  0x9e   : > { %6072 = vmatpush3.bf16.msra.mxu1 %v7784_v13 }
  0x9f   : > { %6073 = vmatprep.subr.bf16.mxu1 %v7788_v14 }
  0xa1   : > { %793 = vmatmul.mubr.bf16.gmra.mrb[4].mxu1 %v7179_v54  ;;  %674 = vmatmul.mubr.bf16.gmra.mrb[4].mxu0 %v7190_v55 }
  0xa2   : > { %6074 = vmatpush3.bf16.msra.mxu1 %v7796_v19  ;;  %800 = vmatprep.mubr.bf16.mxu1 %v7183_v56  ;;  %v7239_v56 = vld [vmem:[%s8974_s1 + $0x190] ss:$8 sps:$4 sm:$0xff]  }
  0xa3   : > { %6075 = vmatprep.subr.bf16.mxu1 %v7800_v20  ;;  %681 = vmatprep.mubr.bf16.mxu0 %v7192_v57 }
  0xa6   : > { %6076 = vmatpush3.bf16.msra.mxu1 %v7812_v27 }
  0xa7   : > { %6077 = vmatprep.subr.bf16.mxu1 %v7817_v29 }
  0xa9   : > { %801 = vmatmul.mubr.bf16.gmra.mrb[8].mxu1 %v7185_v58  ;;  %682 = vmatmul.mubr.bf16.gmra.mrb[8].mxu0 %v7197_v59 }
  0xaa   : > { %6078 = vmatpush3.bf16.msra.mxu1 %v7826_v33  ;;  %808 = vmatprep.mubr.bf16.mxu1 %v7188_v60 }
  0xab   : > { %6079 = vmatprep.subr.bf16.mxu1 %v7831_v35  ;;  %689 = vmatprep.mubr.bf16.mxu0 %v7198_v61 }
  0xae   : > { %6080 = vmatpush3.bf16.msra.mxu1 %v7838_v39 }
  0xaf   : > { %6081 = vmatprep.subr.bf16.mxu1 %v7844_v42 }
  0xb1   : > { %809 = vmatmul.mubr.bf16.gmra.mrb[12].mxu1 %v7191_v62  ;;  %690 = vmatmul.mubr.bf16.gmra.mrb[12].mxu0 %v7202_v63 }
  0xb2   : > { %6082 = vmatpush3.bf16.msra.mxu1 %v7850_v45  ;;  %1066 = vmatprep.mubr.bf16.mxu1 %v7196_v0 }
  0xb3   : > { %6083 = vmatprep.subr.bf16.mxu1 %v7855_v47 }
  0xb6   : > { %6084 = vmatpush3.bf16.msra.mxu1 %v7860_v49 }
  0xb7   : > { %6114 = vmatprep.subr.bf16.mxu1 %v7768_v3 }
  0xb9   : > { %1067 = vmatmul.mubr.bf16.vlgmr.msra.gmra.mrb[16].mxu1 %v7194_v1 }
  0xba   : > { %6115 = vmatpush3.bf16.msra.mxu1 %v7773_v7  ;;  %1074 = vmatprep.mubr.bf16.mxu1 %v7200_v2 }
  0xbb   : > { %6116 = vmatprep.subr.bf16.mxu1 %v7775_v8 }
  0xbe   : > { %6117 = vmatpush3.bf16.msra.mxu1 %v7784_v13 }
  0xbf   : > { %6118 = vmatprep.subr.bf16.mxu1 %v7788_v14 }
  0xc1   : > { %1075 = vmatmul.mubr.bf16.gmra.mrb[20].mxu1 %v7203_v4 }
  0xc2   : > { %6119 = vmatpush3.bf16.msra.mxu1 %v7796_v19  ;;  %1082 = vmatprep.mubr.bf16.mxu1 %v7204_v5 }
  0xc3   : > { %6120 = vmatprep.subr.bf16.mxu1 %v7800_v20 }
  0xc6   : > { %6121 = vmatpush3.bf16.msra.mxu1 %v7812_v27 }
  0xc7   : > { %6122 = vmatprep.subr.bf16.mxu1 %v7817_v29 }
  0xc9   : > { %1083 = vmatmul.mubr.bf16.gmra.mrb[24].mxu1 %v7206_v6  ;;  %v7243_v6 = vld [vmem:[%s8974_s1 + $0x1a4] ss:$8 sps:$4 sm:$0xff]  }
  0xca   : > { %6123 = vmatpush3.bf16.msra.mxu1 %v7826_v33  ;;  %1090 = vmatprep.mubr.bf16.mxu1 %v7207_v9 }
  0xcb   : > { %6124 = vmatprep.subr.bf16.mxu1 %v7831_v35 }
  0xce   : > { %6125 = vmatpush3.bf16.msra.mxu1 %v7838_v39 }
  0xcf   : > { %6126 = vmatprep.subr.bf16.mxu1 %v7844_v42 }
  0xd1   : > { %1091 = vmatmul.mubr.bf16.gmra.mrb[28].mxu1 %v7209_v10 }
  0xd2   : > { %6127 = vmatpush3.bf16.msra.mxu1 %v7850_v45  ;;  %1274 = vmatprep.mubr.bf16.mxu1 %v7212_v11  ;;  %v7245_v11 = vld [vmem:[%s8974_s1 + $0x1a0] ss:$8 sps:$4 sm:$0xff]  }
  0xd3   : > { %6128 = vmatprep.subr.bf16.mxu1 %v7855_v47 }
  0xd6   : > { %6129 = vmatpush3.bf16.msra.mxu1 %v7860_v49 }
  0xd7   : > { %6159 = vmatprep.subr.bf16.mxu1 %v7768_v3 }
  0xd9   : > { %1275 = vmatmul.mubr.bf16.vlgmr.msra.gmra.mrb[32].mxu1 %v7210_v12 }
  0xda   : > { %6160 = vmatpush3.bf16.msra.mxu1 %v7773_v7  ;;  %1282 = vmatprep.mubr.bf16.mxu1 %v7213_v15 }
  0xdb   : > { %6161 = vmatprep.subr.bf16.mxu1 %v7775_v8 }
  0xde   : > { %6162 = vmatpush3.bf16.msra.mxu1 %v7784_v13 }
  0xdf   : > { %6163 = vmatprep.subr.bf16.mxu1 %v7788_v14 }
  0xe1   : > { %1283 = vmatmul.mubr.bf16.gmra.mrb[36].mxu1 %v7215_v16 }
  0xe2   : > { %6164 = vmatpush3.bf16.msra.mxu1 %v7796_v19  ;;  %1290 = vmatprep.mubr.bf16.mxu1 %v7216_v17 }
  0xe3   : > { %6165 = vmatprep.subr.bf16.mxu1 %v7800_v20 }
  0xe6   : > { %6166 = vmatpush3.bf16.msra.mxu1 %v7812_v27 }
  0xe7   : > { %6167 = vmatprep.subr.bf16.mxu1 %v7817_v29 }
  0xe9   : > { %1291 = vmatmul.mubr.bf16.gmra.mrb[40].mxu1 %v7218_v18  ;;  %v918_v18 = vsel %vm836_vm0, %v702_v37, 0  ;;  %v7251_v37 = vld [vmem:[%s8974_s1 + $0x1b0] ss:$8 sps:$4 sm:$0xff]  }
  0xea   : > { %6168 = vmatpush3.bf16.msra.mxu1 %v7826_v33  ;;  %1298 = vmatprep.mubr.bf16.mxu1 %v7219_v21  ;;  %v8099_v21 = vld [vmem:[%s8978_s5 + $0x4] sm:$0x3] }
  0xeb   : > { %6169 = vmatprep.subr.bf16.mxu1 %v7831_v35 }
  0xee   : > { %6170 = vmatpush3.bf16.msra.mxu1 %v7838_v39 }
  0xef   : > { %6171 = vmatprep.subr.bf16.mxu1 %v7844_v42 }
  0xf1   : > { %1299 = vmatmul.mubr.bf16.gmra.mrb[44].mxu1 %v7221_v22 }
  0xf2   : > { %6172 = vmatpush3.bf16.msra.mxu1 %v7850_v45  ;;  %1482 = vmatprep.mubr.bf16.mxu1 %v7224_v23 }
  0xf3   : > { %6173 = vmatprep.subr.bf16.mxu1 %v7855_v47 }
  0xf6   : > { %6174 = vmatpush3.bf16.msra.mxu1 %v7860_v49 }
  0xf7   : > { %6249 = vmatprep.subr.bf16.mxu1 %v7768_v3 }
  0xf9   : > { %1483 = vmatmul.mubr.bf16.vlgmr.msra.gmra.mrb[48].mxu1 %v7222_v24 }
  0xfa   : > { %1490 = vmatprep.mubr.bf16.mxu1 %v7225_v25  ;;  %6250 = vmatpush3.bf16.msra.mxu1 %v7773_v7 }
  0xfb   : > { %6251 = vmatprep.subr.bf16.mxu1 %v7775_v8 }
  0xfe   : > { %6252 = vmatpush3.bf16.msra.mxu1 %v7784_v13 }
  0xff   : > { %6253 = vmatprep.subr.bf16.mxu1 %v7788_v14 }
 0x101   : > { %1491 = vmatmul.mubr.bf16.gmra.mrb[52].mxu1 %v7227_v30 }
 0x102   : > { %1498 = vmatprep.mubr.bf16.mxu1 %v7228_v31  ;;  %6254 = vmatpush3.bf16.msra.mxu1 %v7796_v19 }
 0x103   : > { %6255 = vmatprep.subr.bf16.mxu1 %v7800_v20 }
 0x106   : > { %6256 = vmatpush3.bf16.msra.mxu1 %v7812_v27 }
 0x107   : > { %6257 = vmatprep.subr.bf16.mxu1 %v7817_v29 }
 0x109   : > { %1499 = vmatmul.mubr.bf16.gmra.mrb[56].mxu1 %v7230_v32 }
 0x10a   : > { %1506 = vmatprep.mubr.bf16.mxu1 %v7231_v34  ;;  %6258 = vmatpush3.bf16.msra.mxu1 %v7826_v33 }
 0x10b   : > { %6259 = vmatprep.subr.bf16.mxu1 %v7831_v35 }
 0x10e   : > { %6260 = vmatpush3.bf16.msra.mxu1 %v7838_v39 }
 0x10f   : > { %6261 = vmatprep.subr.bf16.mxu1 %v7844_v42 }
 0x111   : > { %1507 = vmatmul.mubr.bf16.gmra.mrb[60].mxu1 %v7233_v36 }
 0x112   : > { %6262 = vmatpush3.bf16.msra.mxu1 %v7850_v45  ;;  %1898 = vmatprep.mubr.bf16.mxu1 %v7236_v38 }
 0x113   : > { %6263 = vmatprep.subr.bf16.mxu1 %v7855_v47 }
 0x116   : > { %6264 = vmatpush3.bf16.msra.mxu1 %v7860_v49 }
 0x117   : > { %6294 = vmatprep.subr.bf16.mxu1 %v7768_v3 }
 0x119   : > { %1899 = vmatmul.mubr.bf16.vlgmr.msra.gmra.mrb[64].mxu1 %v7234_v40 }
 0x11a   : > { %6295 = vmatpush3.bf16.msra.mxu1 %v7773_v7  ;;  %1906 = vmatprep.mubr.bf16.mxu1 %v7237_v53  ;;  %v7256_v53 = vld [vmem:[%s8974_s1 + $0x1c4] ss:$8 sps:$4 sm:$0xff]  }
 0x11b   : > { %6296 = vmatprep.subr.bf16.mxu1 %v7775_v8 }
 0x11e   : > { %6297 = vmatpush3.bf16.msra.mxu1 %v7784_v13 }
 0x11f   : > { %6298 = vmatprep.subr.bf16.mxu1 %v7788_v14 }
 0x121   : > { %1907 = vmatmul.mubr.bf16.gmra.mrb[68].mxu1 %v7239_v56 }
 0x122   : > { %6299 = vmatpush3.bf16.msra.mxu1 %v7796_v19  ;;  %1914 = vmatprep.mubr.bf16.mxu1 %v7243_v6  ;;  %v7260_v6 = vld [vmem:[%s8974_s1 + $0x1d4] ss:$8 sps:$4 sm:$0xff]  }
 0x123   : > { %6300 = vmatprep.subr.bf16.mxu1 %v7800_v20 }
 0x126   : > { %6301 = vmatpush3.bf16.msra.mxu1 %v7812_v27 }
 0x127   : > { %6302 = vmatprep.subr.bf16.mxu1 %v7817_v29 }
 0x129   : > { %1915 = vmatmul.mubr.bf16.gmra.mrb[72].mxu1 %v7245_v11 }
 0x12a   : > { %6303 = vmatpush3.bf16.msra.mxu1 %v7826_v33  ;;  %1922 = vmatprep.mubr.bf16.mxu1 %v7248_v26 }
 0x12b   : > { %6304 = vmatprep.subr.bf16.mxu1 %v7831_v35 }
 0x12e   : > { %6305 = vmatpush3.bf16.msra.mxu1 %v7838_v39 }
 0x12f   : > { %6306 = vmatprep.subr.bf16.mxu1 %v7844_v42 }
 0x131   : > { %1923 = vmatmul.mubr.bf16.gmra.mrb[76].mxu1 %v7251_v37 }
 0x132   : > { %6307 = vmatpush3.bf16.msra.mxu1 %v7850_v45  ;;  %2106 = vmatprep.mubr.bf16.mxu1 %v7256_v53  ;;  %v7273_v53 = vld [vmem:[%s8974_s1 + $0x214] ss:$8 sps:$4 sm:$0xff]  }
 0x133   : > { %6308 = vmatprep.subr.bf16.mxu1 %v7855_v47 }
 0x136   : > { %6309 = vmatpush3.bf16.msra.mxu1 %v7860_v49 }
 0x137   : > { %6339 = vmatprep.subr.bf16.mxu1 %v7768_v3 }
 0x16c   : > { %v6035_v41 = vpop.f32.mrb[0].mxu1  ;;  %v5995_v43 = vpop.f32.mrb[0].mxu0 }
 0x16d   : > { %v6036_v44 = vpop.f32.mrb[1].mxu1  ;;  %v5996_v46 = vpop.f32.mrb[1].mxu0 }
 0x16e   : > { %v6037_v48 = vadd.f32 %v6036_v44, %v6035_v41  ;;  %v6038_v50 = vpop.f32.mrb[2].mxu1  ;;  %v8063_v51 = vadd.f32 %v5996_v46, %v5995_v43  ;;  %v5998_v52 = vpop.f32.mrb[2].mxu0 }
 0x16f   : > { %v6039_v54 = vpop.f32.mrb[3].mxu1  ;;  %v5999_v55 = vpop.f32.mrb[3].mxu0 }
 0x170   : > { %v6040_v57 = vadd.f32 %v6039_v54, %v6038_v50  ;;  %v8073_v58 = vadd.f32 %v5999_v55, %v5998_v52  ;;  %v7254_v52 = vld [vmem:[%s8974_s1 + $0x1c0] ss:$8 sps:$4 sm:$0xff]  }
 0x171   : > { %2107 = vmatmul.mubr.bf16.vlgmr.msra.gmra.mrb[80].mxu1 %v7254_v52 }
 0x172   : > { %v817_v59 = vpack.c.bf16 %v6040_v57, %v6037_v48  ;;  %v698_v60 = vpack.c.bf16 %v8073_v58, %v8063_v51  ;;  %6340 = vmatpush3.bf16.msra.mxu1 %v7773_v7  ;;  %2114 = vmatprep.mubr.bf16.mxu1 %v7260_v6  ;;  %v1118_v58 = vsel %vm836_vm0, %v8099_v21, 0 }
 0x173   : > { %6341 = vmatprep.subr.bf16.mxu1 %v7775_v8 }
 0x174   : > { %v6041_v61 = vpop.f32.mrb[4].mxu1  ;;  %6533 = vmatprep.mubr.msk.bf16.mxu0 %vm823_vm1, %v817_v59  ;;  %v6001_v62 = vpop.f32.mrb[4].mxu0 }
 0x175   : > { %v6042_v63 = vpop.f32.mrb[5].mxu1  ;;  %v6002_v0 = vpop.f32.mrb[5].mxu0 }
 0x176   : > { %v6043_v1 = vadd.f32 %v6042_v63, %v6041_v61  ;;  %v6044_v2 = vpop.f32.mrb[6].mxu1  ;;  %v8080_v4 = vadd.f32 %v6002_v0, %v6001_v62  ;;  %v6004_v5 = vpop.f32.mrb[6].mxu0  ;;  %6342 = vmatpush3.bf16.msra.mxu1 %v7784_v13 }
 0x177   : > { %v6045_v9 = vpop.f32.mrb[7].mxu1  ;;  %v6005_v10 = vpop.f32.mrb[7].mxu0  ;;  %6343 = vmatprep.subr.bf16.mxu1 %v7788_v14 }
 0x178   : > { %v6046_v12 = vadd.f32 %v6045_v9, %v6044_v2  ;;  %v8090_v15 = vadd.f32 %v6005_v10, %v6004_v5 }
 0x17a   : > { %v818_v16 = vpack.c.bf16 %v6046_v12, %v6043_v1  ;;  %v699_v17 = vpack.c.bf16 %v8090_v15, %v8080_v4  ;;  %v7263_v12 = vld [vmem:[%s8974_s1 + $0x1d0] ss:$8 sps:$4 sm:$0xff]   ;;  %6344 = vmatpush3.bf16.msra.mxu1 %v7796_v19  ;;  %v7267_v4 = vld [vmem:[%s8974_s1 + $0x1f4] ss:$8 sps:$4 sm:$0xff]  }
 0x17b   : > { %2115 = vmatmul.mubr.bf16.gmra.mrb[84].mxu1 %v7263_v12  ;;  %6345 = vmatprep.subr.bf16.mxu1 %v7800_v20 }
 0x17c   : > { %v6047_v22 = vpop.f32.mrb[8].mxu1  ;;  %6534 = vmatmul.mubr.msk.bf16.vlgmr.msra.gmra.mrb[16].mxu0 %vm823_vm1, %v818_v16  ;;  %v6007_v23 = vpop.f32.mrb[8].mxu0 }
 0x17d   : > { %v6048_v24 = vpop.f32.mrb[9].mxu1  ;;  %v6008_v25 = vpop.f32.mrb[9].mxu0  ;;  %6542 = vmatpush3.bf16.msra.mxu0 %v918_v18 }
 0x17e   : > { %v6049_v28 = vadd.f32 %v6048_v24, %v6047_v22  ;;  %v6050_v30 = vpop.f32.mrb[10].mxu1  ;;  %v8106_v31 = vadd.f32 %v6008_v25, %v6007_v23  ;;  %v6010_v32 = vpop.f32.mrb[10].mxu0  ;;  %7091 = vmatprep.subr.msk.bf16.mxu0 %vm836_vm0, %v8099_v21  ;;  %v7264_v22 = vld [vmem:[%s8974_s1 + $0x1e4] ss:$8 sps:$4 sm:$0xff]   ;;  %v7266_v21 = vld [vmem:[%s8974_s1 + $0x1e0] ss:$8 sps:$4 sm:$0xff]   ;;  %6346 = vmatpush3.bf16.msra.mxu1 %v7812_v27 }
 0x17f   : > { %v6051_v34 = vpop.f32.mrb[11].mxu1  ;;  %v6011_v36 = vpop.f32.mrb[11].mxu0  ;;  %2122 = vmatprep.mubr.bf16.mxu1 %v7264_v22  ;;  %6347 = vmatprep.subr.bf16.mxu1 %v7817_v29 }
 0x180   : > { %v6052_v38 = vadd.f32 %v6051_v34, %v6050_v30  ;;  %v6012_v40 = vadd.f32 %v6011_v36, %v6010_v32  ;;  %v7272_v36 = vld [vmem:[%s8974_s1 + $0x204] ss:$8 sps:$4 sm:$0xff]  }
 0x182   : > { %v819_v41 = vpack.c.bf16 %v6052_v38, %v6049_v28  ;;  %v700_v43 = vpack.c.bf16 %v6012_v40, %v8106_v31  ;;  %6348 = vmatpush3.bf16.msra.mxu1 %v7826_v33  ;;  %v7269_v31 = vld [vmem:[%s8974_s1 + $0x1f0] ss:$8 sps:$4 sm:$0xff]  }
 0x183   : > { %2123 = vmatmul.mubr.bf16.gmra.mrb[88].mxu1 %v7266_v21  ;;  %6349 = vmatprep.subr.bf16.mxu1 %v7831_v35  ;;  %v7281_v21 = vld [vmem:[%s8974_s1 + $0x230] ss:$8 sps:$4 sm:$0xff]  }
 0x184   : > { %v6053_v44 = vpop.f32.mrb[12].mxu1  ;;  %6537 = vmatprep.mubr.msk.bf16.mxu0 %vm823_vm1, %v819_v41  ;;  %v6013_v46 = vpop.f32.mrb[12].mxu0  ;;  %2130 = vmatprep.mubr.bf16.mxu1 %v7267_v4 }
 0x185   : > { %v6054_v48 = vpop.f32.mrb[13].mxu1  ;;  %v6014_v50 = vpop.f32.mrb[13].mxu0 }
 0x186   : > { %v6055_v54 = vadd.f32 %v6054_v48, %v6053_v44  ;;  %v6056_v55 = vpop.f32.mrb[14].mxu1  ;;  %v6015_v56 = vadd.f32 %v6014_v50, %v6013_v46  ;;  %v6016_v57 = vpop.f32.mrb[14].mxu0  ;;  %6350 = vmatpush3.bf16.msra.mxu1 %v7838_v39  ;;  %v7270_v48 = vld [vmem:[%s8974_s1 + $0x200] ss:$8 sps:$4 sm:$0xff]  }
 0x187   : > { %v6057_v59 = vpop.f32.mrb[15].mxu1  ;;  %v6017_v61 = vpop.f32.mrb[15].mxu0  ;;  %6351 = vmatprep.subr.bf16.mxu1 %v7844_v42 }
 0x188   : > { %v6058_v62 = vadd.f32 %v6057_v59, %v6056_v55  ;;  %v6018_v63 = vadd.f32 %v6017_v61, %v6016_v57  ;;  %v7275_v61 = vld [vmem:[%s8974_s1 + $0x210] ss:$8 sps:$4 sm:$0xff]  }
 0x18a   : > { %v820_v0 = vpack.c.bf16 %v6058_v62, %v6055_v54  ;;  %v701_v1 = vpack.c.bf16 %v6018_v63, %v6015_v56  ;;  %6352 = vmatpush3.bf16.msra.mxu1 %v7850_v45 }
 0x18b   : > { %2131 = vmatmul.mubr.bf16.gmra.mrb[92].mxu1 %v7269_v31  ;;  %6353 = vmatprep.subr.bf16.mxu1 %v7855_v47 }
 0x18c   : > { %6538 = vmatmul.mubr.msk.bf16.gmra.mrb[20].mxu0 %vm823_vm1, %v820_v0  ;;  %v6085_v2 = vpop.f32.mrb[16].mxu1  ;;  %2314 = vmatprep.mubr.bf16.mxu1 %v7272_v36  ;;  %v7276_v0 = vld [vmem:[%s8974_s1 + $0x224] ss:$8 sps:$4 sm:$0xff]  }
 0x18d   : > { %v6086_v5 = vpop.f32.mrb[17].mxu1  ;;  %6543 = vmatprep.mubr.msk.bf16.mxu0 %vm823_vm1, %v698_v60  ;;  %v5737_v60 = vld [vmem:[%s8978_s5 + $0x6] sm:$0x3] }
 0x18e   : > { %v6087_v9 = vadd.f32 %v6086_v5, %v6085_v2  ;;  %v6088_v10 = vpop.f32.mrb[18].mxu1  ;;  %v1326_v41 = vsel %vm836_vm0, %v5737_v60, 0  ;;  %6354 = vmatpush3.bf16.msra.mxu1 %v7860_v49 }
 0x18f   : > { %v6089_v11 = vpop.f32.mrb[19].mxu1 }
 0x190   : > { %v6090_v16 = vadd.f32 %v6089_v11, %v6088_v10  ;;  %v7278_v10 = vld [vmem:[%s8974_s1 + $0x220] ss:$8 sps:$4 sm:$0xff]  }
 0x192   : > { %v1099_v51 = vpack.c.bf16 %v6090_v16, %v6087_v9  ;;  %v7279_v16 = vld [vmem:[%s8974_s1 + $0x234] ss:$8 sps:$4 sm:$0xff]  }
 0x193   : > { %2315 = vmatmul.mubr.bf16.vlgmr.msra.gmra.mrb[96].mxu1 %v7270_v48 }
 0x194   : > { %6544 = vmatmul.mubr.msk.bf16.vlgmr.msra.gmra.mrb[16].mxu0 %vm823_vm1, %v699_v17  ;;  %v6091_v18 = vpop.f32.mrb[20].mxu1  ;;  %2322 = vmatprep.mubr.bf16.mxu1 %v7273_v53 }
 0x195   : > { %v6092_v23 = vpop.f32.mrb[21].mxu1  ;;  %6547 = vmatprep.mubr.msk.bf16.mxu0 %vm823_vm1, %v700_v43  ;;  %6552 = vmatpush3.bf16.msra.mxu0 %v1118_v58  ;;  %v5758_v43 = vld [vmem:[%s8978_s5 + $0x8] sm:$0x3] }
 0x196   : > { %v6093_v24 = vadd.f32 %v6092_v23, %v6091_v18  ;;  %v6094_v25 = vpop.f32.mrb[22].mxu1  ;;  %7092 = vmatprep.subr.msk.bf16.mxu0 %vm836_vm0, %v5737_v60  ;;  %v1534_v18 = vsel %vm836_vm0, %v5758_v43, 0 }
 0x197   : > { %v6095_v15 = vpop.f32.mrb[23].mxu1 }
 0x198   : > { %v6096_v17 = vadd.f32 %v6095_v15, %v6094_v25 }
 0x19a   : > { %v1100_v26 = vpack.c.bf16 %v6096_v17, %v6093_v24 }
 0x19b   : > { %2323 = vmatmul.mubr.bf16.gmra.mrb[100].mxu1 %v7275_v61 }
 0x19c   : > { %6548 = vmatmul.mubr.msk.bf16.gmra.mrb[20].mxu0 %vm823_vm1, %v701_v1  ;;  %v6097_v28 = vpop.f32.mrb[24].mxu1  ;;  %2330 = vmatprep.mubr.bf16.mxu1 %v7276_v0 }
 0x19d   : > { %v6098_v30 = vpop.f32.mrb[25].mxu1  ;;  %6553 = vmatprep.mubr.msk.bf16.mxu0 %vm823_vm1, %v1099_v51 }
 0x19e   : > { %v6099_v32 = vadd.f32 %v6098_v30, %v6097_v28  ;;  %v6100_v34 = vpop.f32.mrb[26].mxu1 }
 0x19f   : > { %v6101_v37 = vpop.f32.mrb[27].mxu1 }
 0x1a0   : > { %v6102_v38 = vadd.f32 %v6101_v37, %v6100_v34 }
 0x1a2   : > { %v1101_v40 = vpack.c.bf16 %v6102_v38, %v6099_v32 }
 0x1a3   : > { %2331 = vmatmul.mubr.bf16.gmra.mrb[104].mxu1 %v7278_v10 }
 0x1a4   : > { %v6103_v44 = vpop.f32.mrb[28].mxu1  ;;  %6554 = vmatmul.mubr.msk.bf16.vlgmr.msra.gmra.mrb[16].mxu0 %vm823_vm1, %v1100_v26  ;;  %2338 = vmatprep.mubr.bf16.mxu1 %v7279_v16 }
 0x1a5   : > { %v6104_v46 = vpop.f32.mrb[29].mxu1  ;;  %6557 = vmatprep.mubr.msk.bf16.mxu0 %vm823_vm1, %v1101_v40  ;;  %6562 = vmatpush3.bf16.msra.mxu0 %v1326_v41 }
 0x1a6   : > { %v6105_v50 = vadd.f32 %v6104_v46, %v6103_v44  ;;  %v6106_v52 = vpop.f32.mrb[30].mxu1  ;;  %7093 = vmatprep.subr.msk.bf16.mxu0 %vm836_vm0, %v5758_v43 }
 0x1a7   : > { %v6107_v54 = vpop.f32.mrb[31].mxu1 }
 0x1a8   : > { %v6108_v55 = vadd.f32 %v6107_v54, %v6106_v52 }
 0x1aa   : > { %v1102_v56 = vpack.c.bf16 %v6108_v55, %v6105_v50 }
 0x1ab   : > { %2339 = vmatmul.mubr.bf16.gmra.mrb[108].mxu1 %v7281_v21 }
 0x1ac   : > { %6558 = vmatmul.mubr.msk.bf16.gmra.mrb[20].mxu0 %vm823_vm1, %v1102_v56  ;;  %v6130_v57 = vpop.f32.mrb[32].mxu1 }
 0x1ad   : > { %v6131_v59 = vpop.f32.mrb[33].mxu1 }
 0x1ae   : > { %v6132_v62 = vadd.f32 %v6131_v59, %v6130_v57  ;;  %v6133_v63 = vpop.f32.mrb[34].mxu1 }
 0x1af   : > { %v6134_v1 = vpop.f32.mrb[35].mxu1 }
 0x1b0   : > { %v6135_v2 = vadd.f32 %v6134_v1, %v6133_v63 }
 0x1b2   : > { %v1307_v5 = vpack.c.bf16 %v6135_v2, %v6132_v62 }
 0x1b4   : > { %v6136_v6 = vpop.f32.mrb[36].mxu1  ;;  %6563 = vmatprep.mubr.msk.bf16.mxu0 %vm823_vm1, %v1307_v5 }
 0x1b5   : > { %v6137_v9 = vpop.f32.mrb[37].mxu1 }
 0x1b6   : > { %v6138_v11 = vadd.f32 %v6137_v9, %v6136_v6  ;;  %v6139_v12 = vpop.f32.mrb[38].mxu1 }
 0x1b7   : > { %v6140_v51 = vpop.f32.mrb[39].mxu1 }
 0x1b8   : > { %v6141_v58 = vadd.f32 %v6140_v51, %v6139_v12 }
 0x1ba   : > { %v1308_v60 = vpack.c.bf16 %v6141_v58, %v6138_v11 }
 0x1bc   : > { %v6142_v22 = vpop.f32.mrb[40].mxu1  ;;  %6564 = vmatmul.mubr.msk.bf16.vlgmr.msra.gmra.mrb[16].mxu0 %vm823_vm1, %v1308_v60 }
 0x1bd   : > { %v6143_v23 = vpop.f32.mrb[41].mxu1  ;;  %6572 = vmatpush3.bf16.msra.mxu0 %v1534_v18 }
 0x1be   : > { %v6144_v24 = vadd.f32 %v6143_v23, %v6142_v22  ;;  %v6145_v25 = vpop.f32.mrb[42].mxu1  ;;  %6204 = vmatprep.subr.bf16.mxu0 %v7768_v3 }
 0x1bf   : > { %v6146_v4 = vpop.f32.mrb[43].mxu1 }
 0x1c0   : > { %v6147_v15 = vadd.f32 %v6146_v4, %v6145_v25 }
 0x1c2   : > { %v1309_v17 = vpack.c.bf16 %v6147_v15, %v6144_v24 }
 0x1c4   : > { %v6148_v26 = vpop.f32.mrb[44].mxu1  ;;  %6567 = vmatprep.mubr.msk.bf16.mxu0 %vm823_vm1, %v1309_v17 }
 0x1c5   : > { %v6149_v28 = vpop.f32.mrb[45].mxu1 }
 0x1c6   : > { %v6150_v30 = vadd.f32 %v6149_v28, %v6148_v26  ;;  %v6151_v31 = vpop.f32.mrb[46].mxu1 }
 0x1c7   : > { %v6152_v32 = vpop.f32.mrb[47].mxu1 }
 0x1c8   : > { %v6153_v34 = vadd.f32 %v6152_v32, %v6151_v31  ;;  %v5779_v31 = vld [vmem:[%s8978_s5 + $0xa] sm:$0x3] }
 0x1ca   : > { %v1310_v36 = vpack.c.bf16 %v6153_v34, %v6150_v30 }
 0x1cc   : > { %6568 = vmatmul.mubr.msk.bf16.gmra.mrb[20].mxu0 %vm823_vm1, %v1310_v36  ;;  %v6175_v37 = vpop.f32.mrb[48].mxu1 }
 0x1cd   : > { %v6176_v38 = vpop.f32.mrb[49].mxu1 }
 0x1ce   : > { %v6177_v40 = vadd.f32 %v6176_v38, %v6175_v37  ;;  %v6178_v41 = vpop.f32.mrb[50].mxu1  ;;  %v1742_v37 = vsel %vm836_vm0, %v5779_v31, 0 }
 0x1cf   : > { %v6179_v3 = vpop.f32.mrb[51].mxu1 }
 0x1d0   : > { %v6180_v43 = vadd.f32 %v6179_v3, %v6178_v41 }
 0x1d2   : > { %v1515_v44 = vpack.c.bf16 %v6180_v43, %v6177_v40 }
 0x1d4   : > { %v6181_v46 = vpop.f32.mrb[52].mxu1  ;;  %6573 = vmatprep.mubr.msk.bf16.mxu0 %vm823_vm1, %v1515_v44 }
 0x1d5   : > { %v6182_v48 = vpop.f32.mrb[53].mxu1 }
 0x1d6   : > { %v6183_v50 = vadd.f32 %v6182_v48, %v6181_v46  ;;  %v6184_v52 = vpop.f32.mrb[54].mxu1 }
 0x1d7   : > { %v6185_v53 = vpop.f32.mrb[55].mxu1 }
 0x1d8   : > { %v6186_v54 = vadd.f32 %v6185_v53, %v6184_v52 }
 0x1da   : > { %v1516_v55 = vpack.c.bf16 %v6186_v54, %v6183_v50 }
 0x1dc   : > { %6574 = vmatmul.mubr.msk.bf16.vlgmr.msra.gmra.mrb[16].mxu0 %vm823_vm1, %v1516_v55  ;;  %v6187_v56 = vpop.f32.mrb[56].mxu1 }
 0x1dd   : > { %6205 = vmatpush3.bf16.msra.mxu0 %v7773_v7  ;;  %v6188_v57 = vpop.f32.mrb[57].mxu1 }
 0x1de   : > { %6206 = vmatprep.subr.bf16.mxu0 %v7775_v8  ;;  %v6189_v59 = vadd.f32 %v6188_v57, %v6187_v56  ;;  %v6190_v61 = vpop.f32.mrb[58].mxu1 }
 0x1df   : > { %v6191_v62 = vpop.f32.mrb[59].mxu1 }
 0x1e0   : > { %v6192_v63 = vadd.f32 %v6191_v62, %v6190_v61 }
 0x1e1   : > { %6207 = vmatpush3.bf16.msra.mxu0 %v7784_v13  ;;  %v7242_v13 = vld [vmem:[%s8974_s1 + $0x144] ss:$8 sps:$4 sm:$0xff]  }
 0x1e2   : > { %v1517_v0 = vpack.c.bf16 %v6192_v63, %v6189_v59  ;;  %6208 = vmatprep.subr.bf16.mxu0 %v7788_v14  ;;  %v7240_v14 = vld [vmem:[%s8974_s1 + $0x140] ss:$8 sps:$4 sm:$0xff]  }
 0x1e4   : > { %v6193_v1 = vpop.f32.mrb[60].mxu1  ;;  %6577 = vmatprep.mubr.msk.bf16.mxu0 %vm823_vm1, %v1517_v0  ;;  %v5800_v0 = vld [vmem:[%s8978_s5 + $0xc] sm:$0x3] }
 0x1e5   : > { %6209 = vmatpush3.bf16.msra.mxu0 %v7796_v19  ;;  %v6194_v2 = vpop.f32.mrb[61].mxu1  ;;  %v7246_v19 = vld [vmem:[%s8974_s1 + $0x154] ss:$8 sps:$4 sm:$0xff]  }
 0x1e6   : > { %6210 = vmatprep.subr.bf16.mxu0 %v7800_v20  ;;  %v6195_v7 = vadd.f32 %v6194_v2, %v6193_v1  ;;  %v6196_v5 = vpop.f32.mrb[62].mxu1  ;;  %v7250_v20 = vld [vmem:[%s8974_s1 + $0x150] ss:$8 sps:$4 sm:$0xff]  }
 0x1e7   : > { %v6197_v8 = vpop.f32.mrb[63].mxu1 }
 0x1e8   : > { %v6198_v6 = vadd.f32 %v6197_v8, %v6196_v5 }
 0x1e9   : > { %6211 = vmatpush3.bf16.msra.mxu0 %v7812_v27  ;;  %v7252_v27 = vld [vmem:[%s8974_s1 + $0x164] ss:$8 sps:$4 sm:$0xff]  }
 0x1ea   : > { %v1518_v9 = vpack.c.bf16 %v6198_v6, %v6195_v7  ;;  %6212 = vmatprep.subr.bf16.mxu0 %v7817_v29  ;;  %v7257_v29 = vld [vmem:[%s8974_s1 + $0x160] ss:$8 sps:$4 sm:$0xff]  }
 0x1ec   : > { %6578 = vmatmul.mubr.msk.bf16.gmra.mrb[20].mxu0 %vm823_vm1, %v1518_v9 }
 0x1ed   : > { %6213 = vmatpush3.bf16.msra.mxu0 %v7826_v33  ;;  %1690 = vmatprep.mubr.bf16.mxu0 %v7242_v13  ;;  %v7258_v33 = vld [vmem:[%s8974_s1 + $0x174] ss:$8 sps:$4 sm:$0xff]  }
 0x1ee   : > { %6214 = vmatprep.subr.bf16.mxu0 %v7831_v35  ;;  %v7262_v35 = vld [vmem:[%s8974_s1 + $0x170] ss:$8 sps:$4 sm:$0xff]  }
 0x1f1   : > { %6215 = vmatpush3.bf16.msra.mxu0 %v7838_v39  ;;  %v6265_v39 = vpop.f32.mrb[64].mxu1 }
 0x1f2   : > { %6216 = vmatprep.subr.bf16.mxu0 %v7844_v42  ;;  %v6266_v42 = vpop.f32.mrb[65].mxu1 }
 0x1f5   : > { %6217 = vmatpush3.bf16.msra.mxu0 %v7850_v45  ;;  %v8259_v45 = vadd.f32 %v6266_v42, %v6265_v39 }
 0x1f6   : > { %6218 = vmatprep.subr.bf16.mxu0 %v7855_v47  ;;  %v6268_v47 = vpop.f32.mrb[66].mxu1 }
 0x1f9   : > { %6219 = vmatpush3.bf16.msra.mxu0 %v7860_v49  ;;  %v6269_v49 = vpop.f32.mrb[67].mxu1 }
 0x1fa   : > { %v8261_v10 = vadd.f32 %v6269_v49, %v6268_v47  ;;  %v6271_v12 = vpop.f32.mrb[68].mxu1  ;;  %7094 = vmatprep.subr.msk.bf16.mxu0 %vm836_vm0, %v5779_v31 }
 0x1fb   : > { %v6272_v16 = vpop.f32.mrb[69].mxu1 }
 0x1fc   : > { %1691 = vmatmul.mubr.bf16.vlgmr.msra.gmra.mrb[24].mxu0 %v7240_v14  ;;  %v1931_v11 = vpack.c.bf16 %v8261_v10, %v8259_v45  ;;  %v8265_v51 = vadd.f32 %v6272_v16, %v6271_v12  ;;  %v6274_v58 = vpop.f32.mrb[70].mxu1  ;;  %v7531_v10 = vmov 0.0  }
 0x1fd   : > { %1698 = vmatprep.mubr.bf16.mxu0 %v7246_v19  ;;  %v6275_v60 = vpop.f32.mrb[71].mxu1  ;;  %6582 = vmatpush3.bf16.msra.mxu0 %v1742_v37 }
 0x1fe   : > { %v8267_v18 = vadd.f32 %v6275_v60, %v6274_v58  ;;  %v6277_v23 = vpop.f32.mrb[72].mxu1  ;;  %7095 = vmatprep.subr.msk.bf16.mxu0 %vm836_vm0, %v5800_v0  ;;  %6633 = vmatprep.subr.bf16.mxu1 %v7531_v10 }
 0x1ff   : > { %v6278_v21 = vpop.f32.mrb[73].mxu1  ;;  %6641 = vmatprep.mubr.msk.bf16.mxu1 %vm7532_vm2, %v7531_v10 }
 0x200   : > { %v1932_v22 = vpack.c.bf16 %v8267_v18, %v8265_v51  ;;  %v6280_v24 = vpop.f32.mrb[74].mxu1  ;;  %v8271_v4 = vadd.f32 %v6278_v21, %v6277_v23 }
 0x201   : > { %v6281_v25 = vpop.f32.mrb[75].mxu1 }
 0x202   : > { %v8273_v15 = vadd.f32 %v6281_v25, %v6280_v24 }
 0x204   : > { %1699 = vmatmul.mubr.bf16.gmra.mrb[28].mxu0 %v7250_v20  ;;  %v1933_v17 = vpack.c.bf16 %v8273_v15, %v8271_v4  ;;  %v6283_v26 = vpop.f32.mrb[76].mxu1 }
 0x205   : > { %1706 = vmatprep.mubr.bf16.mxu0 %v7252_v27  ;;  %v6284_v28 = vpop.f32.mrb[77].mxu1 }
 0x206   : > { %v6286_v30 = vpop.f32.mrb[78].mxu1  ;;  %v8281_v34 = vadd.f32 %v6284_v28, %v6283_v26 }
 0x207   : > { %v6287_v32 = vpop.f32.mrb[79].mxu1 }
 0x208   : > { %v8283_v36 = vadd.f32 %v6287_v32, %v6286_v30 }
 0x20a   : > { %v1934_v38 = vpack.c.bf16 %v8283_v36, %v8281_v34 }
 0x20c   : > { %1707 = vmatmul.mubr.bf16.gmra.mrb[32].mxu0 %v7257_v29 }
 0x20d   : > { %1714 = vmatprep.mubr.bf16.mxu0 %v7258_v33 }
 0x214   : > { %1715 = vmatmul.mubr.bf16.gmra.mrb[36].mxu0 %v7262_v35 }
 0x244   : > { %v6310_v40 = vpop.f32.mrb[80].mxu1 }
 0x245   : > { %v6311_v41 = vpop.f32.mrb[81].mxu1 }
 0x246   : > { %v6313_v3 = vpop.f32.mrb[82].mxu1  ;;  %v8288_v44 = vadd.f32 %v6311_v41, %v6310_v40 }
 0x247   : > { %v6314_v43 = vpop.f32.mrb[83].mxu1 }
 0x248   : > { %v8290_v46 = vadd.f32 %v6314_v43, %v6313_v3 }
 0x24a   : > { %v2139_v48 = vpack.c.bf16 %v8290_v46, %v8288_v44 }
 0x24e   : > { %v6316_v50 = vpop.f32.mrb[84].mxu1 }
 0x24f   : > { %v6317_v52 = vpop.f32.mrb[85].mxu1 }
 0x250   : > { %v6319_v53 = vpop.f32.mrb[86].mxu1  ;;  %v8294_v55 = vadd.f32 %v6317_v52, %v6316_v50 }
 0x251   : > { %v6320_v54 = vpop.f32.mrb[87].mxu1 }
 0x252   : > { %v8296_v56 = vadd.f32 %v6320_v54, %v6319_v53 }
 0x254   : > { %v2140_v57 = vpack.c.bf16 %v8296_v56, %v8294_v55 }
 0x256   : > { %v6322_v59 = vpop.f32.mrb[88].mxu1 }
 0x257   : > { %v6323_v61 = vpop.f32.mrb[89].mxu1 }
 0x258   : > { %v6325_v62 = vpop.f32.mrb[90].mxu1  ;;  %v8303_v1 = vadd.f32 %v6323_v61, %v6322_v59 }
 0x259   : > { %v6326_v63 = vpop.f32.mrb[91].mxu1 }
 0x25a   : > { %v8305_v2 = vadd.f32 %v6326_v63, %v6325_v62 }
 0x25c   : > { %v2141_v7 = vpack.c.bf16 %v8305_v2, %v8303_v1 }
 0x25e   : > { %v6328_v5 = vpop.f32.mrb[92].mxu1 }
 0x25f   : > { %v6329_v8 = vpop.f32.mrb[93].mxu1 }
 0x260   : > { %v6331_v6 = vpop.f32.mrb[94].mxu1  ;;  %v8310_v9 = vadd.f32 %v6329_v8, %v6328_v5 }
 0x261   : > { %v6332_v13 = vpop.f32.mrb[95].mxu1 }
 0x262   : > { %v8312_v14 = vadd.f32 %v6332_v13, %v6331_v6 }
 0x264   : > { %v2142_v19 = vpack.c.bf16 %v8312_v14, %v8310_v9 }
 0x266   : > { %v6355_v20 = vpop.f32.mrb[96].mxu1 }
 0x267   : > { %v6356_v27 = vpop.f32.mrb[97].mxu1 }
 0x268   : > { %v6358_v29 = vpop.f32.mrb[98].mxu1  ;;  %v8316_v35 = vadd.f32 %v6356_v27, %v6355_v20 }
 0x269   : > { %v6359_v33 = vpop.f32.mrb[99].mxu1 }
 0x26a   : > { %v8318_v39 = vadd.f32 %v6359_v33, %v6358_v29  ;;  %v1950_v33 = vsel %vm836_vm0, %v5800_v0, 0 }
 0x26c   : > { %v2347_v42 = vpack.c.bf16 %v8318_v39, %v8316_v35 }
 0x26e   : > { %v6361_v47 = vpop.f32.mrb[100].mxu1 }
 0x26f   : > { %v6362_v49 = vpop.f32.mrb[101].mxu1 }
 0x270   : > { %v6364_v12 = vpop.f32.mrb[102].mxu1  ;;  %v8322_v58 = vadd.f32 %v6362_v49, %v6361_v47  ;;  %v5821_v47 = vld [vmem:[%s8978_s5 + $0xe] sm:$0x3] }
 0x271   : > { %v6365_v16 = vpop.f32.mrb[103].mxu1 }
 0x272   : > { %v8324_v60 = vadd.f32 %v6365_v16, %v6364_v12 }
 0x274   : > { %v2348_v23 = vpack.c.bf16 %v8324_v60, %v8322_v58 }
 0x276   : > { %v6367_v21 = vpop.f32.mrb[104].mxu1 }
 0x277   : > { %v6368_v24 = vpop.f32.mrb[105].mxu1 }
 0x278   : > { %v6370_v25 = vpop.f32.mrb[106].mxu1  ;;  %v8328_v28 = vadd.f32 %v6368_v24, %v6367_v21 }
 0x279   : > { %v6371_v26 = vpop.f32.mrb[107].mxu1 }
 0x27a   : > { %v6372_v30 = vadd.f32 %v6371_v26, %v6370_v25 }
 0x27c   : > { %v2349_v31 = vpack.c.bf16 %v6372_v30, %v8328_v28 }
 0x27e   : > { %v6373_v32 = vpop.f32.mrb[108].mxu1 }
 0x27f   : > { %v6374_v37 = vpop.f32.mrb[109].mxu1 }
 0x280   : > { %v6376_v40 = vpop.f32.mrb[110].mxu1  ;;  %v6375_v41 = vadd.f32 %v6374_v37, %v6373_v32 }
 0x281   : > { %v6377_v3 = vpop.f32.mrb[111].mxu1 }
 0x282   : > { %v6378_v43 = vadd.f32 %v6377_v3, %v6376_v40  ;;  %v2158_v3 = vsel %vm836_vm0, %v5821_v47, 0 }
 0x284   : > { %v2350_v50 = vpack.c.bf16 %v6378_v43, %v6375_v41  ;;  %v5842_v43 = vld [vmem:[%s8978_s5 + $0x10] sm:$0x3] }
 0x285   : > { %v2366_v45 = vsel %vm836_vm0, %v5842_v43, 0 }
 0x2cf   : > { %v6220_v52 = vpop.f32.mrb[24].mxu0 }
 0x2d0   : > { %v6221_v53 = vpop.f32.mrb[25].mxu0 }
 0x2d1   : > { %v6222_v54 = vadd.f32 %v6221_v53, %v6220_v52  ;;  %v6223_v59 = vpop.f32.mrb[26].mxu0 }
 0x2d2   : > { %v6224_v61 = vpop.f32.mrb[27].mxu0 }
 0x2d3   : > { %v6225_v62 = vadd.f32 %v6224_v61, %v6223_v59 }
 0x2d5   : > { %v1723_v63 = vpack.c.bf16 %v6225_v62, %v6222_v54 }
 0x2d7   : > { %v6226_v5 = vpop.f32.mrb[28].mxu0  ;;  %6583 = vmatprep.mubr.msk.bf16.mxu0 %vm823_vm1, %v1723_v63 }
 0x2d8   : > { %v6227_v8 = vpop.f32.mrb[29].mxu0 }
 0x2d9   : > { %v6228_v6 = vadd.f32 %v6227_v8, %v6226_v5  ;;  %v6229_v13 = vpop.f32.mrb[30].mxu0 }
 0x2da   : > { %v6230_v20 = vpop.f32.mrb[31].mxu0 }
 0x2db   : > { %v6231_v27 = vadd.f32 %v6230_v20, %v6229_v13 }
 0x2dd   : > { %v1724_v29 = vpack.c.bf16 %v6231_v27, %v6228_v6 }
 0x2df   : > { %v6232_v49 = vpop.f32.mrb[32].mxu0  ;;  %6584 = vmatmul.mubr.msk.bf16.vlgmr.msra.gmra.mrb[16].mxu0 %vm823_vm1, %v1724_v29 }
 0x2e0   : > { %v6233_v12 = vpop.f32.mrb[33].mxu0  ;;  %6592 = vmatpush3.bf16.msra.mxu0 %v1950_v33 }
 0x2e1   : > { %v6234_v16 = vadd.f32 %v6233_v12, %v6232_v49  ;;  %v6235_v21 = vpop.f32.mrb[34].mxu0  ;;  %7096 = vmatprep.subr.msk.bf16.mxu0 %vm836_vm0, %v5821_v47 }
 0x2e2   : > { %v6236_v24 = vpop.f32.mrb[35].mxu0 }
 0x2e3   : > { %v6237_v25 = vadd.f32 %v6236_v24, %v6235_v21 }
 0x2e5   : > { %v1725_v26 = vpack.c.bf16 %v6237_v25, %v6234_v16 }
 0x2e7   : > { %v6238_v28 = vpop.f32.mrb[36].mxu0  ;;  %6587 = vmatprep.mubr.msk.bf16.mxu0 %vm823_vm1, %v1725_v26 }
 0x2e8   : > { %v6239_v0 = vpop.f32.mrb[37].mxu0 }
 0x2e9   : > { %v6240_v30 = vadd.f32 %v6239_v0, %v6238_v28  ;;  %v6241_v32 = vpop.f32.mrb[38].mxu0 }
 0x2ea   : > { %v6242_v37 = vpop.f32.mrb[39].mxu0 }
 0x2eb   : > { %v6243_v40 = vadd.f32 %v6242_v37, %v6241_v32 }
 0x2ed   : > { %v1726_v41 = vpack.c.bf16 %v6243_v40, %v6240_v30 }
 0x2ef   : > { %6588 = vmatmul.mubr.msk.bf16.gmra.mrb[20].mxu0 %vm823_vm1, %v1726_v41 }
 0x2f0   : > { %6593 = vmatprep.mubr.msk.bf16.mxu0 %vm823_vm1, %v1931_v11  ;;  %v5847_v11 = vld [vmem:[%s8982_s9] ss:$0 sm:$0xff] }
 0x2f7   : > { %6594 = vmatmul.mubr.msk.bf16.vlgmr.msra.gmra.mrb[16].mxu0 %vm823_vm1, %v1932_v22 }
 0x2f8   : > { %6597 = vmatprep.mubr.msk.bf16.mxu0 %vm823_vm1, %v1933_v17  ;;  %6602 = vmatpush3.bf16.msra.mxu0 %v2158_v3 }
 0x2f9   : > { %7097 = vmatprep.subr.msk.bf16.mxu0 %vm836_vm0, %v5842_v43 }
 0x2ff   : > { %6598 = vmatmul.mubr.msk.bf16.gmra.mrb[20].mxu0 %vm823_vm1, %v1934_v38 }
 0x300   : > { %6603 = vmatprep.mubr.msk.bf16.mxu0 %vm823_vm1, %v2139_v48 }
 0x307   : > { %6604 = vmatmul.mubr.msk.bf16.vlgmr.msra.gmra.mrb[16].mxu0 %vm823_vm1, %v2140_v57 }
 0x308   : > { %6607 = vmatprep.mubr.msk.bf16.mxu0 %vm823_vm1, %v2141_v7  ;;  %6612 = vmatpush3.bf16.msra.mxu0 %v2366_v45 }
 0x309   : > { %6621 = vmatprep.subr.bf16.mxu0 %v7531_v10 }
 0x30f   : > { %6608 = vmatmul.mubr.msk.bf16.gmra.mrb[20].mxu0 %vm823_vm1, %v2142_v19 }
 0x310   : > { %6613 = vmatprep.mubr.msk.bf16.mxu0 %vm823_vm1, %v2347_v42 }
 0x317   : > { %6614 = vmatmul.mubr.msk.bf16.vlgmr.msra.gmra.mrb[16].mxu0 %vm823_vm1, %v2348_v23 }
 0x318   : > { %6617 = vmatprep.mubr.msk.bf16.mxu0 %vm823_vm1, %v2349_v31 }
 0x31f   : > { %6618 = vmatmul.mubr.msk.bf16.gmra.mrb[20].mxu0 %vm823_vm1, %v2350_v50 }
 0x320   : > { %6629 = vmatprep.mubr.msk.bf16.mxu0 %vm7532_vm2, %v7531_v10 }
 0x3ea   : > { %v6615_v51 = vpop.f32.mrb[16].mxu0 }
 0x3eb   : > { %v8397_v18 = vadd.f32 %v6615_v51, %v5847_v11  ;;  %v2402_v22 = vpop.f32.mrb[17].mxu0 }
 0x3ec   : > { %v8399_v4 = vadd.f32 %v5847_v11, %v2402_v22  ;;  %v6616_v15 = vpop.f32.mrb[18].mxu0 }
 0x3ed   : > { %v2458_v17 = vand.u32 2147483647, %v8397_v18  ;;  %v8402_v34 = vadd.f32 %v6616_v15, %v5847_v11  ;;  %v2405_v36 = vpop.f32.mrb[19].mxu0  ;;  %vm2490_vm3 = vcmp.ge.f32.partialorder %v8397_v18, 0.0 }
 0x3ee   : > { %v2456_v38 = vand.u32 2147483647, %v8399_v4  ;;  %v8405_v44 = vadd.f32 %v5847_v11, %v2405_v36  ;;  %vm2488_vm4 = vcmp.ge.f32.partialorder %v8399_v4, 0.0 }
 0x3ef   : > { %v2466_v46 = vsub.f32 0.0, %v2458_v17  ;;  %v2459_v48 = vand.u32 2147483647, %v8402_v34  ;;  %vm2491_vm5 = vcmp.ge.f32.partialorder %v8402_v34, 0.0 }
 0x3f0   : > { %v2464_v55 = vsub.f32 0.0, %v2456_v38  ;;  %v2457_v56 = vand.u32 2147483647, %v8405_v44  ;;  %vm2489_vm6 = vcmp.ge.f32.partialorder %v8405_v44, 0.0 }
 0x3f1   : > { %v2476_v57 = vmul.f32 1.442695, %v2466_v46  ;;  %v2467_v1 = vsub.f32 0.0, %v2459_v48 }
 0x3f2   : > { %v2472_v2 = vmul.f32 1.442695, %v2464_v55  ;;  %v2465_v7 = vsub.f32 0.0, %v2457_v56  ;;  %v6619_v9 = vpop.f32.mrb[20].mxu0 }
 0x3f3   : > { %7320 = vpow2.f32 %v2476_v57  ;;  %v2478_v14 = vmul.f32 1.442695, %v2467_v1  ;;  %v8409_v19 = vadd.f32 %v6619_v9, %v5847_v11  ;;  %v2418_v35 = vpop.f32.mrb[21].mxu0 }
 0x3f4   : > { %7322 = vpow2.f32 %v2472_v2  ;;  %v8411_v39 = vadd.f32 %v5847_v11, %v2418_v35  ;;  %v6620_v42 = vpop.f32.mrb[22].mxu0  ;;  %v2474_v58 = vmul.f32 1.442695, %v2465_v7 }
 0x3f5   : > { %7324 = vpow2.f32 %v2478_v14  ;;  %v2462_v60 = vand.u32 2147483647, %v8409_v19  ;;  %v8414_v23 = vadd.f32 %v6620_v42, %v5847_v11  ;;  %v2421_v31 = vpop.f32.mrb[23].mxu0  ;;  %vm2494_vm7 = vcmp.ge.f32.partialorder %v8409_v19, 0.0 }
 0x3f6   : > { %v2460_v50 = vand.u32 2147483647, %v8411_v39  ;;  %v8417_v52 = vadd.f32 %v5847_v11, %v2421_v31  ;;  %7326 = vpow2.f32 %v2474_v58  ;;  %vm2492_vm8 = vcmp.ge.f32.partialorder %v8411_v39, 0.0 }
 0x3f7   : > { %v2470_v53 = vsub.f32 0.0, %v2462_v60  ;;  %v2463_v54 = vand.u32 2147483647, %v8414_v23  ;;  %vm2495_vm9 = vcmp.ge.f32.partialorder %v8414_v23, 0.0 }
 0x3f8   : > { %v2468_v59 = vsub.f32 0.0, %v2460_v50  ;;  %v2461_v62 = vand.u32 2147483647, %v8417_v52  ;;  %vm2493_vm10 = vcmp.ge.f32.partialorder %v8417_v52, 0.0 }
 0x3f9   : > { %v2484_v61 = vmul.f32 1.442695, %v2470_v53  ;;  %v2471_v5 = vsub.f32 0.0, %v2463_v54 }
 0x3fa   : > { %v2480_v63 = vmul.f32 1.442695, %v2468_v59  ;;  %v2469_v6 = vsub.f32 0.0, %v2461_v62 }
 0x3fb   : > { %7328 = vpow2.f32 %v2484_v61  ;;  %v2486_v49 = vmul.f32 1.442695, %v2471_v5 }
 0x3fc   : > { %7330 = vpow2.f32 %v2480_v63  ;;  %v2482_v28 = vmul.f32 1.442695, %v2469_v6 }
 0x3fd   : > { %v7321_v8 = vpop.eup %7320  ;;  %7332 = vpow2.f32 %v2486_v49 }
 0x3fe   : > { %v7323_v13 = vpop.eup %7322  ;;  %v2498_v20 = vmul.f32 2.0, %v7321_v8  ;;  %v2554_v27 = vmul.f32 %v7321_v8, %v7321_v8  ;;  %v2514_v45 = vadd.f32 2.0, %v7321_v8  ;;  %7334 = vpow2.f32 %v2482_v28 }
 0x3ff   : > { %v7325_v29 = vpop.eup %7324  ;;  %v2496_v33 = vmul.f32 2.0, %v7323_v13  ;;  %v2552_v47 = vmul.f32 %v7323_v13, %v7323_v13  ;;  %v2512_v15 = vadd.f32 2.0, %v7323_v13 }
 0x400   : > { %v8421_v12 = vadd.f32 1.0, %v2498_v20  ;;  %v2538_v16 = vmul.f32 %v7321_v8, %v2498_v20  ;;  %v2562_v21 = vadd.f32 %v2554_v27, %v2498_v20  ;;  %v2499_v32 = vmul.f32 2.0, %v7325_v29  ;;  %v7327_v37 = vpop.eup %7326 }
 0x401   : > { %v2504_v24 = vadd.f32 1.0, %v2496_v33  ;;  %v2536_v25 = vmul.f32 %v7323_v13, %v2496_v33  ;;  %v2560_v26 = vadd.f32 %v2552_v47, %v2496_v33  ;;  %v2555_v51 = vmul.f32 %v7325_v29, %v7325_v29 }
 0x402   : > { %v2546_v0 = vadd.f32 %v2538_v16, %v8421_v12  ;;  %v2570_v30 = vadd.f32 2.0, %v2562_v21  ;;  %v2507_v3 = vadd.f32 1.0, %v2499_v32  ;;  %v2539_v11 = vmul.f32 %v7325_v29, %v2499_v32 }
 0x403   : > { %v2544_v40 = vadd.f32 %v2536_v25, %v2504_v24  ;;  %v2568_v41 = vadd.f32 2.0, %v2560_v26  ;;  %v2515_v17 = vadd.f32 2.0, %v7325_v29  ;;  %v2497_v36 = vmul.f32 2.0, %v7327_v37 }
 0x404   : > { %v2578_v22 = vsel %vm2490_vm3, %v2546_v0, %v2570_v30  ;;  %v2547_v46 = vadd.f32 %v2539_v11, %v2507_v3  ;;  %v2563_v48 = vadd.f32 %v2555_v51, %v2499_v32  ;;  %v2553_v55 = vmul.f32 %v7327_v37, %v7327_v37 }
 0x405   : > { %v8427_v43 = vpop.eup %7328  ;;  %v2576_v38 = vsel %vm2488_vm4, %v2544_v40, %v2568_v41  ;;  %v2505_v56 = vadd.f32 1.0, %v2497_v36  ;;  %v2537_v57 = vmul.f32 %v7327_v37, %v2497_v36  ;;  %7336 = vrcp.f32 %v2578_v22 }
 0x406   : > { %v2502_v1 = vmul.f32 2.0, %v8427_v43  ;;  %v8435_v2 = vpop.eup %7330  ;;  %v2571_v7 = vadd.f32 2.0, %v2563_v48  ;;  %v2513_v9 = vadd.f32 2.0, %v7327_v37  ;;  %v2561_v14 = vadd.f32 %v2553_v55, %v2497_v36 }
 0x407   : > { %v2522_v35 = vmul.f32 %v7321_v8, %v2514_v45  ;;  %v2520_v42 = vmul.f32 %v7323_v13, %v2512_v15  ;;  %7338 = vrcp.f32 %v2576_v38  ;;  %v2545_v58 = vadd.f32 %v2537_v57, %v2505_v56  ;;  %v8445_v62 = vpop.eup %7332 }
 0x408   : > { %v2523_v60 = vmul.f32 %v7325_v29, %v2515_v17  ;;  %v2579_v31 = vsel %vm2491_vm5, %v2547_v46, %v2571_v7  ;;  %v2569_v50 = vadd.f32 2.0, %v2561_v14  ;;  %v2558_v53 = vmul.f32 %v8427_v43, %v8427_v43  ;;  %v7335_v27 = vpop.eup %7334 }
 0x409   : > { %7340 = vrcp.f32 %v2579_v31  ;;  %v8441_v54 = vadd.f32 1.0, %v2502_v1  ;;  %v2542_v59 = vmul.f32 %v8427_v43, %v2502_v1  ;;  %v2500_v61 = vmul.f32 2.0, %v8435_v2 }
 0x40a   : > { %v2521_v63 = vmul.f32 %v7327_v37, %v2513_v9  ;;  %v2577_v5 = vsel %vm2489_vm6, %v2545_v58, %v2569_v50  ;;  %v2566_v8 = vadd.f32 %v2558_v53, %v2502_v1  ;;  %v2556_v6 = vmul.f32 %v8435_v2, %v8435_v2 }
 0x40b   : > { %7342 = vrcp.f32 %v2577_v5  ;;  %v8452_v13 = vadd.f32 1.0, %v2500_v61  ;;  %v2540_v20 = vmul.f32 %v8435_v2, %v2500_v61  ;;  %v2530_v29 = vsel %vm2490_vm3, %v8421_v12, %v2522_v35 }
 0x40c   : > { %v2528_v33 = vsel %vm2488_vm4, %v2504_v24, %v2520_v42  ;;  %v2564_v47 = vadd.f32 %v2556_v6, %v2500_v61  ;;  %v2531_v49 = vsel %vm2491_vm5, %v2507_v3, %v2523_v60  ;;  %v2550_v16 = vadd.f32 %v2542_v59, %v8441_v54 }
 0x40d   : > { %v2574_v21 = vadd.f32 2.0, %v2566_v8  ;;  %v2503_v25 = vmul.f32 2.0, %v8445_v62  ;;  %v2529_v26 = vsel %vm2489_vm6, %v2505_v56, %v2521_v63  ;;  %v2548_v28 = vadd.f32 %v2540_v20, %v8452_v13 }
 0x40e   : > { %v2572_v12 = vadd.f32 2.0, %v2564_v47  ;;  %v2586_v24 = vmul.f32 %v2530_v29, %v8397_v18  ;;  %v2584_v0 = vmul.f32 %v2528_v33, %v8399_v4  ;;  %v2587_v37 = vmul.f32 %v2531_v49, %v8402_v34 }
 0x40f   : > { %v2511_v30 = vadd.f32 1.0, %v2503_v25  ;;  %v7337_v32 = vpop.eup %7336  ;;  %v2543_v40 = vmul.f32 %v8445_v62, %v2503_v25  ;;  %v2559_v41 = vmul.f32 %v8445_v62, %v8445_v62  ;;  %v2501_v3 = vmul.f32 2.0, %v7335_v27 }
 0x410   : > { %v2585_v11 = vmul.f32 %v2529_v26, %v8405_v44  ;;  %v2518_v51 = vadd.f32 2.0, %v8427_v43  ;;  %v2582_v18 = vsel %vm2494_vm7, %v2550_v16, %v2574_v21  ;;  %v2557_v4 = vmul.f32 %v7335_v27, %v7335_v27 }
 0x411   : > { %v7339_v45 = vpop.eup %7338  ;;  %v2580_v22 = vsel %vm2492_vm8, %v2548_v28, %v2572_v12  ;;  %v2551_v15 = vadd.f32 %v2543_v40, %v2511_v30  ;;  %v2567_v34 = vadd.f32 %v2559_v41, %v2503_v25  ;;  %v2509_v17 = vadd.f32 1.0, %v2501_v3  ;;  %v2665_v28 = vld [vmem:[%s8979_s6] sm:$0xf] }
 0x412   : > { %v2602_v38 = vmul.f32 %v7337_v32, %v2586_v24  ;;  %v2516_v46 = vadd.f32 2.0, %v8435_v2  ;;  %v2541_v48 = vmul.f32 %v7335_v27, %v2501_v3  ;;  %v2565_v55 = vadd.f32 %v2557_v4, %v2501_v3 }
 0x413   : > { %v7341_v36 = vpop.eup %7340  ;;  %7344 = vrcp.f32 %v2582_v18  ;;  %v2519_v44 = vadd.f32 2.0, %v8445_v62  ;;  %v2575_v57 = vadd.f32 2.0, %v2567_v34  ;;  %v2600_v7 = vmul.f32 %v7339_v45, %v2584_v0  ;;  %v5861_v18 = vld [vmem:[%s8979_s6 + $0x8] sm:$0xf] }
 0x414   : > { %v2603_v56 = vmul.f32 %v7341_v36, %v2587_v37  ;;  %7346 = vrcp.f32 %v2580_v22  ;;  %v2549_v9 = vadd.f32 %v2541_v48, %v2509_v17  ;;  %v2573_v14 = vadd.f32 2.0, %v2565_v55 }
 0x415   : > { %v7343_v1 = vpop.eup %7342  ;;  %v2583_v58 = vsel %vm2495_vm9, %v2551_v15, %v2575_v57  ;;  %v2517_v60 = vadd.f32 2.0, %v7335_v27  ;;  %v2526_v53 = vmul.f32 %v8427_v43, %v2518_v51  ;;  %v2527_v59 = vmul.f32 %v8445_v62, %v2519_v44  ;;  %v7284_v51 = vld [vmem:[%s8975_s2 + $0x10] sm:$0xff]  }
 0x416   : > { %v8484_v35 = vpack.c.bf16 %v2603_v56, %v2602_v38  ;;  %v2601_v42 = vmul.f32 %v7343_v1, %v2585_v11  ;;  %7348 = vrcp.f32 %v2583_v58  ;;  %v2581_v31 = vsel %vm2493_vm10, %v2549_v9, %v2573_v14  ;;  %v7285_v14 = vld [vmem:[%s8975_s2 + $0x18] sm:$0xff]  }
 0x417   : > { %7350 = vrcp.f32 %v2581_v31  ;;  %v2524_v61 = vmul.f32 %v8435_v2, %v2516_v46  ;;  %v2525_v63 = vmul.f32 %v7335_v27, %v2517_v60  ;;  %v2534_v5 = vsel %vm2494_vm7, %v8441_v54, %v2526_v53 }
 0x418   : > { %v8490_v50 = vpack.c.bf16 %v2601_v42, %v2600_v7  ;;  %v2535_v43 = vsel %vm2495_vm9, %v2511_v30, %v2527_v59  ;;  %v2590_v54 = vmul.f32 %v2534_v5, %v8409_v19  ;;  %v7282_v19 = vld [vmem:[%s8975_s2 + $0x8] sm:$0xff]   ;;  %v2774_v12 = vsel %vm2725_vm12, %v2665_v28, 0  ;;  %v5879_v28 = vld [vmem:[%s8979_s6 + $0x14] sm:$0xf] }
 0x419   : > { %v2532_v2 = vsel %vm2492_vm8, %v8452_v13, %v2524_v61  ;;  %v2533_v62 = vsel %vm2493_vm10, %v2509_v17, %v2525_v63  ;;  %v2591_v20 = vmul.f32 %v2535_v43, %v8414_v23  ;;  %v5854_v23 = vld [vmem:[%s8979_s6 + $0x4] sm:$0xf]  ;;  %v2876_v4 = vsel %vm2725_vm12, %v5861_v18, 0  ;;  %v5867_v42 = vld [vmem:[%s8979_s6 + $0xc] sm:$0xf]  ;;  %v7288_v18 = vld [vmem:[%s8975_s2 + $0x30] sm:$0xff]  }
 0x41a   : > { %6622 = vmatpush3.bf16.msra.mxu0 %v8490_v50  ;;  %6634 = vmatpush3.bf16.msra.mxu1 %v8490_v50  ;;  %v2588_v29 = vmul.f32 %v2532_v2, %v8411_v39  ;;  %v2589_v13 = vmul.f32 %v2533_v62, %v8417_v52  ;;  %v7283_v39 = vld [vmem:[%s8975_s2] sm:$0xff]   ;;  %v2727_v52 = vsel %vm2725_vm12, %v5854_v23, 0  ;;  %v2980_v58 = vsel %vm2725_vm12, %v5867_v42, 0 }
 0x41b   : > { %6623 = vmatprep.subr.bf16.mxu0 %v7531_v10  ;;  %6635 = vmatprep.subr.bf16.mxu1 %v7531_v10  ;;  %vm3594_vm3 = vcmask 130048  }
 0x41d   : > { %v7345_v8 = vpop.eup %7344 }
 0x41e   : > { %6624 = vmatpush3.bf16.msra.mxu0 %v8484_v35  ;;  %6636 = vmatpush3.bf16.msra.mxu1 %v8484_v35  ;;  %v7347_v6 = vpop.eup %7346  ;;  %v2606_v47 = vmul.f32 %v7345_v8, %v2590_v54  ;;  %v5873_v54 = vld [vmem:[%s8979_s6 + $0x10] sm:$0xf] }
 0x41f   : > { %6625 = vmatprep.subr.bf16.mxu0 %v7531_v10  ;;  %6637 = vmatprep.subr.bf16.mxu1 %v7531_v10  ;;  %v2604_v16 = vmul.f32 %v7347_v6, %v2588_v29  ;;  %v7286_v6 = vld [vmem:[%s8975_s2 + $0x20] sm:$0xff]  }
 0x420   : > { %v7349_v27 = vpop.eup %7348 }
 0x421   : > { %v7351_v33 = vpop.eup %7350  ;;  %v2607_v49 = vmul.f32 %v7349_v27, %v2591_v20  ;;  %v3084_v20 = vsel %vm2725_vm12, %v5873_v54, 0 }
 0x422   : > { %v2605_v21 = vmul.f32 %v7351_v33, %v2589_v13 }
 0x423   : > { %v8517_v25 = vpack.c.bf16 %v2607_v49, %v2606_v47 }
 0x424   : > { %v8519_v26 = vpack.c.bf16 %v2605_v21, %v2604_v16 }
 0x426   : > { %6626 = vmatpush3.bf16.msra.mxu0 %v8519_v26  ;;  %6638 = vmatpush3.bf16.msra.mxu1 %v8519_v26 }
 0x427   : > { %6627 = vmatprep.subr.bf16.mxu0 %v7531_v10  ;;  %6639 = vmatprep.subr.bf16.mxu1 %v7531_v10 }
 0x42a   : > { %6628 = vmatpush3.bf16.msra.mxu0 %v8517_v25  ;;  %6640 = vmatpush3.bf16.msra.mxu1 %v8517_v25 }
 0x42b   : > { %6645 = vmatprep.subr.bf16.mxu0 %v7531_v10  ;;  %6651 = vmatprep.subr.bf16.mxu1 %v7531_v10 }
 0x42d   : > { %6642 = vmatmul.mubr.msk.bf16.vlgmr.msra.gmra.mrb[112].mxu1 %vm2619_vm11, %v7282_v19  ;;  %6630 = vmatmul.mubr.msk.bf16.vlgmr.msra.gmra.mrb[40].mxu0 %vm2619_vm11, %v7283_v39 }
 0x42e   : > { %6647 = vmatprep.mubr.msk.bf16.mxu0 %vm7532_vm2, %v7531_v10  ;;  %6653 = vmatprep.mubr.msk.bf16.mxu1 %vm7532_vm2, %v7531_v10 }
 0x42f   : > { %6646 = vmatpush3.bf16.msra.mxu0 %v2727_v52  ;;  %6652 = vmatpush3.bf16.msra.mxu1 %v2774_v12  ;;  %v7287_v52 = vld [vmem:[%s8975_s2 + $0x28] sm:$0xff]   ;;  %v3188_v12 = vsel %vm2725_vm12, %v5879_v28, 0 }
 0x430   : > { %6657 = vmatprep.subr.bf16.mxu0 %v7531_v10  ;;  %6669 = vmatprep.subr.bf16.mxu1 %v7531_v10 }
 0x500   : > { %v2711_v24 = vpop.f32.mrb[112].mxu1  ;;  %v2657_v0 = vpop.f32.mrb[40].mxu0 }
 0x501   : > { %v6643_v30 = vpop.f32.mrb[113].mxu1  ;;  %v6631_v32 = vpop.f32.mrb[41].mxu0 }
 0x502   : > { %v2714_v37 = vpop.f32.mrb[114].mxu1  ;;  %v2660_v40 = vpop.f32.mrb[42].mxu0 }
 0x503   : > { %v2718_v41 = vpack.c.bf16 %v2714_v37, %v2711_v24  ;;  %v2664_v3 = vpack.c.bf16 %v2660_v40, %v2657_v0  ;;  %v6644_v45 = vpop.f32.mrb[115].mxu1  ;;  %v6632_v11 = vpop.f32.mrb[43].mxu0 }
 0x505   : > { %6648 = vmatmul.mubr.msk.bf16.vlgmr.msra.gmra.mrb[44].mxu0 %vm2721_vm13, %v2718_v41  ;;  %6654 = vmatmul.mubr.msk.bf16.vlgmr.msra.gmra.mrb[116].mxu1 %vm2721_vm13, %v2664_v3 }
 0x506   : > { %6658 = vmatpush3.bf16.msra.mxu0 %v8490_v50  ;;  %6665 = vmatprep.mubr.msk.bf16.mxu0 %vm7532_vm2, %v7531_v10 }
 0x507   : > { %6659 = vmatprep.subr.bf16.mxu0 %v7531_v10  ;;  %6671 = vmatprep.mubr.msk.bf16.mxu1 %vm7532_vm2, %v7531_v10 }
 0x508   : > { %6670 = vmatpush3.bf16.msra.mxu1 %v2876_v4  ;;  %v5885_v4 = vld [vmem:[%s8979_s6 + $0x18] sm:$0xf] }
 0x509   : > { %6675 = vmatprep.subr.bf16.mxu1 %v7531_v10 }
 0x50a   : > { %6660 = vmatpush3.bf16.msra.mxu0 %v8484_v35 }
 0x50b   : > { %6661 = vmatprep.subr.bf16.mxu0 %v7531_v10 }
 0x50e   : > { %6662 = vmatpush3.bf16.msra.mxu0 %v8519_v26 }
 0x50f   : > { %6663 = vmatprep.subr.bf16.mxu0 %v7531_v10 }
 0x512   : > { %6664 = vmatpush3.bf16.msra.mxu0 %v8517_v25 }
 0x513   : > { %6687 = vmatprep.subr.bf16.mxu0 %v7531_v10 }
 0x515   : > { %6666 = vmatmul.mubr.msk.bf16.vlgmr.msra.gmra.mrb[48].mxu0 %vm2619_vm11, %v7284_v51 }
 0x516   : > { %6689 = vmatprep.mubr.msk.bf16.mxu0 %vm7532_vm2, %v7531_v10  ;;  %6688 = vmatpush3.bf16.msra.mxu0 %v2980_v58 }
 0x517   : > { %6693 = vmatprep.subr.bf16.mxu0 %v7531_v10 }
 0x5d8   : > { %v2763_v22 = vpop.f32.mrb[44].mxu0  ;;  %v2810_v15 = vpop.f32.mrb[116].mxu1 }
 0x5d9   : > { %v6649_v34 = vpop.f32.mrb[45].mxu0  ;;  %v2811_v17 = vadd.f32 %v2810_v15, %v2763_v22  ;;  %v6655_v36 = vpop.f32.mrb[117].mxu1  ;;  %v3292_v22 = vsel %vm2725_vm12, %v5885_v4, 0 }
 0x5da   : > { %v2766_v38 = vpop.f32.mrb[46].mxu0  ;;  %v2813_v46 = vpop.f32.mrb[118].mxu1 }
 0x5db   : > { %v6650_v48 = vpop.f32.mrb[47].mxu0  ;;  %v2814_v55 = vadd.f32 %v2813_v46, %v2766_v38  ;;  %v6656_v56 = vpop.f32.mrb[119].mxu1 }
 0x5e8   : > { %v2862_v44 = vpop.f32.mrb[48].mxu0 }
 0x5e9   : > { %v6667_v57 = vpop.f32.mrb[49].mxu0 }
 0x5ea   : > { %v2865_v1 = vpop.f32.mrb[50].mxu0 }
 0x5eb   : > { %v2869_v7 = vpack.c.bf16 %v2865_v1, %v2862_v44  ;;  %v6668_v9 = vpop.f32.mrb[51].mxu0  ;;  %v7289_v1 = vld [vmem:[%s8975_s2 + $0x38] sm:$0xff]  }
 0x5ed   : > { %6672 = vmatmul.mubr.msk.bf16.vlgmr.msra.gmra.mrb[120].mxu1 %vm2721_vm13, %v2869_v7  ;;  %v5891_v7 = vld [vmem:[%s8979_s6 + $0x1c] sm:$0xf] }
 0x5ee   : > { %6676 = vmatpush3.bf16.msra.mxu1 %v8490_v50  ;;  %6683 = vmatprep.mubr.msk.bf16.mxu1 %vm7532_vm2, %v7531_v10  ;;  %v3396_v9 = vsel %vm2725_vm12, %v5891_v7, 0 }
 0x5ef   : > { %6677 = vmatprep.subr.bf16.mxu1 %v7531_v10 }
 0x5f2   : > { %6678 = vmatpush3.bf16.msra.mxu1 %v8484_v35 }
 0x5f3   : > { %6679 = vmatprep.subr.bf16.mxu1 %v7531_v10 }
 0x5f6   : > { %6680 = vmatpush3.bf16.msra.mxu1 %v8519_v26 }
 0x5f7   : > { %6681 = vmatprep.subr.bf16.mxu1 %v7531_v10 }
 0x5fa   : > { %6682 = vmatpush3.bf16.msra.mxu1 %v8517_v25 }
 0x5fb   : > { %6705 = vmatprep.subr.bf16.mxu1 %v7531_v10 }
 0x5fd   : > { %6684 = vmatmul.mubr.msk.bf16.vlgmr.msra.gmra.mrb[124].mxu1 %vm2619_vm11, %v7285_v14 }
 0x5fe   : > { %6707 = vmatprep.mubr.msk.bf16.mxu1 %vm7532_vm2, %v7531_v10  ;;  %6706 = vmatpush3.bf16.msra.mxu1 %v3084_v20 }
 0x5ff   : > { %6711 = vmatprep.subr.bf16.mxu1 %v7531_v10 }
 0x6c0   : > { %v2912_v60 = vpop.f32.mrb[120].mxu1 }
 0x6c1   : > { %v2919_v31 = vadd.f32 %v2912_v60, %v2811_v17  ;;  %v6673_v53 = vpop.f32.mrb[121].mxu1 }
 0x6c2   : > { %v2915_v59 = vpop.f32.mrb[122].mxu1 }
 0x6c3   : > { %v2920_v61 = vadd.f32 %v2915_v59, %v2814_v55  ;;  %v6674_v63 = vpop.f32.mrb[123].mxu1 }
 0x6d0   : > { %v2966_v5 = vpop.f32.mrb[124].mxu1 }
 0x6d1   : > { %v6685_v43 = vpop.f32.mrb[125].mxu1 }
 0x6d2   : > { %v2969_v8 = vpop.f32.mrb[126].mxu1 }
 0x6d3   : > { %v2973_v2 = vpack.c.bf16 %v2969_v8, %v2966_v5  ;;  %v6686_v62 = vpop.f32.mrb[127].mxu1  ;;  %v7290_v8 = vld [vmem:[%s8975_s2 + $0x40] sm:$0xff]  }
 0x6d5   : > { %6690 = vmatmul.mubr.msk.bf16.vlgmr.msra.gmra.mrb[52].mxu0 %vm2721_vm13, %v2973_v2 }
 0x6d6   : > { %6694 = vmatpush3.bf16.msra.mxu0 %v8490_v50  ;;  %6701 = vmatprep.mubr.msk.bf16.mxu0 %vm7532_vm2, %v7531_v10 }
 0x6d7   : > { %6695 = vmatprep.subr.bf16.mxu0 %v7531_v10 }
 0x6da   : > { %6696 = vmatpush3.bf16.msra.mxu0 %v8484_v35 }
 0x6db   : > { %6697 = vmatprep.subr.bf16.mxu0 %v7531_v10 }
 0x6de   : > { %6698 = vmatpush3.bf16.msra.mxu0 %v8519_v26 }
 0x6df   : > { %6699 = vmatprep.subr.bf16.mxu0 %v7531_v10 }
 0x6e2   : > { %6700 = vmatpush3.bf16.msra.mxu0 %v8517_v25 }
 0x6e3   : > { %6723 = vmatprep.subr.bf16.mxu0 %v7531_v10 }
 0x6e5   : > { %6702 = vmatmul.mubr.msk.bf16.vlgmr.msra.gmra.mrb[56].mxu0 %vm2619_vm11, %v7286_v6 }
 0x6e6   : > { %6725 = vmatprep.mubr.msk.bf16.mxu0 %vm7532_vm2, %v7531_v10  ;;  %6724 = vmatpush3.bf16.msra.mxu0 %v3188_v12 }
 0x6e7   : > { %6729 = vmatprep.subr.bf16.mxu0 %v7531_v10 }
 0x7a8   : > { %v3016_v27 = vpop.f32.mrb[52].mxu0 }
 0x7a9   : > { %v3023_v29 = vadd.f32 %v3016_v27, %v2919_v31  ;;  %v6691_v13 = vpop.f32.mrb[53].mxu0 }
 0x7aa   : > { %v3019_v33 = vpop.f32.mrb[54].mxu0 }
 0x7ab   : > { %v3024_v47 = vadd.f32 %v3019_v33, %v2920_v61  ;;  %v6692_v49 = vpop.f32.mrb[55].mxu0 }
 0x7ac   : > { %v5899_v49 = vld [vmem:[%s8983_s10] ss:$0 sm:$0xff] }
 0x7b8   : > { %v3070_v16 = vpop.f32.mrb[56].mxu0 }
 0x7b9   : > { %v6703_v21 = vpop.f32.mrb[57].mxu0 }
 0x7ba   : > { %v3073_v19 = vpop.f32.mrb[58].mxu0 }
 0x7bb   : > { %v3077_v39 = vpack.c.bf16 %v3073_v19, %v3070_v16  ;;  %v6704_v23 = vpop.f32.mrb[59].mxu0 }
 0x7bd   : > { %6708 = vmatmul.mubr.msk.bf16.vlgmr.msra.gmra.mrb[128].mxu1 %vm2721_vm13, %v3077_v39 }
 0x7be   : > { %6712 = vmatpush3.bf16.msra.mxu1 %v8490_v50  ;;  %6719 = vmatprep.mubr.msk.bf16.mxu1 %vm7532_vm2, %v7531_v10 }
 0x7bf   : > { %6713 = vmatprep.subr.bf16.mxu1 %v7531_v10 }
 0x7c2   : > { %6714 = vmatpush3.bf16.msra.mxu1 %v8484_v35 }
 0x7c3   : > { %6715 = vmatprep.subr.bf16.mxu1 %v7531_v10 }
 0x7c6   : > { %6716 = vmatpush3.bf16.msra.mxu1 %v8519_v26 }
 0x7c7   : > { %6717 = vmatprep.subr.bf16.mxu1 %v7531_v10 }
 0x7ca   : > { %6718 = vmatpush3.bf16.msra.mxu1 %v8517_v25 }
 0x7cb   : > { %6741 = vmatprep.subr.bf16.mxu1 %v7531_v10 }
 0x7cd   : > { %6720 = vmatmul.mubr.msk.bf16.vlgmr.msra.gmra.mrb[132].mxu1 %vm2619_vm11, %v7287_v52 }
 0x7ce   : > { %6743 = vmatprep.mubr.msk.bf16.mxu1 %vm7532_vm2, %v7531_v10  ;;  %6742 = vmatpush3.bf16.msra.mxu1 %v3292_v22 }
 0x7cf   : > { %6747 = vmatprep.subr.bf16.mxu1 %v7531_v10 }
 0x890   : > { %v3120_v24 = vpop.f32.mrb[128].mxu1 }
 0x891   : > { %v3127_v0 = vadd.f32 %v3120_v24, %v3023_v29  ;;  %v6709_v30 = vpop.f32.mrb[129].mxu1 }
 0x892   : > { %v3123_v32 = vpop.f32.mrb[130].mxu1 }
 0x893   : > { %v3128_v37 = vadd.f32 %v3123_v32, %v3024_v47  ;;  %v6710_v40 = vpop.f32.mrb[131].mxu1 }
 0x8a0   : > { %v3174_v41 = vpop.f32.mrb[132].mxu1 }
 0x8a1   : > { %v6721_v3 = vpop.f32.mrb[133].mxu1 }
 0x8a2   : > { %v3177_v45 = vpop.f32.mrb[134].mxu1 }
 0x8a3   : > { %v3181_v11 = vpack.c.bf16 %v3177_v45, %v3174_v41  ;;  %v6722_v51 = vpop.f32.mrb[135].mxu1 }
 0x8a5   : > { %6726 = vmatmul.mubr.msk.bf16.vlgmr.msra.gmra.mrb[60].mxu0 %vm2721_vm13, %v3181_v11 }
 0x8a6   : > { %6730 = vmatpush3.bf16.msra.mxu0 %v8490_v50  ;;  %6737 = vmatprep.mubr.msk.bf16.mxu0 %vm7532_vm2, %v7531_v10 }
 0x8a7   : > { %6731 = vmatprep.subr.bf16.mxu0 %v7531_v10 }
 0x8aa   : > { %6732 = vmatpush3.bf16.msra.mxu0 %v8484_v35 }
 0x8ab   : > { %6733 = vmatprep.subr.bf16.mxu0 %v7531_v10 }
 0x8ae   : > { %6734 = vmatpush3.bf16.msra.mxu0 %v8519_v26 }
 0x8af   : > { %6735 = vmatprep.subr.bf16.mxu0 %v7531_v10 }
 0x8b2   : > { %6736 = vmatpush3.bf16.msra.mxu0 %v8517_v25 }
 0x8b3   : > { %6759 = vmatprep.subr.bf16.mxu0 %v7531_v10 }
 0x8b5   : > { %6738 = vmatmul.mubr.msk.bf16.vlgmr.msra.gmra.mrb[64].mxu0 %vm2619_vm11, %v7288_v18 }
 0x8b6   : > { %6761 = vmatprep.mubr.msk.bf16.mxu0 %vm7532_vm2, %v7531_v10  ;;  %6760 = vmatpush3.bf16.msra.mxu0 %v3396_v9 }
 0x8b7   : > { %6765 = vmatprep.subr.bf16.mxu0 %v7531_v10 }
 0x978   : > { %v3224_v15 = vpop.f32.mrb[60].mxu0 }
 0x979   : > { %v3231_v34 = vadd.f32 %v3224_v15, %v3127_v0  ;;  %v6727_v17 = vpop.f32.mrb[61].mxu0 }
 0x97a   : > { %v3227_v36 = vpop.f32.mrb[62].mxu0 }
 0x97b   : > { %v3232_v38 = vadd.f32 %v3227_v36, %v3128_v37  ;;  %v6728_v46 = vpop.f32.mrb[63].mxu0 }
 0x988   : > { %v3278_v48 = vpop.f32.mrb[64].mxu0 }
 0x989   : > { %v6739_v55 = vpop.f32.mrb[65].mxu0 }
 0x98a   : > { %v3281_v56 = vpop.f32.mrb[66].mxu0 }
 0x98b   : > { %v3285_v44 = vpack.c.bf16 %v3281_v56, %v3278_v48  ;;  %v6740_v57 = vpop.f32.mrb[67].mxu0 }
 0x98d   : > { %6744 = vmatmul.mubr.msk.bf16.vlgmr.msra.gmra.mrb[136].mxu1 %vm2721_vm13, %v3285_v44 }
 0x98e   : > { %6748 = vmatpush3.bf16.msra.mxu1 %v8490_v50  ;;  %6755 = vmatprep.mubr.msk.bf16.mxu1 %vm7532_vm2, %v7531_v10 }
 0x98f   : > { %6749 = vmatprep.subr.bf16.mxu1 %v7531_v10 }
 0x992   : > { %6750 = vmatpush3.bf16.msra.mxu1 %v8484_v35 }
 0x993   : > { %6751 = vmatprep.subr.bf16.mxu1 %v7531_v10 }
 0x996   : > { %6752 = vmatpush3.bf16.msra.mxu1 %v8519_v26 }
 0x997   : > { %6753 = vmatprep.subr.bf16.mxu1 %v7531_v10 }
 0x99a   : > { %6754 = vmatpush3.bf16.msra.mxu1 %v8517_v25 }
 0x99b   : > { %6777 = vmatprep.subr.bf16.mxu1 %v7531_v10 }
 0x99d   : > { %6756 = vmatmul.mubr.msk.bf16.vlgmr.msra.gmra.mrb[140].mxu1 %vm2619_vm11, %v7289_v1 }
 0x99e   : > { %6779 = vmatprep.mubr.msk.bf16.mxu1 %vm7532_vm2, %v7531_v10 }
 0xa60   : > { %v3328_v14 = vpop.f32.mrb[136].mxu1 }
 0xa61   : > { %v3335_v42 = vadd.f32 %v3328_v14, %v3231_v34  ;;  %v6745_v58 = vpop.f32.mrb[137].mxu1 }
 0xa62   : > { %v3331_v60 = vpop.f32.mrb[138].mxu1 }
 0xa63   : > { %v3336_v31 = vadd.f32 %v3331_v60, %v3232_v38  ;;  %v6746_v53 = vpop.f32.mrb[139].mxu1 }
 0xa70   : > { %v3382_v59 = vpop.f32.mrb[140].mxu1 }
 0xa71   : > { %v6757_v61 = vpop.f32.mrb[141].mxu1 }
 0xa72   : > { %v3385_v63 = vpop.f32.mrb[142].mxu1 }
 0xa73   : > { %v3389_v5 = vpack.c.bf16 %v3385_v63, %v3382_v59  ;;  %v6758_v43 = vpop.f32.mrb[143].mxu1  ;;  %v3642_v63 = vld [vmem:[#allocation2 + $0x2] sm:$0x3] }
 0xa74   : > { %v7291_v43 = vld [vmem:[#allocation5 + $0x8] sm:$0xff]  }
 0xa75   : > { %6762 = vmatmul.mubr.msk.bf16.vlgmr.msra.gmra.mrb[68].mxu0 %vm2721_vm13, %v3389_v5  ;;  %v3593_v5 = vld [vmem:[#allocation2] sm:$0x3] }
 0xa76   : > { %6766 = vmatpush3.bf16.msra.mxu0 %v8490_v50  ;;  %6773 = vmatprep.mubr.msk.bf16.mxu0 %vm7532_vm2, %v7531_v10 }
 0xa77   : > { %6767 = vmatprep.subr.bf16.mxu0 %v7531_v10 }
 0xa7a   : > { %6768 = vmatpush3.bf16.msra.mxu0 %v8484_v35  ;;  %v5897_v35 = vld [vmem:[%s8979_s6 + $0x20] sm:$0xf] }
 0xa7b   : > { %6769 = vmatprep.subr.bf16.mxu0 %v7531_v10  ;;  %v3500_v50 = vsel %vm2725_vm12, %v5897_v35, 0 }
 0xa7c   : > { %6778 = vmatpush3.bf16.msra.mxu1 %v3500_v50 }
 0xa7d   : > { %6783 = vmatprep.subr.bf16.mxu1 %v7531_v10 }
 0xa7e   : > { %6770 = vmatpush3.bf16.msra.mxu0 %v8519_v26 }
 0xa7f   : > { %6771 = vmatprep.subr.bf16.mxu0 %v7531_v10 }
 0xa82   : > { %6772 = vmatpush3.bf16.msra.mxu0 %v8517_v25 }
 0xa83   : > { %6789 = vmatprep.subr.bf16.mxu0 %v7531_v10 }
 0xa85   : > { %6774 = vmatmul.mubr.msk.bf16.vlgmr.msra.gmra.mrb[72].mxu0 %vm2619_vm11, %v7290_v8  ;;  %v7292_v8 = vld [vmem:[#allocation5] sm:$0xff]  }
 0xa86   : > { %6791 = vmatprep.mubr.msk.bf16.mxu0 %vm7532_vm2, %v7531_v10 }
 0xb48   : > { %v3432_v26 = vpop.f32.mrb[68].mxu0 }
 0xb49   : > { %v3439_v2 = vadd.f32 %v3432_v26, %v3335_v42  ;;  %v6763_v62 = vpop.f32.mrb[69].mxu0 }
 0xb4a   : > { %v3435_v25 = vpop.f32.mrb[70].mxu0 }
 0xb4b   : > { %v3440_v6 = vadd.f32 %v3435_v25, %v3336_v31  ;;  %v6764_v54 = vpop.f32.mrb[71].mxu0 }
 0xb58   : > { %v3486_v20 = vpop.f32.mrb[72].mxu0 }
 0xb59   : > { %v6775_v27 = vpop.f32.mrb[73].mxu0 }
 0xb5a   : > { %v3489_v29 = vpop.f32.mrb[74].mxu0 }
 0xb5b   : > { %v3493_v13 = vpack.c.bf16 %v3489_v29, %v3486_v20  ;;  %v6776_v33 = vpop.f32.mrb[75].mxu0  ;;  %v3789_v29 = vld [vmem:[#allocation2 + $0x4] sm:$0x3] }
 0xb5c   : > { %v3987_v33 = vld [vmem:[#allocation2 + $0x8] sm:$0x3] }
 0xb5d   : > { %6780 = vmatmul.mubr.msk.bf16.vlgmr.msra.gmra.mrb[144].mxu1 %vm2721_vm13, %v3493_v13  ;;  %v3888_v13 = vld [vmem:[#allocation2 + $0x6] sm:$0x3] }
 0xb5e   : > { %6785 = vmatprep.mubr.msk.bf16.mxu1 %vm7532_vm2, %v7531_v10 }
 0xc30   : > { %v3536_v47 = vpop.f32.mrb[144].mxu1 }
 0xc31   : > { %v3543_v16 = vadd.f32 %v3536_v47, %v3439_v2  ;;  %v6781_v21 = vpop.f32.mrb[145].mxu1  ;;  %v4086_v47 = vld [vmem:[#allocation2 + $0xa] sm:$0x3] }
 0xc32   : > { %v3539_v19 = vpop.f32.mrb[146].mxu1  ;;  %v4383_v21 = vld [vmem:[#allocation2 + $0x10] sm:$0x3] }
 0xc33   : > { %v3552_v39 = vadd.f32 %v5899_v49, %v3543_v16  ;;  %v3544_v23 = vadd.f32 %v3539_v19, %v3440_v6  ;;  %v6782_v52 = vpop.f32.mrb[147].mxu1  ;;  %v4284_v16 = vld [vmem:[#allocation2 + $0xe] sm:$0x3]  ;;  %v7293_v19 = vld [vmem:[#allocation5 + $0x10] sm:$0xff]  }
 0xc35   : > { %v3554_v28 = vand.u32 2147483647, %v3552_v39  ;;  %v3553_v12 = vadd.f32 %v5899_v49, %v3544_v23  ;;  %vm3562_vm14 = vcmp.ge.f32.partialorder %v3552_v39, 0.0  ;;  %v4185_v49 = vld [vmem:[#allocation2 + $0xc] sm:$0x3] }
 0xc37   : > { %v3556_v24 = vsub.f32 0.0, %v3554_v28  ;;  %v3555_v0 = vand.u32 2147483647, %v3553_v12  ;;  %vm3563_vm15 = vcmp.ge.f32.partialorder %v3553_v12, 0.0 }
 0xc39   : > { %v3558_v30 = vmul.f32 1.442695, %v3556_v24  ;;  %v3557_v32 = vsub.f32 0.0, %v3555_v0 }
 0xc3b   : > { %7352 = vpow2.f32 %v3558_v30  ;;  %v3560_v37 = vmul.f32 1.442695, %v3557_v32 }
 0xc3d   : > { %7354 = vpow2.f32 %v3560_v37 }
 0xc45   : > { %v7353_v40 = vpop.eup %7352 }
 0xc46   : > { %v3564_v41 = vmul.f32 2.0, %v7353_v40  ;;  %v3578_v3 = vmul.f32 %v7353_v40, %v7353_v40  ;;  %v3568_v56 = vadd.f32 2.0, %v7353_v40 }
 0xc47   : > { %v7355_v45 = vpop.eup %7354 }
 0xc48   : > { %v3566_v11 = vadd.f32 1.0, %v3564_v41  ;;  %v3574_v51 = vmul.f32 %v7353_v40, %v3564_v41  ;;  %v3580_v18 = vadd.f32 %v3578_v3, %v3564_v41  ;;  %v3565_v4 = vmul.f32 2.0, %v7355_v45 }
 0xc49   : > { %v3579_v22 = vmul.f32 %v7355_v45, %v7355_v45  ;;  %v3569_v44 = vadd.f32 2.0, %v7355_v45  ;;  %v3570_v1 = vmul.f32 %v7353_v40, %v3568_v56  ;;  %v7294_v40 = vld [vmem:[#allocation5 + $0x18] sm:$0xff]  }
 0xc4a   : > { %v3576_v15 = vadd.f32 %v3574_v51, %v3566_v11  ;;  %v3582_v34 = vadd.f32 2.0, %v3580_v18  ;;  %v3567_v17 = vadd.f32 1.0, %v3565_v4  ;;  %v3575_v36 = vmul.f32 %v7355_v45, %v3565_v4  ;;  %v7295_v18 = vld [vmem:[#allocation5 + $0x20] sm:$0xff]  }
 0xc4b   : > { %v3581_v46 = vadd.f32 %v3579_v22, %v3565_v4  ;;  %v3571_v7 = vmul.f32 %v7355_v45, %v3569_v44  ;;  %v3572_v9 = vsel %vm3562_vm14, %v3566_v11, %v3570_v1  ;;  %v7297_v44 = vld [vmem:[#allocation5 + $0x30] sm:$0xff]  }
 0xc4c   : > { %v3584_v38 = vsel %vm3562_vm14, %v3576_v15, %v3582_v34  ;;  %v3577_v48 = vadd.f32 %v3575_v36, %v3567_v17  ;;  %v3586_v58 = vmul.f32 %v3572_v9, %v3552_v39  ;;  %v7296_v36 = vld [vmem:[#allocation5 + $0x28] sm:$0xff]  }
 0xc4d   : > { %v3583_v55 = vadd.f32 2.0, %v3581_v46  ;;  %7356 = vrcp.f32 %v3584_v38  ;;  %v3573_v14 = vsel %vm3563_vm15, %v3567_v17, %v3571_v7 }
 0xc4e   : > { %v3587_v60 = vmul.f32 %v3573_v14, %v3553_v12 }
 0xc4f   : > { %v3585_v57 = vsel %vm3563_vm15, %v3577_v48, %v3583_v55 }
 0xc50   : > { %7358 = vrcp.f32 %v3585_v57 }
 0xc57   : > { %v7357_v42 = vpop.eup %7356 }
 0xc58   : > { %v3590_v53 = vmul.f32 %v7357_v42, %v3586_v58  ;;  %v7298_v42 = vld [vmem:[#allocation5 + $0x38] sm:$0xff]  }
 0xc5a   : > { %v7359_v31 = vpop.eup %7358 }
 0xc5b   : > { %v3591_v59 = vmul.f32 %v7359_v31, %v3587_v60 }
 0xc5d   : > { %v3592_v61 = vpack.c.bf16 %v3591_v59, %v3590_v53 }
 0xc5f   : > { %6784 = vmatpush3.bf16.msra.mxu1 %v3592_v61  ;;  %6790 = vmatpush3.bf16.msra.mxu0 %v3592_v61 }
 0xc60   : > { %6795 = vmatprep.subr.bf16.mxu1 %v7531_v10  ;;  %6801 = vmatprep.subr.bf16.mxu0 %v7531_v10 }
 0xc62   : > { %6792 = vmatmul.mubr.msk.bf16.vlgmr.msra.gmra.mrb[76].mxu0 %vm3594_vm3, %v3642_v63  ;;  %6786 = vmatmul.mubr.msk.bf16.vlgmr.msra.gmra.mrb[148].mxu1 %vm3594_vm3, %v3593_v5 }
 0xc63   : > { %6796 = vmatpush3.bf16.msra.mxu1 %v7291_v43  ;;  %6797 = vmatprep.mubr.msk.bf16.mxu1 %vm7532_vm2, %v7531_v10 }
 0xc64   : > { %6807 = vmatprep.subr.bf16.mxu1 %v7531_v10  ;;  %6803 = vmatprep.mubr.msk.bf16.mxu0 %vm7532_vm2, %v7531_v10 }
 0xc65   : > { %6802 = vmatpush3.bf16.msra.mxu0 %v7292_v8 }
 0xc66   : > { %6813 = vmatprep.subr.bf16.mxu0 %v7531_v10 }
 0xd35   : > { %v3680_v35 = vpop.f32.mrb[76].mxu0  ;;  %v3632_v50 = vpop.f32.mrb[148].mxu1 }
 0xd36   : > { %v3686_v26 = vpack.c.bf16 %v3680_v35, %v3680_v35  ;;  %v6793_v2 = vpop.f32.mrb[77].mxu0  ;;  %v3638_v62 = vpack.c.bf16 %v3632_v50, %v3632_v50  ;;  %v6787_v25 = vpop.f32.mrb[149].mxu1 }
 0xd37   : > { %v3683_v6 = vpop.f32.mrb[78].mxu0  ;;  %v3635_v54 = vpop.f32.mrb[150].mxu1 }
 0xd38   : > { %6798 = vmatmul.mubr.msk.bf16.vlgmr.msra.gmra.mrb[152].mxu1 %vm3594_vm3, %v3686_v26  ;;  %v6794_v20 = vpop.f32.mrb[79].mxu0  ;;  %6804 = vmatmul.mubr.msk.bf16.vlgmr.msra.gmra.mrb[80].mxu0 %vm3594_vm3, %v3638_v62  ;;  %v6788_v27 = vpop.f32.mrb[151].mxu1 }
 0xd39   : > { %6808 = vmatpush3.bf16.msra.mxu1 %v3592_v61  ;;  %6809 = vmatprep.mubr.msk.bf16.mxu1 %vm7532_vm2, %v7531_v10 }
 0xd3a   : > { %6819 = vmatprep.subr.bf16.mxu1 %v7531_v10  ;;  %6815 = vmatprep.mubr.msk.bf16.mxu0 %vm7532_vm2, %v7531_v10 }
 0xd3b   : > { %6814 = vmatpush3.bf16.msra.mxu0 %v7293_v19 }
 0xd3c   : > { %6825 = vmatprep.subr.bf16.mxu0 %v7531_v10 }
 0xd40   : > { %6810 = vmatmul.mubr.msk.bf16.vlgmr.msra.gmra.mrb[156].mxu1 %vm3594_vm3, %v3789_v29 }
 0xd41   : > { %6820 = vmatpush3.bf16.msra.mxu1 %v3592_v61  ;;  %6821 = vmatprep.mubr.msk.bf16.mxu1 %vm7532_vm2, %v7531_v10 }
 0xd42   : > { %6831 = vmatprep.subr.bf16.mxu1 %v7531_v10 }
 0xd48   : > { %6822 = vmatmul.mubr.msk.bf16.vlgmr.msra.gmra.mrb[160].mxu1 %vm3594_vm3, %v3888_v13 }
 0xd49   : > { %6832 = vmatpush3.bf16.msra.mxu1 %v3592_v61  ;;  %6833 = vmatprep.mubr.msk.bf16.mxu1 %vm7532_vm2, %v7531_v10 }
 0xd4a   : > { %6843 = vmatprep.subr.bf16.mxu1 %v7531_v10 }
 0xd50   : > { %6834 = vmatmul.mubr.msk.bf16.vlgmr.msra.gmra.mrb[164].mxu1 %vm3594_vm3, %v3987_v33 }
 0xd51   : > { %6844 = vmatpush3.bf16.msra.mxu1 %v3592_v61  ;;  %6845 = vmatprep.mubr.msk.bf16.mxu1 %vm7532_vm2, %v7531_v10 }
 0xd52   : > { %6855 = vmatprep.subr.bf16.mxu1 %v7531_v10 }
 0xd58   : > { %6846 = vmatmul.mubr.msk.bf16.vlgmr.msra.gmra.mrb[168].mxu1 %vm3594_vm3, %v4086_v47 }
 0xd59   : > { %6856 = vmatpush3.bf16.msra.mxu1 %v3592_v61  ;;  %6857 = vmatprep.mubr.msk.bf16.mxu1 %vm7532_vm2, %v7531_v10 }
 0xd5a   : > { %6867 = vmatprep.subr.bf16.mxu1 %v7531_v10 }
 0xd60   : > { %6858 = vmatmul.mubr.msk.bf16.vlgmr.msra.gmra.mrb[172].mxu1 %vm3594_vm3, %v4185_v49 }
 0xd61   : > { %6868 = vmatpush3.bf16.msra.mxu1 %v3592_v61  ;;  %6869 = vmatprep.mubr.msk.bf16.mxu1 %vm7532_vm2, %v7531_v10 }
 0xd62   : > { %6879 = vmatprep.subr.bf16.mxu1 %v7531_v10 }
 0xd68   : > { %6870 = vmatmul.mubr.msk.bf16.vlgmr.msra.gmra.mrb[176].mxu1 %vm3594_vm3, %v4284_v16 }
 0xd69   : > { %6880 = vmatpush3.bf16.msra.mxu1 %v3592_v61  ;;  %6881 = vmatprep.mubr.msk.bf16.mxu1 %vm7532_vm2, %v7531_v10  ;;  %v7299_v61 = vld [vmem:[#allocation5 + $0x40] sm:$0xff]  }
 0xd6a   : > { %6891 = vmatprep.subr.bf16.mxu1 %v7531_v10 }
 0xd70   : > { %6882 = vmatmul.mubr.msk.bf16.vlgmr.msra.gmra.mrb[180].mxu1 %vm3594_vm3, %v4383_v21 }
 0xd71   : > { %6893 = vmatprep.mubr.msk.bf16.mxu1 %vm7532_vm2, %v7531_v10 }
 0xe0b   : > { %v3733_v39 = vpop.f32.mrb[152].mxu1  ;;  %v3782_v23 = vpop.f32.mrb[80].mxu0 }
 0xe0c   : > { %v6799_v52 = vpop.f32.mrb[153].mxu1  ;;  %v8759_v28 = vadd.f32 %v3782_v23, %v3733_v39  ;;  %v6805_v12 = vpop.f32.mrb[81].mxu0 }
 0xe0d   : > { %v3736_v24 = vpop.f32.mrb[154].mxu1  ;;  %v3785_v0 = vpop.f32.mrb[82].mxu0 }
 0xe0e   : > { %v6800_v30 = vpop.f32.mrb[155].mxu1  ;;  %v6806_v32 = vpop.f32.mrb[83].mxu0 }
 0xe13   : > { %v3827_v37 = vpop.f32.mrb[156].mxu1 }
 0xe14   : > { %v3833_v41 = vpack.c.bf16 %v3827_v37, %v3827_v37  ;;  %v6811_v3 = vpop.f32.mrb[157].mxu1 }
 0xe15   : > { %v3830_v45 = vpop.f32.mrb[158].mxu1 }
 0xe16   : > { %6816 = vmatmul.mubr.msk.bf16.vlgmr.msra.gmra.mrb[84].mxu0 %vm3594_vm3, %v3833_v41  ;;  %v6812_v11 = vpop.f32.mrb[159].mxu1 }
 0xe17   : > { %6826 = vmatpush3.bf16.msra.mxu0 %v7294_v40  ;;  %6827 = vmatprep.mubr.msk.bf16.mxu0 %vm7532_vm2, %v7531_v10 }
 0xe18   : > { %6837 = vmatprep.subr.bf16.mxu0 %v7531_v10 }
 0xe1b   : > { %v3926_v51 = vpop.f32.mrb[160].mxu1 }
 0xe1c   : > { %v3932_v4 = vpack.c.bf16 %v3926_v51, %v3926_v51  ;;  %v6823_v22 = vpop.f32.mrb[161].mxu1 }
 0xe1d   : > { %v3929_v15 = vpop.f32.mrb[162].mxu1  ;;  %v5927_v22 = vld [vmem:[%s8984_s11] ss:$0 sm:$0xff] }
 0xe1e   : > { %6828 = vmatmul.mubr.msk.bf16.vlgmr.msra.gmra.mrb[88].mxu0 %vm3594_vm3, %v3932_v4  ;;  %v6824_v34 = vpop.f32.mrb[163].mxu1 }
 0xe1f   : > { %6838 = vmatpush3.bf16.msra.mxu0 %v7295_v18  ;;  %6839 = vmatprep.mubr.msk.bf16.mxu0 %vm7532_vm2, %v7531_v10 }
 0xe20   : > { %6849 = vmatprep.subr.bf16.mxu0 %v7531_v10 }
 0xe23   : > { %v4025_v17 = vpop.f32.mrb[164].mxu1 }
 0xe24   : > { %v4031_v38 = vpack.c.bf16 %v4025_v17, %v4025_v17  ;;  %v6835_v46 = vpop.f32.mrb[165].mxu1 }
 0xe25   : > { %v4028_v48 = vpop.f32.mrb[166].mxu1 }
 0xe26   : > { %6840 = vmatmul.mubr.msk.bf16.vlgmr.msra.gmra.mrb[92].mxu0 %vm3594_vm3, %v4031_v38  ;;  %v6836_v55 = vpop.f32.mrb[167].mxu1 }
 0xe27   : > { %6850 = vmatpush3.bf16.msra.mxu0 %v7296_v36  ;;  %6851 = vmatprep.mubr.msk.bf16.mxu0 %vm7532_vm2, %v7531_v10 }
 0xe28   : > { %6861 = vmatprep.subr.bf16.mxu0 %v7531_v10 }
 0xe2b   : > { %v4124_v56 = vpop.f32.mrb[168].mxu1 }
 0xe2c   : > { %v4130_v57 = vpack.c.bf16 %v4124_v56, %v4124_v56  ;;  %v6847_v1 = vpop.f32.mrb[169].mxu1 }
 0xe2d   : > { %v4127_v7 = vpop.f32.mrb[170].mxu1 }
 0xe2e   : > { %6852 = vmatmul.mubr.msk.bf16.vlgmr.msra.gmra.mrb[96].mxu0 %vm3594_vm3, %v4130_v57  ;;  %v6848_v9 = vpop.f32.mrb[171].mxu1 }
 0xe2f   : > { %6862 = vmatpush3.bf16.msra.mxu0 %v7297_v44  ;;  %6863 = vmatprep.mubr.msk.bf16.mxu0 %vm7532_vm2, %v7531_v10 }
 0xe30   : > { %6873 = vmatprep.subr.bf16.mxu0 %v7531_v10 }
 0xe33   : > { %v4223_v14 = vpop.f32.mrb[172].mxu1 }
 0xe34   : > { %v4229_v58 = vpack.c.bf16 %v4223_v14, %v4223_v14  ;;  %v6859_v60 = vpop.f32.mrb[173].mxu1 }
 0xe35   : > { %v4226_v31 = vpop.f32.mrb[174].mxu1 }
 0xe36   : > { %6864 = vmatmul.mubr.msk.bf16.vlgmr.msra.gmra.mrb[100].mxu0 %vm3594_vm3, %v4229_v58  ;;  %v6860_v53 = vpop.f32.mrb[175].mxu1 }
 0xe37   : > { %6874 = vmatpush3.bf16.msra.mxu0 %v7298_v42  ;;  %6875 = vmatprep.mubr.msk.bf16.mxu0 %vm7532_vm2, %v7531_v10 }
 0xe38   : > { %6885 = vmatprep.subr.bf16.mxu0 %v7531_v10 }
 0xe3b   : > { %v4322_v59 = vpop.f32.mrb[176].mxu1 }
 0xe3c   : > { %v4328_v63 = vpack.c.bf16 %v4322_v59, %v4322_v59  ;;  %v6871_v5 = vpop.f32.mrb[177].mxu1 }
 0xe3d   : > { %v4325_v43 = vpop.f32.mrb[178].mxu1 }
 0xe3e   : > { %6876 = vmatmul.mubr.msk.bf16.vlgmr.msra.gmra.mrb[104].mxu0 %vm3594_vm3, %v4328_v63  ;;  %v6872_v8 = vpop.f32.mrb[179].mxu1 }
 0xe3f   : > { %6886 = vmatpush3.bf16.msra.mxu0 %v7299_v61  ;;  %6887 = vmatprep.mubr.msk.bf16.mxu0 %vm7532_vm2, %v7531_v10  ;;  %v5929_v8 = vld [vmem:[%s8977_s4 + $0x1] sm:$0x1] }
 0xe40   : > { %6897 = vmatprep.subr.bf16.mxu0 %v7531_v10 }
 0xe43   : > { %v4421_v35 = vpop.f32.mrb[180].mxu1 }
 0xe44   : > { %v4427_v50 = vpack.c.bf16 %v4421_v35, %v4421_v35  ;;  %v6883_v26 = vpop.f32.mrb[181].mxu1  ;;  %v4509_v35 = vld [vmem:[%s8977_s4] sm:$0x1] }
 0xe45   : > { %v4424_v2 = vpop.f32.mrb[182].mxu1  ;;  %v7301_v26 = vld [vmem:[#allocation7 + $0x18] sm:$0xff]  }
 0xe46   : > { %6888 = vmatmul.mubr.msk.bf16.vlgmr.msra.gmra.mrb[108].mxu0 %vm3594_vm3, %v4427_v50  ;;  %v6884_v62 = vpop.f32.mrb[183].mxu1  ;;  %v7300_v50 = vld [vmem:[#allocation7 + $0x10] sm:$0xff]   ;;  %v7302_v2 = vld [vmem:[#allocation7] sm:$0xff]  }
 0xe47   : > { %6899 = vmatprep.mubr.msk.bf16.mxu0 %vm7532_vm2, %v7531_v10  ;;  %v7303_v62 = vld [vmem:[#allocation7 + $0x8] sm:$0xff]  }
 0xee9   : > { %v3880_v25 = vpop.f32.mrb[84].mxu0 }
 0xeea   : > { %v3886_v6 = vadd.f32 %v3880_v25, %v8759_v28  ;;  %v6817_v54 = vpop.f32.mrb[85].mxu0 }
 0xeeb   : > { %v3883_v20 = vpop.f32.mrb[86].mxu0 }
 0xeec   : > { %v6818_v27 = vpop.f32.mrb[87].mxu0 }
 0xef1   : > { %v3979_v29 = vpop.f32.mrb[88].mxu0 }
 0xef2   : > { %v3985_v13 = vadd.f32 %v3979_v29, %v3886_v6  ;;  %v6829_v33 = vpop.f32.mrb[89].mxu0 }
 0xef3   : > { %v3982_v47 = vpop.f32.mrb[90].mxu0 }
 0xef4   : > { %v6830_v49 = vpop.f32.mrb[91].mxu0 }
 0xef9   : > { %v4078_v16 = vpop.f32.mrb[92].mxu0 }
 0xefa   : > { %v4084_v21 = vadd.f32 %v4078_v16, %v3985_v13  ;;  %v6841_v19 = vpop.f32.mrb[93].mxu0  ;;  %v5937_v16 = vld [vmem:[%s8977_s4 + $0x2] sm:$0x1] }
 0xefb   : > { %v4081_v39 = vpop.f32.mrb[94].mxu0  ;;  %v5947_v19 = vld [vmem:[%s8977_s4 + $0x4] sm:$0x1] }
 0xefc   : > { %v6842_v23 = vpop.f32.mrb[95].mxu0  ;;  %v5952_v39 = vld [vmem:[%s8977_s4 + $0x5] sm:$0x1] }
 0xefd   : > { %v5957_v23 = vld [vmem:[%s8977_s4 + $0x6] sm:$0x1] }
 0xf01   : > { %v4177_v52 = vpop.f32.mrb[96].mxu0 }
 0xf02   : > { %v4183_v12 = vadd.f32 %v4177_v52, %v4084_v21  ;;  %v6853_v24 = vpop.f32.mrb[97].mxu0  ;;  %v5942_v21 = vld [vmem:[%s8977_s4 + $0x3] sm:$0x1]  ;;  %v5962_v52 = vld [vmem:[%s8977_s4 + $0x7] sm:$0x1] }
 0xf03   : > { %v4180_v0 = vpop.f32.mrb[98].mxu0  ;;  %v7304_v24 = vld [vmem:[#allocation7 + $0x20] sm:$0xff]  }
 0xf04   : > { %v6854_v30 = vpop.f32.mrb[99].mxu0  ;;  %v7305_v0 = vld [vmem:[#allocation7 + $0x28] sm:$0xff]  }
 0xf09   : > { %v4276_v32 = vpop.f32.mrb[100].mxu0 }
 0xf0a   : > { %v4282_v28 = vadd.f32 %v4276_v32, %v4183_v12  ;;  %v6865_v37 = vpop.f32.mrb[101].mxu0  ;;  %v5967_v12 = vld [vmem:[%s8977_s4 + $0x8] sm:$0x1] }
 0xf0b   : > { %v4279_v40 = vpop.f32.mrb[102].mxu0 }
 0xf0c   : > { %v6866_v41 = vpop.f32.mrb[103].mxu0 }
 0xf11   : > { %v4375_v3 = vpop.f32.mrb[104].mxu0 }
 0xf12   : > { %v4381_v45 = vadd.f32 %v4375_v3, %v4282_v28  ;;  %v6877_v11 = vpop.f32.mrb[105].mxu0 }
 0xf13   : > { %v4378_v51 = vpop.f32.mrb[106].mxu0 }
 0xf14   : > { %v6878_v18 = vpop.f32.mrb[107].mxu0 }
 0xf15   : > { %v7306_v18 = vld [vmem:[#allocation7 + $0x30] sm:$0xff]  }
 0xf19   : > { %v4474_v4 = vpop.f32.mrb[108].mxu0 }
 0xf1a   : > { %v4480_v15 = vadd.f32 %v4474_v4, %v4381_v45  ;;  %v6889_v34 = vpop.f32.mrb[109].mxu0 }
 0xf1b   : > { %v4477_v17 = vpop.f32.mrb[110].mxu0 }
 0xf1c   : > { %v4488_v36 = vadd.f32 %v5927_v22, %v4480_v15  ;;  %v6890_v38 = vpop.f32.mrb[111].mxu0  ;;  %v7307_v17 = vld [vmem:[#allocation7 + $0x38] sm:$0xff]  }
 0xf1d   : > { %v7308_v38 = vld [vmem:[#allocation7 + $0x40] sm:$0xff]  }
 0xf1e   : > { %v4489_v46 = vand.u32 2147483647, %v4488_v36  ;;  %vm4493_vm4 = vcmp.ge.f32.partialorder %v4488_v36, 0.0 }
 0xf20   : > { %v4490_v48 = vsub.f32 0.0, %v4489_v46 }
 0xf22   : > { %v4491_v55 = vmul.f32 1.442695, %v4490_v48 }
 0xf24   : > { %7360 = vpow2.f32 %v4491_v55 }
 0xf2e   : > { %v7361_v56 = vpop.eup %7360 }
 0xf2f   : > { %v4494_v44 = vmul.f32 2.0, %v7361_v56  ;;  %v4501_v57 = vmul.f32 %v7361_v56, %v7361_v56  ;;  %v4496_v58 = vadd.f32 2.0, %v7361_v56 }
 0xf31   : > { %v4495_v1 = vadd.f32 1.0, %v4494_v44  ;;  %v4499_v7 = vmul.f32 %v7361_v56, %v4494_v44  ;;  %v4502_v9 = vadd.f32 %v4501_v57, %v4494_v44  ;;  %v4497_v31 = vmul.f32 %v7361_v56, %v4496_v58  ;;  %v7309_v44 = vld [vmem:[#allocation7 + $0x48] sm:$0xff]   ;;  %v7311_v58 = vld [vmem:[#allocation7 + $0x58] sm:$0xff]  }
 0xf33   : > { %v4500_v14 = vadd.f32 %v4499_v7, %v4495_v1  ;;  %v4503_v42 = vadd.f32 2.0, %v4502_v9  ;;  %v4498_v53 = vsel %vm4493_vm4, %v4495_v1, %v4497_v31  ;;  %v7310_v1 = vld [vmem:[#allocation7 + $0x50] sm:$0xff]   ;;  %v7312_v31 = vld [vmem:[#allocation7 + $0x60] sm:$0xff]  }
 0xf34   : > { %v4505_v59 = vmul.f32 %v4498_v53, %v4488_v36 }
 0xf35   : > { %v4504_v60 = vsel %vm4493_vm4, %v4500_v14, %v4503_v42 }
 0xf36   : > { %7362 = vrcp.f32 %v4504_v60 }
 0xf40   : > { %v7363_v61 = vpop.eup %7362 }
 0xf41   : > { %v4507_v63 = vmul.f32 %v7363_v61, %v4505_v59 }
 0xf43   : > { %v4508_v5 = vpack.c.bf16 %v4507_v63, %v4507_v63 }
 0xf45   : > { %v8793_v43 = vsel %vm836_vm0, %v4508_v5, 0  ;;  %vm4624_vm0 = vcmask 261120   ;;  %v7313_v5 = vld [vmem:[#allocation7 + $0x68] sm:$0xff]  }
 0xf46   : > { %6892 = vmatpush3.bf16.msra.mxu1 %v8793_v43  ;;  %6898 = vmatpush3.bf16.msra.mxu0 %v8793_v43 }
 0xf47   : > { %6903 = vmatprep.subr.bf16.mxu1 %v7531_v10  ;;  %6911 = vmatprep.subr.bf16.mxu0 %v7531_v10 }
 0xf49   : > { %6900 = vmatmul.mubr.msk.bf16.vlgmr.msra.gmra.mrb[112].mxu0 %vm823_vm1, %v5929_v8  ;;  %6894 = vmatmul.mubr.msk.bf16.vlgmr.msra.gmra.mrb[184].mxu1 %vm823_vm1, %v4509_v35  ;;  %v7314_v8 = vld [vmem:[#allocation7 + $0x70] sm:$0xff]  }
 0xf4a   : > { %6904 = vmatpush3.bf16.msra.mxu1 %v7300_v50  ;;  %6907 = vmatprep.mubr.msk.bf16.mxu1 %vm7532_vm2, %v7531_v10 }
 0xf4b   : > { %6905 = vmatprep.subr.bf16.mxu1 %v7531_v10  ;;  %6915 = vmatprep.mubr.msk.bf16.mxu0 %vm7532_vm2, %v7531_v10 }
 0xf4c   : > { %6912 = vmatpush3.bf16.msra.mxu0 %v7302_v2 }
 0xf4d   : > { %6913 = vmatprep.subr.bf16.mxu0 %v7531_v10 }
 0xf4e   : > { %6906 = vmatpush3.bf16.msra.mxu1 %v7301_v26 }
 0xf4f   : > { %6919 = vmatprep.subr.bf16.mxu1 %v7531_v10 }
 0xf50   : > { %6914 = vmatpush3.bf16.msra.mxu0 %v7303_v62  ;;  %v7315_v62 = vld [vmem:[#allocation7 + $0x78] sm:$0xff]  }
 0xf51   : > { %6925 = vmatprep.subr.bf16.mxu0 %v7531_v10 }
0x101c   : > { %v4600_v25 = vpop.f32.mrb[112].mxu0  ;;  %v4550_v6 = vpop.f32.mrb[184].mxu1 }
0x101d   : > { %v4606_v54 = vpack.c.bf16 %v4600_v25, %v4600_v25  ;;  %v6901_v20 = vpop.f32.mrb[113].mxu0  ;;  %v4556_v27 = vpack.c.bf16 %v4550_v6, %v4550_v6  ;;  %v6895_v29 = vpop.f32.mrb[185].mxu1  ;;  %v7316_v6 = vld [vmem:[#allocation7 + $0x80] sm:$0xff]  }
0x101e   : > { %v4603_v13 = vpop.f32.mrb[114].mxu0  ;;  %v4553_v33 = vpop.f32.mrb[186].mxu1 }
0x101f   : > { %6908 = vmatmul.mubr.msk.bf16.vlgmr.msra.gmra.mrb[188].mxu1 %vm4624_vm0, %v4606_v54  ;;  %v6902_v47 = vpop.f32.mrb[115].mxu0  ;;  %6916 = vmatmul.mubr.msk.bf16.vlgmr.msra.gmra.mrb[116].mxu0 %vm4624_vm0, %v4556_v27  ;;  %v6896_v49 = vpop.f32.mrb[187].mxu1  ;;  %v7317_v13 = vld [vmem:[#allocation7 + $0x88] sm:$0xff]  }
0x1020   : > { %6920 = vmatpush3.bf16.msra.mxu1 %v8793_v43  ;;  %6921 = vmatprep.mubr.msk.bf16.mxu1 %vm7532_vm2, %v7531_v10 }
0x1021   : > { %6933 = vmatprep.subr.bf16.mxu1 %v7531_v10  ;;  %6929 = vmatprep.mubr.msk.bf16.mxu0 %vm7532_vm2, %v7531_v10 }
0x1022   : > { %6926 = vmatpush3.bf16.msra.mxu0 %v7304_v24 }
0x1023   : > { %6927 = vmatprep.subr.bf16.mxu0 %v7531_v10 }
0x1026   : > { %6928 = vmatpush3.bf16.msra.mxu0 %v7305_v0 }
0x1027   : > { %6922 = vmatmul.mubr.msk.bf16.vlgmr.msra.gmra.mrb[192].mxu1 %vm823_vm1, %v5937_v16  ;;  %6939 = vmatprep.subr.bf16.mxu0 %v7531_v10 }
0x1028   : > { %6934 = vmatpush3.bf16.msra.mxu1 %v8793_v43  ;;  %6935 = vmatprep.mubr.msk.bf16.mxu1 %vm7532_vm2, %v7531_v10 }
0x1029   : > { %6947 = vmatprep.subr.bf16.mxu1 %v7531_v10 }
0x102f   : > { %6936 = vmatmul.mubr.msk.bf16.vlgmr.msra.gmra.mrb[196].mxu1 %vm823_vm1, %v5942_v21 }
0x1030   : > { %6948 = vmatpush3.bf16.msra.mxu1 %v8793_v43  ;;  %6949 = vmatprep.mubr.msk.bf16.mxu1 %vm7532_vm2, %v7531_v10 }
0x1031   : > { %6961 = vmatprep.subr.bf16.mxu1 %v7531_v10 }
0x1037   : > { %6950 = vmatmul.mubr.msk.bf16.vlgmr.msra.gmra.mrb[200].mxu1 %vm823_vm1, %v5947_v19  ;;  %v7318_v19 = vld [vmem:[%s8986_s13] sm:$0xff]  }
0x1038   : > { %6962 = vmatpush3.bf16.msra.mxu1 %v8793_v43  ;;  %6963 = vmatprep.mubr.msk.bf16.mxu1 %vm7532_vm2, %v7531_v10 }
0x1039   : > { %6975 = vmatprep.subr.bf16.mxu1 %v7531_v10 }
0x103f   : > { %6964 = vmatmul.mubr.msk.bf16.vlgmr.msra.gmra.mrb[204].mxu1 %vm823_vm1, %v5952_v39  ;;  %v7319_v39 = vld [vmem:[%s8986_s13 + $0x8] sm:$0xff]  }
0x1040   : > { %6976 = vmatpush3.bf16.msra.mxu1 %v8793_v43  ;;  %6977 = vmatprep.mubr.msk.bf16.mxu1 %vm7532_vm2, %v7531_v10 }
0x1041   : > { %6989 = vmatprep.subr.bf16.mxu1 %v7531_v10 }
0x1047   : > { %6978 = vmatmul.mubr.msk.bf16.vlgmr.msra.gmra.mrb[208].mxu1 %vm823_vm1, %v5957_v23 }
0x1048   : > { %6990 = vmatpush3.bf16.msra.mxu1 %v8793_v43  ;;  %6991 = vmatprep.mubr.msk.bf16.mxu1 %vm7532_vm2, %v7531_v10 }
0x1049   : > { %7003 = vmatprep.subr.bf16.mxu1 %v7531_v10 }
0x104f   : > { %6992 = vmatmul.mubr.msk.bf16.vlgmr.msra.gmra.mrb[212].mxu1 %vm823_vm1, %v5962_v52 }
0x1050   : > { %7004 = vmatpush3.bf16.msra.mxu1 %v8793_v43  ;;  %7005 = vmatprep.mubr.msk.bf16.mxu1 %vm7532_vm2, %v7531_v10 }
0x1051   : > { %7017 = vmatprep.subr.bf16.mxu1 %v7531_v10 }
0x1057   : > { %7006 = vmatmul.mubr.msk.bf16.vlgmr.msra.gmra.mrb[216].mxu1 %vm823_vm1, %v5967_v12 }
0x1058   : > { %7021 = vmatprep.mubr.msk.bf16.mxu1 %vm7532_vm2, %v7531_v10  ;;  %7018 = vmatpush3.bf16.msra.mxu1 %v7318_v19 }
0x1059   : > { %7019 = vmatprep.subr.bf16.mxu1 %v7531_v10 }
0x105c   : > { %7020 = vmatpush3.bf16.msra.mxu1 %v7319_v39 }
0x10f2   : > { %v4662_v30 = vpop.f32.mrb[188].mxu1  ;;  %v4717_v32 = vpop.f32.mrb[116].mxu0 }
0x10f3   : > { %v6909_v28 = vpop.f32.mrb[189].mxu1  ;;  %v8879_v37 = vadd.f32 %v4717_v32, %v4662_v30  ;;  %v6917_v40 = vpop.f32.mrb[117].mxu0 }
0x10f4   : > { %v4665_v41 = vpop.f32.mrb[190].mxu1  ;;  %v4720_v3 = vpop.f32.mrb[118].mxu0 }
0x10f5   : > { %v6910_v45 = vpop.f32.mrb[191].mxu1  ;;  %v6918_v11 = vpop.f32.mrb[119].mxu0 }
0x10fa   : > { %v4762_v51 = vpop.f32.mrb[192].mxu1 }
0x10fb   : > { %v4768_v4 = vpack.c.bf16 %v4762_v51, %v4762_v51  ;;  %v6923_v22 = vpop.f32.mrb[193].mxu1 }
0x10fc   : > { %v4765_v15 = vpop.f32.mrb[194].mxu1 }
0x10fd   : > { %6930 = vmatmul.mubr.msk.bf16.vlgmr.msra.gmra.mrb[120].mxu0 %vm4624_vm0, %v4768_v4  ;;  %v6924_v34 = vpop.f32.mrb[195].mxu1 }
0x10fe   : > { %6940 = vmatpush3.bf16.msra.mxu0 %v7306_v18  ;;  %6943 = vmatprep.mubr.msk.bf16.mxu0 %vm7532_vm2, %v7531_v10 }
0x10ff   : > { %6941 = vmatprep.subr.bf16.mxu0 %v7531_v10 }
0x1102   : > { %v4869_v36 = vpop.f32.mrb[196].mxu1  ;;  %6942 = vmatpush3.bf16.msra.mxu0 %v7307_v17 }
0x1103   : > { %v4875_v46 = vpack.c.bf16 %v4869_v36, %v4869_v36  ;;  %6953 = vmatprep.subr.bf16.mxu0 %v7531_v10  ;;  %v6937_v48 = vpop.f32.mrb[197].mxu1 }
0x1104   : > { %v4872_v55 = vpop.f32.mrb[198].mxu1 }
0x1105   : > { %6944 = vmatmul.mubr.msk.bf16.vlgmr.msra.gmra.mrb[124].mxu0 %vm4624_vm0, %v4875_v46  ;;  %v6938_v56 = vpop.f32.mrb[199].mxu1 }
0x1106   : > { %6954 = vmatpush3.bf16.msra.mxu0 %v7308_v38  ;;  %6957 = vmatprep.mubr.msk.bf16.mxu0 %vm7532_vm2, %v7531_v10 }
0x1107   : > { %6955 = vmatprep.subr.bf16.mxu0 %v7531_v10 }
0x110a   : > { %v4976_v57 = vpop.f32.mrb[200].mxu1  ;;  %6956 = vmatpush3.bf16.msra.mxu0 %v7309_v44 }
0x110b   : > { %v4982_v7 = vpack.c.bf16 %v4976_v57, %v4976_v57  ;;  %6967 = vmatprep.subr.bf16.mxu0 %v7531_v10  ;;  %v6951_v9 = vpop.f32.mrb[201].mxu1 }
0x110c   : > { %v4979_v14 = vpop.f32.mrb[202].mxu1 }
0x110d   : > { %6958 = vmatmul.mubr.msk.bf16.vlgmr.msra.gmra.mrb[128].mxu0 %vm4624_vm0, %v4982_v7  ;;  %v6952_v42 = vpop.f32.mrb[203].mxu1  ;;  %v5472_v7 = vld [vmem:[%s8985_s12] sm:$0x1] }
0x110e   : > { %6968 = vmatpush3.bf16.msra.mxu0 %v7310_v1  ;;  %6971 = vmatprep.mubr.msk.bf16.mxu0 %vm7532_vm2, %v7531_v10 }
0x110f   : > { %6969 = vmatprep.subr.bf16.mxu0 %v7531_v10 }
0x1112   : > { %v5083_v60 = vpop.f32.mrb[204].mxu1  ;;  %6970 = vmatpush3.bf16.msra.mxu0 %v7311_v58 }
0x1113   : > { %v5089_v53 = vpack.c.bf16 %v5083_v60, %v5083_v60  ;;  %6981 = vmatprep.subr.bf16.mxu0 %v7531_v10  ;;  %v6965_v59 = vpop.f32.mrb[205].mxu1 }
0x1114   : > { %v5086_v61 = vpop.f32.mrb[206].mxu1 }
0x1115   : > { %6972 = vmatmul.mubr.msk.bf16.vlgmr.msra.gmra.mrb[132].mxu0 %vm4624_vm0, %v5089_v53  ;;  %v6966_v63 = vpop.f32.mrb[207].mxu1 }
0x1116   : > { %6982 = vmatpush3.bf16.msra.mxu0 %v7312_v31  ;;  %6985 = vmatprep.mubr.msk.bf16.mxu0 %vm7532_vm2, %v7531_v10 }
0x1117   : > { %6983 = vmatprep.subr.bf16.mxu0 %v7531_v10 }
0x111a   : > { %v5190_v43 = vpop.f32.mrb[208].mxu1  ;;  %6984 = vmatpush3.bf16.msra.mxu0 %v7313_v5 }
0x111b   : > { %v5196_v35 = vpack.c.bf16 %v5190_v43, %v5190_v43  ;;  %6995 = vmatprep.subr.bf16.mxu0 %v7531_v10  ;;  %v6979_v50 = vpop.f32.mrb[209].mxu1 }
0x111c   : > { %v5193_v26 = vpop.f32.mrb[210].mxu1 }
0x111d   : > { %6986 = vmatmul.mubr.msk.bf16.vlgmr.msra.gmra.mrb[136].mxu0 %vm4624_vm0, %v5196_v35  ;;  %v6980_v2 = vpop.f32.mrb[211].mxu1 }
0x111e   : > { %6996 = vmatpush3.bf16.msra.mxu0 %v7314_v8  ;;  %6999 = vmatprep.mubr.msk.bf16.mxu0 %vm7532_vm2, %v7531_v10 }
0x111f   : > { %6997 = vmatprep.subr.bf16.mxu0 %v7531_v10 }
0x1122   : > { %v5297_v25 = vpop.f32.mrb[212].mxu1  ;;  %6998 = vmatpush3.bf16.msra.mxu0 %v7315_v62 }
0x1123   : > { %v5303_v54 = vpack.c.bf16 %v5297_v25, %v5297_v25  ;;  %7009 = vmatprep.subr.bf16.mxu0 %v7531_v10  ;;  %v6993_v20 = vpop.f32.mrb[213].mxu1 }
0x1124   : > { %v5300_v27 = vpop.f32.mrb[214].mxu1 }
0x1125   : > { %7000 = vmatmul.mubr.msk.bf16.vlgmr.msra.gmra.mrb[140].mxu0 %vm4624_vm0, %v5303_v54  ;;  %v6994_v29 = vpop.f32.mrb[215].mxu1 }
0x1126   : > { %7010 = vmatpush3.bf16.msra.mxu0 %v7316_v6  ;;  %7013 = vmatprep.mubr.msk.bf16.mxu0 %vm7532_vm2, %v7531_v10  ;;  %vm5554_vm2 = vcmask 253952  }
0x1127   : > { %7011 = vmatprep.subr.bf16.mxu0 %v7531_v10 }
0x112a   : > { %v5404_v33 = vpop.f32.mrb[216].mxu1  ;;  %7012 = vmatpush3.bf16.msra.mxu0 %v7317_v13  ;;  %v5498_v13 = vld [vmem:[%s9029_s27] sm:$0x1] }
0x112b   : > { %v5410_v47 = vpack.c.bf16 %v5404_v33, %v5404_v33  ;;  %v7007_v49 = vpop.f32.mrb[217].mxu1 }
0x112c   : > { %v5407_v16 = vpop.f32.mrb[218].mxu1 }
0x112d   : > { %7014 = vmatmul.mubr.msk.bf16.vlgmr.msra.gmra.mrb[144].mxu0 %vm4624_vm0, %v5410_v47  ;;  %v7008_v21 = vpop.f32.mrb[219].mxu1 }
0x11d0   : > { %v4823_v23 = vpop.f32.mrb[120].mxu0 }
0x11d1   : > { %v4829_v52 = vadd.f32 %v4823_v23, %v8879_v37  ;;  %v6931_v12 = vpop.f32.mrb[121].mxu0 }
0x11d2   : > { %v4826_v24 = vpop.f32.mrb[122].mxu0 }
0x11d3   : > { %v6932_v0 = vpop.f32.mrb[123].mxu0 }
0x11d8   : > { %v4930_v30 = vpop.f32.mrb[124].mxu0 }
0x11d9   : > { %v4936_v32 = vadd.f32 %v4930_v30, %v4829_v52  ;;  %v6945_v28 = vpop.f32.mrb[125].mxu0 }
0x11da   : > { %v4933_v40 = vpop.f32.mrb[126].mxu0 }
0x11db   : > { %v6946_v41 = vpop.f32.mrb[127].mxu0 }
0x11e0   : > { %v5037_v3 = vpop.f32.mrb[128].mxu0 }
0x11e1   : > { %v5043_v45 = vadd.f32 %v5037_v3, %v4936_v32  ;;  %v6959_v11 = vpop.f32.mrb[129].mxu0 }
0x11e2   : > { %v5040_v10 = vpop.f32.mrb[130].mxu0 }
0x11e3   : > { %v6960_v51 = vpop.f32.mrb[131].mxu0 }
0x11e8   : > { %v5144_v18 = vpop.f32.mrb[132].mxu0 }
0x11e9   : > { %v5150_v4 = vadd.f32 %v5144_v18, %v5043_v45  ;;  %v6973_v22 = vpop.f32.mrb[133].mxu0 }
0x11ea   : > { %v5147_v15 = vpop.f32.mrb[134].mxu0 }
0x11eb   : > { %v6974_v34 = vpop.f32.mrb[135].mxu0 }
0x11f0   : > { %v5251_v17 = vpop.f32.mrb[136].mxu0 }
0x11f1   : > { %v5257_v37 = vadd.f32 %v5251_v17, %v5150_v4  ;;  %v6987_v36 = vpop.f32.mrb[137].mxu0 }
0x11f2   : > { %v5254_v38 = vpop.f32.mrb[138].mxu0 }
0x11f3   : > { %v6988_v46 = vpop.f32.mrb[139].mxu0 }
0x11f8   : > { %v5358_v48 = vpop.f32.mrb[140].mxu0 }
0x11f9   : > { %v5364_v55 = vadd.f32 %v5358_v48, %v5257_v37  ;;  %v7001_v56 = vpop.f32.mrb[141].mxu0 }
0x11fa   : > { %v5361_v44 = vpop.f32.mrb[142].mxu0 }
0x11fb   : > { %v7002_v57 = vpop.f32.mrb[143].mxu0 }
0x1200   : > { %v5465_v1 = vpop.f32.mrb[144].mxu0 }
0x1201   : > { %v5471_v9 = vadd.f32 %v5465_v1, %v5364_v55  ;;  %v7015_v14 = vpop.f32.mrb[145].mxu0 }
0x1202   : > { %v5468_v42 = vpop.f32.mrb[146].mxu0 }
0x1203   : > { %v5473_v58 = vadd.f32 %v5472_v7, %v5471_v9  ;;  %v7016_v60 = vpop.f32.mrb[147].mxu0 }
0x1205   : > { %v5474_v31 = vand.u32 2147483647, %v5473_v58  ;;  %vm5478_vm1 = vcmp.ge.f32.partialorder %v5473_v58, 0.0 }
0x1207   : > { %v5475_v53 = vsub.f32 0.0, %v5474_v31 }
0x1209   : > { %v5476_v59 = vmul.f32 1.442695, %v5475_v53 }
0x120b   : > { %7364 = vpow2.f32 %v5476_v59 }
0x1215   : > { %v7365_v61 = vpop.eup %7364 }
0x1216   : > { %v5479_v63 = vmul.f32 2.0, %v7365_v61  ;;  %v5486_v5 = vmul.f32 %v7365_v61, %v7365_v61  ;;  %v5481_v2 = vadd.f32 2.0, %v7365_v61 }
0x1218   : > { %v5480_v43 = vadd.f32 1.0, %v5479_v63  ;;  %v5484_v8 = vmul.f32 %v7365_v61, %v5479_v63  ;;  %v5487_v35 = vadd.f32 %v5486_v5, %v5479_v63  ;;  %v5482_v25 = vmul.f32 %v7365_v61, %v5481_v2 }
0x121a   : > { %v5485_v50 = vadd.f32 %v5484_v8, %v5480_v43  ;;  %v5488_v26 = vadd.f32 2.0, %v5487_v35  ;;  %v5483_v6 = vsel %vm5478_vm1, %v5480_v43, %v5482_v25 }
0x121b   : > { %v5490_v54 = vmul.f32 %v5483_v6, %v5473_v58 }
0x121c   : > { %v5489_v62 = vsel %vm5478_vm1, %v5485_v50, %v5488_v26 }
0x121d   : > { %7366 = vrcp.f32 %v5489_v62 }
0x1227   : > { %v7367_v20 = vpop.eup %7366 }
0x1228   : > { %v5492_v27 = vmul.f32 %v7367_v20, %v5490_v54 }
0x122a   : > { %v5493_v29 = vpack.c.bf16 %v5492_v27, %v5492_v27 }
0x122c   : > { %7022 = vmatmul.mubr.msk.bf16.vlgmr.msra.gmra.mrb[220].mxu1 %vm4624_vm0, %v5493_v29 }
0x12ff   : > { %v5548_v33 = vpop.f32.mrb[220].mxu1 }
0x1300   : > { %v5549_v47 = vadd.f32 %v5548_v33, %v5498_v13  ;;  %v7023_v49 = vpop.f32.mrb[221].mxu1 }
0x1301   : > { %v5551_v16 = vpop.f32.mrb[222].mxu1 }
0x1302   : > { %v7024_v21 = vpop.f32.mrb[223].mxu1  ;;  %5555 = vst.msk [vmem:[%s530_s14] sm:$0x1] %vm5554_vm2, %v5549_v47 }
0x1303   : > { %7465 = shalt.err (!%p7462_p11)
}
0x1304   : > { %s7466_s18 = scalar_lea.hbm %s8931_s29, 16  ;;  %s7470_s27 = scalar_lea.hbm %s9032_s24, 32 }
0x1305   : > { %p7467_p5 = scmp.ne.s32.totalorder %s8931_s29, %s7466_s18  ;;  %p7471_p9 = scmp.lt.u32.totalorder %s8931_s29, %s9032_s24 }
0x1306   : > { %p7472_p10 = scmp.lt.u32.totalorder %s7470_s27, %s7466_s18  ;;  %p7474_p12 = scmp.lt.u32.totalorder %s7466_s18, %s8931_s29 }
0x1307   : > { %p7468_p0 = pnand %p7467_p5, %p9033_p1 }
0x1308   : > { %p7473_p13 = por %p7472_p10, %p7471_p9 }
0x1309   : > { %p7469_p6 = pneg %p7468_p0 }
0x130a   : > { %p7475_p2 = por %p7474_p12, %p7473_p13 }
0x130c   : > { %p7476_p3 = pnand %p7475_p2, %p7469_p6 }
0x130e   : > { %7479 = shalt.err (!%p7476_p3)
}
0x130f   : > { %7110 = dma.vmem_to_hbm [thread:$0]  (%p9033_p1), %s8933_s30, 16, %s8931_s29, %s5557_s22  }
0x1310 PF: > { %s9034_s15 = sld [smem:[#allocation15_spill]]  ;;  %s9035_s19 = sld [smem:[#allocation12_spill]] }
0x1311   : > { %s9036_s21 = sld [smem:[#allocation19_spill]] }
0x1316   : > { %p7132_p4 = scmp.ge.s32.totalorder %s9034_s15, 2  ;;  %s5581_s25 = sand.u32 1, %s9035_s19  }
0x1317   : > { %p9037_p7 = scmp.ne.s32.totalorder %s9036_s21, 0  ;;  %s5582_s20 = scalar_lea.sflag [#allocation4], %s5581_s25 }
0x1319   : > { %p7123_p8 = pnand %p7132_p4, %p9037_p7 }
0x131b   : > { %7505 = dma.done.wait (!%p7123_p8), %s5582_s20, 16  }
0x131c   : > { %7507 = vsyncadd (!%p7123_p8), %s5582_s20, 4294967280  ;;  %s9038_s21 = sld [smem:[#allocation16_spill]]  ;;  %s9039_s18 = sld [smem:[#allocation13_spill]] }
0x131d   : > { %s9040_s19 = sld [smem:[#allocation14_spill]]  ;;  %s9041_s20 = sld [smem:[#allocation17_spill]] }
0x1322   : > { %p27_p11 = scmp.ge.s32.totalorder %s9038_s21, 4  }
0x1324   :  { %29 = sbr.rel (!%p27_p11) target bundleno = 9 (0x9), region = 192 }
0x132b   :  { %5586 = vsyncpa [#allocation3], 1 }
0x132c   :  { %5588 = vsyncpa [#allocation3 + $0x1], 1 }
0x132d   :  { %5589 = vsyncpa [#allocation6], 1 }
0x132e   :  { %5590 = vsyncpa [#allocation4], 1 }
0x132f   :  { %5592 = vsyncpa [#allocation4 + $0x1], 1 }

</bundles_post_ra>
